<compile_context>
chip_gen: v7x
topology: tpu7x:2x2x1
jax: 0.10.0
libtpu: 0.0.40
codegen_flags: <defaults>
</compile_context>

<pallas_src>
import math

import jax
import jax.numpy as jnp
from jax.experimental import pallas as pl
from jax.experimental.pallas import tpu as pltpu

HIDDEN = 512
OUT_DIM = 784 * 3          # 2352
OUT_PAD = 20 * 128         # 2560 — lane-multiple padding of the last layer
TN = 1280                  # fc4 N-tile; 2560 / 1280 = 2 independent grid steps
NUM_TILES = OUT_PAD // TN


def _swish(x):
    return x * jax.nn.sigmoid(x)


def decoder_kernel(z_ref,
                   w1_ref, b1_ref,
                   w2_ref, b2_ref,
                   w3_ref, b3_ref,
                   w4_ref, b4_ref,
                   out_ref):
    """Grid = (NUM_TILES,) over lane-dense N-tiles of fc4.

    Every grid step is fully independent: layers 1-3 (~4 MFLOP, weights fully
    resident in VMEM) are recomputed per step, then one contiguous
    (HIDDEN, TN) tile of fc4 produces a lane-dense output slab.  The grid axis
    is marked "parallel" so v7x shards the two tiles across its TensorCores.
    """
    h = jnp.dot(z_ref[...].astype(jnp.bfloat16), w1_ref[...],
                preferred_element_type=jnp.float32) + b1_ref[...]
    h = _swish(h)
    h = jnp.dot(h.astype(jnp.bfloat16), w2_ref[...],
                preferred_element_type=jnp.float32) + b2_ref[...]
    h = _swish(h)
    h = jnp.dot(h.astype(jnp.bfloat16), w3_ref[...],
                preferred_element_type=jnp.float32) + b3_ref[...]
    h = _swish(h).astype(jnp.bfloat16)

    out_ref[...] = (jnp.dot(h, w4_ref[0],
                            preferred_element_type=jnp.float32)
                    + b4_ref[...])


def prepare_params(params):
    """One-time weight packing (call ONCE, outside the per-generation path).

    * all weights cast to bf16 (halves the dominant HBM stream),
    * fc4 padded 2352 -> 2560 and re-laid-out as (NUM_TILES, HIDDEN, TN) so
      each grid step's weight tile is a single contiguous DMA,
    * biases kept f32 (added to f32 accumulators); b4 padded to match.
    """
    w4 = jnp.pad(params["w4"], ((0, 0), (0, OUT_PAD - OUT_DIM))).astype(jnp.bfloat16)
    w4 = w4.reshape(HIDDEN, NUM_TILES, TN).transpose(1, 0, 2)   # (tiles, HIDDEN, TN)
    b4 = jnp.pad(params["b4"], ((0, 0), (0, OUT_PAD - OUT_DIM)))
    packed = {
        "w1": params["w1"].astype(jnp.bfloat16), "b1": params["b1"],
        "w2": params["w2"].astype(jnp.bfloat16), "b2": params["b2"],
        "w3": params["w3"].astype(jnp.bfloat16), "b3": params["b3"],
        "w4": w4, "b4": b4,
    }
    return jax.tree_util.tree_map(jax.block_until_ready, packed)


@jax.jit
def decoder_forward(z, packed):
    """z: (B, latent_dim) f32. packed: output of prepare_params()."""
    B = z.shape[0]

    in_specs = [
        pl.BlockSpec(z.shape, lambda j: (0, 0)),
        pl.BlockSpec(packed["w1"].shape, lambda j: (0, 0)),
        pl.BlockSpec(packed["b1"].shape, lambda j: (0, 0)),
        pl.BlockSpec(packed["w2"].shape, lambda j: (0, 0)),
        pl.BlockSpec(packed["b2"].shape, lambda j: (0, 0)),
        pl.BlockSpec(packed["w3"].shape, lambda j: (0, 0)),
        pl.BlockSpec(packed["b3"].shape, lambda j: (0, 0)),
        pl.BlockSpec((1, HIDDEN, TN), lambda j: (j, 0, 0)),   # contiguous w4 tile
        pl.BlockSpec((1, TN), lambda j: (0, j)),              # matching b4 tile
    ]
    out_specs = pl.BlockSpec((B, TN), lambda j: (0, j))       # lane-dense output slab

    out_padded = pl.pallas_call(
        decoder_kernel,
        out_shape=jax.ShapeDtypeStruct((B, OUT_PAD), jnp.float32),
        grid=(NUM_TILES,),
        in_specs=in_specs,
        out_specs=out_specs,
        compiler_params=pltpu.CompilerParams(
            # Steps are independent -> shard across TensorCores on v7x.
            dimension_semantics=("parallel",),
            vmem_limit_bytes=16 << 20,   # actual footprint ~4 MiB; safe on v7x (64 MiB VMEM)
        ),
    )(z, packed["w1"], packed["b1"], packed["w2"], packed["b2"],
      packed["w3"], packed["b3"], packed["w4"], packed["b4"])

    # TODO(synk): weight-only int8 (v5e/v6e) / fp8-e4m3 (v7x) quantization of
    # w2..w4 would cut the weight-bandwidth-bound HBM stream a further ~2x.
    return out_padded[:, :OUT_DIM]


def init_decoder_params(key, latent_dim):
    """Deterministic init matching torch.nn.Linear default (uniform +/-1/sqrt(fan_in))."""
    dims = [(latent_dim, HIDDEN), (HIDDEN, HIDDEN), (HIDDEN, HIDDEN), (HIDDEN, OUT_DIM)]
    params = {}
    keys = jax.random.split(key, 2 * len(dims))
    for i, (fan_in, fan_out) in enumerate(dims):
        bound = 1.0 / math.sqrt(fan_in)
        w = jax.random.uniform(keys[2 * i], (fan_in, fan_out),
                               minval=-bound, maxval=bound, dtype=jnp.float32)
        b = jax.random.uniform(keys[2 * i + 1], (1, fan_out),
                               minval=-bound, maxval=bound, dtype=jnp.float32)
        params[f"w{i + 1}"] = w
        params[f"b{i + 1}"] = b
    return params


def decoder_reference(z, params):
    """Pure-JAX reference with matching precision (bf16 operands, f32 accumulation)."""
    def layer(x, w, b):
        return jnp.dot(x.astype(jnp.bfloat16), w.astype(jnp.bfloat16),
                       preferred_element_type=jnp.float32) + b
    h = _swish(layer(z, params["w1"], params["b1"]))
    h = _swish(layer(h, params["w2"], params["b2"]))
    h = _swish(layer(h, params["w3"], params["b3"]))
    return layer(h, params["w4"], params["b4"])


if __name__ == "__main__":
    key = jax.random.PRNGKey(0)
    k_param, k_z = jax.random.split(key)

    batch = 8
    latent_dim = 32

    params = init_decoder_params(k_param, latent_dim)
    packed = prepare_params(params)      # one-time weight packing (not in the hot path)
    z = jax.random.normal(k_z, (batch, latent_dim), dtype=jnp.float32)

    out = decoder_forward(z, packed)
    out = jax.block_until_ready(out)

    ref = decoder_reference(z, params)
    assert out.shape == (batch, OUT_DIM), out.shape
    max_err = float(jnp.max(jnp.abs(out - ref)))
    assert jnp.allclose(out, ref, atol=2e-3, rtol=2e-3), f"mismatch vs reference: {max_err}"

    print("KERNEL_OK")
</pallas_src>

<mosaic_0001>
module attributes {stable_mosaic.version = 11 : i64} {
  func.func @decoder_kernel(%arg0: i32, %arg1: memref<8x32xf32, #tpu.memory_space<vmem>>, %arg2: memref<32x512xbf16, #tpu.memory_space<vmem>>, %arg3: memref<1x512xf32, #tpu.memory_space<vmem>>, %arg4: memref<512x512xbf16, #tpu.memory_space<vmem>>, %arg5: memref<1x512xf32, #tpu.memory_space<vmem>>, %arg6: memref<512x512xbf16, #tpu.memory_space<vmem>>, %arg7: memref<1x512xf32, #tpu.memory_space<vmem>>, %arg8: memref<1x512x1280xbf16, #tpu.memory_space<vmem>>, %arg9: memref<1x1280xf32, #tpu.memory_space<vmem>>, %arg10: memref<8x1280xf32, #tpu.memory_space<vmem>>) attributes {dimension_semantics = [#tpu.dimension_semantics<parallel>], iteration_bounds = array<i64: 2>, scalar_prefetch = 0 : i64, scratch_operands = 0 : i64, tpu.core_type = #tpu.core_type<tc>, window_params = [{pipeline_mode = #tpu.pipeline_mode<synchronous>, transform_indices = @transform_0, window_bounds = array<i64: 8, 32>}, {pipeline_mode = #tpu.pipeline_mode<synchronous>, transform_indices = @transform_1, window_bounds = array<i64: 32, 512>}, {pipeline_mode = #tpu.pipeline_mode<synchronous>, transform_indices = @transform_2, window_bounds = array<i64: 1, 512>}, {pipeline_mode = #tpu.pipeline_mode<synchronous>, transform_indices = @transform_3, window_bounds = array<i64: 512, 512>}, {pipeline_mode = #tpu.pipeline_mode<synchronous>, transform_indices = @transform_4, window_bounds = array<i64: 1, 512>}, {pipeline_mode = #tpu.pipeline_mode<synchronous>, transform_indices = @transform_5, window_bounds = array<i64: 512, 512>}, {pipeline_mode = #tpu.pipeline_mode<synchronous>, transform_indices = @transform_6, window_bounds = array<i64: 1, 512>}, {transform_indices = @transform_7, window_bounds = array<i64: 1, 512, 1280>}, {transform_indices = @transform_8, window_bounds = array<i64: 1, 1280>}, {transform_indices = @transform_9, window_bounds = array<i64: 8, 1280>}]} {
    %c0 = arith.constant 0 : index
    %c0_0 = arith.constant 0 : index
    %0 = vector.load %arg1[%c0, %c0_0] : memref<8x32xf32, #tpu.memory_space<vmem>>, vector<8x32xf32>
    %1 = arith.truncf %0 : vector<8x32xf32> to vector<8x32xbf16>
    %c0_1 = arith.constant 0 : index
    %c0_2 = arith.constant 0 : index
    %2 = vector.load %arg2[%c0_1, %c0_2] : memref<32x512xbf16, #tpu.memory_space<vmem>>, vector<32x512xbf16>
    %cst = arith.constant dense<0.000000e+00> : vector<8x512xf32>
    %3 = tpu.matmul %1, %2, %cst {dimension_numbers = #tpu.dot_dimension_numbers<[1], [0], [0], [1], [0, 0, 1, 1], [], []>} : vector<8x32xbf16>, vector<32x512xbf16>, vector<8x512xf32> -> vector<8x512xf32>
    %c0_3 = arith.constant 0 : index
    %c0_4 = arith.constant 0 : index
    %4 = vector.load %arg3[%c0_3, %c0_4] : memref<1x512xf32, #tpu.memory_space<vmem>>, vector<1x512xf32>
    %5 = vector.broadcast %4 : vector<1x512xf32> to vector<8x512xf32>
    %6 = arith.addf %3, %5 : vector<8x512xf32>
    %7 = arith.negf %6 : vector<8x512xf32>
    %8 = math.exp %7 : vector<8x512xf32>
    %cst_5 = arith.constant 1.000000e+00 : f32
    %9 = vector.broadcast %cst_5 : f32 to vector<8x512xf32>
    %10 = arith.addf %9, %8 : vector<8x512xf32>
    %11 = arith.divf %9, %10 : vector<8x512xf32>
    %12 = arith.mulf %6, %11 : vector<8x512xf32>
    %13 = arith.truncf %12 : vector<8x512xf32> to vector<8x512xbf16>
    %c0_6 = arith.constant 0 : index
    %c0_7 = arith.constant 0 : index
    %14 = vector.load %arg4[%c0_6, %c0_7] : memref<512x512xbf16, #tpu.memory_space<vmem>>, vector<512x512xbf16>
    %cst_8 = arith.constant dense<0.000000e+00> : vector<8x512xf32>
    %15 = tpu.matmul %13, %14, %cst_8 {dimension_numbers = #tpu.dot_dimension_numbers<[1], [0], [0], [1], [0, 0, 1, 1], [], []>} : vector<8x512xbf16>, vector<512x512xbf16>, vector<8x512xf32> -> vector<8x512xf32>
    %c0_9 = arith.constant 0 : index
    %c0_10 = arith.constant 0 : index
    %16 = vector.load %arg5[%c0_9, %c0_10] : memref<1x512xf32, #tpu.memory_space<vmem>>, vector<1x512xf32>
    %17 = vector.broadcast %16 : vector<1x512xf32> to vector<8x512xf32>
    %18 = arith.addf %15, %17 : vector<8x512xf32>
    %19 = arith.negf %18 : vector<8x512xf32>
    %20 = math.exp %19 : vector<8x512xf32>
    %cst_11 = arith.constant 1.000000e+00 : f32
    %21 = vector.broadcast %cst_11 : f32 to vector<8x512xf32>
    %22 = arith.addf %21, %20 : vector<8x512xf32>
    %23 = arith.divf %21, %22 : vector<8x512xf32>
    %24 = arith.mulf %18, %23 : vector<8x512xf32>
    %25 = arith.truncf %24 : vector<8x512xf32> to vector<8x512xbf16>
    %c0_12 = arith.constant 0 : index
    %c0_13 = arith.constant 0 : index
    %26 = vector.load %arg6[%c0_12, %c0_13] : memref<512x512xbf16, #tpu.memory_space<vmem>>, vector<512x512xbf16>
    %cst_14 = arith.constant dense<0.000000e+00> : vector<8x512xf32>
    %27 = tpu.matmul %25, %26, %cst_14 {dimension_numbers = #tpu.dot_dimension_numbers<[1], [0], [0], [1], [0, 0, 1, 1], [], []>} : vector<8x512xbf16>, vector<512x512xbf16>, vector<8x512xf32> -> vector<8x512xf32>
    %c0_15 = arith.constant 0 : index
    %c0_16 = arith.constant 0 : index
    %28 = vector.load %arg7[%c0_15, %c0_16] : memref<1x512xf32, #tpu.memory_space<vmem>>, vector<1x512xf32>
    %29 = vector.broadcast %28 : vector<1x512xf32> to vector<8x512xf32>
    %30 = arith.addf %27, %29 : vector<8x512xf32>
    %31 = arith.negf %30 : vector<8x512xf32>
    %32 = math.exp %31 : vector<8x512xf32>
    %cst_17 = arith.constant 1.000000e+00 : f32
    %33 = vector.broadcast %cst_17 : f32 to vector<8x512xf32>
    %34 = arith.addf %33, %32 : vector<8x512xf32>
    %35 = arith.divf %33, %34 : vector<8x512xf32>
    %36 = arith.mulf %30, %35 : vector<8x512xf32>
    %37 = arith.truncf %36 : vector<8x512xf32> to vector<8x512xbf16>
    %c0_18 = arith.constant 0 : index
    %c0_19 = arith.constant 0 : index
    %c0_20 = arith.constant 0 : index
    %38 = vector.load %arg8[%c0_18, %c0_19, %c0_20] : memref<1x512x1280xbf16, #tpu.memory_space<vmem>>, vector<1x512x1280xbf16>
    %39 = vector.shape_cast %38 : vector<1x512x1280xbf16> to vector<512x1280xbf16>
    %cst_21 = arith.constant dense<0.000000e+00> : vector<8x1280xf32>
    %40 = tpu.matmul %37, %39, %cst_21 {dimension_numbers = #tpu.dot_dimension_numbers<[1], [0], [0], [1], [0, 0, 1, 1], [], []>} : vector<8x512xbf16>, vector<512x1280xbf16>, vector<8x1280xf32> -> vector<8x1280xf32>
    %c0_22 = arith.constant 0 : index
    %c0_23 = arith.constant 0 : index
    %41 = vector.load %arg9[%c0_22, %c0_23] : memref<1x1280xf32, #tpu.memory_space<vmem>>, vector<1x1280xf32>
    %42 = vector.broadcast %41 : vector<1x1280xf32> to vector<8x1280xf32>
    %43 = arith.addf %40, %42 : vector<8x1280xf32>
    %c0_24 = arith.constant 0 : index
    %c0_25 = arith.constant 0 : index
    %44 = vector.load %arg10[%c0_24, %c0_25] : memref<8x1280xf32, #tpu.memory_space<vmem>>, vector<8x1280xf32>
    tpu.vector_store %arg10[%c0_24, %c0_25], %43 {strides = array<i32>} : memref<8x1280xf32, #tpu.memory_space<vmem>>, vector<8x1280xf32>,
    return
  }
  func.func @transform_0(%arg0: i32) -> (i32, i32) {
    %c0_i32 = arith.constant 0 : i32
    %c0_i32_0 = arith.constant 0 : i32
    %c0_i32_1 = arith.constant 0 : i32
    return %c0_i32, %c0_i32_0 : i32, i32
  }
  func.func @transform_1(%arg0: i32) -> (i32, i32) {
    %c0_i32 = arith.constant 0 : i32
    %c0_i32_0 = arith.constant 0 : i32
    %c0_i32_1 = arith.constant 0 : i32
    return %c0_i32, %c0_i32_0 : i32, i32
  }
  func.func @transform_2(%arg0: i32) -> (i32, i32) {
    %c0_i32 = arith.constant 0 : i32
    %c0_i32_0 = arith.constant 0 : i32
    %c0_i32_1 = arith.constant 0 : i32
    return %c0_i32, %c0_i32_0 : i32, i32
  }
  func.func @transform_3(%arg0: i32) -> (i32, i32) {
    %c0_i32 = arith.constant 0 : i32
    %c0_i32_0 = arith.constant 0 : i32
    %c0_i32_1 = arith.constant 0 : i32
    return %c0_i32, %c0_i32_0 : i32, i32
  }
  func.func @transform_4(%arg0: i32) -> (i32, i32) {
    %c0_i32 = arith.constant 0 : i32
    %c0_i32_0 = arith.constant 0 : i32
    %c0_i32_1 = arith.constant 0 : i32
    return %c0_i32, %c0_i32_0 : i32, i32
  }
  func.func @transform_5(%arg0: i32) -> (i32, i32) {
    %c0_i32 = arith.constant 0 : i32
    %c0_i32_0 = arith.constant 0 : i32
    %c0_i32_1 = arith.constant 0 : i32
    return %c0_i32, %c0_i32_0 : i32, i32
  }
  func.func @transform_6(%arg0: i32) -> (i32, i32) {
    %c0_i32 = arith.constant 0 : i32
    %c0_i32_0 = arith.constant 0 : i32
    %c0_i32_1 = arith.constant 0 : i32
    return %c0_i32, %c0_i32_0 : i32, i32
  }
  func.func @transform_7(%arg0: i32) -> (i32, i32, i32) {
    %c0_i32 = arith.constant 0 : i32
    %c0_i32_0 = arith.constant 0 : i32
    %c0_i32_1 = arith.constant 0 : i32
    return %arg0, %c0_i32, %c0_i32_0 : i32, i32, i32
  }
  func.func @transform_8(%arg0: i32) -> (i32, i32) {
    %c0_i32 = arith.constant 0 : i32
    %c0_i32_0 = arith.constant 0 : i32
    return %c0_i32, %arg0 : i32, i32
  }
  func.func @transform_9(%arg0: i32) -> (i32, i32) {
    %c0_i32 = arith.constant 0 : i32
    %c0_i32_0 = arith.constant 0 : i32
    return %c0_i32, %arg0 : i32, i32
  }
}

</mosaic_0001>

<bundles_post_ra>
// kernel: decoder_forward.1
= control target key start
LH: loop header
LB: loop body
LE: loop exit
PB: predicated region body
PF: predicated region fallthrough
CT: control target
= control target key end

     0   :  { %s8091_s0 = inlined_call_operand.hbm [shape: f32[8,32], index: 0, kind: input, shape index: {}]   ;;  %s8092_s1 = inlined_call_operand.hbm [shape: bf16[32,512], index: 1, kind: input, shape index: {}]   ;;  %s8093_s2 = inlined_call_operand.hbm [shape: f32[1,512], index: 2, kind: input, shape index: {}]   ;;  %s8094_s3 = inlined_call_operand.hbm [shape: bf16[512,512], index: 3, kind: input, shape index: {}]   ;;  %s8095_s4 = inlined_call_operand.hbm [shape: f32[1,512], index: 4, kind: input, shape index: {}]   ;;  %s8096_s5 = inlined_call_operand.hbm [shape: bf16[512,512], index: 5, kind: input, shape index: {}]   ;;  %s8097_s6 = inlined_call_operand.hbm [shape: f32[1,512], index: 6, kind: input, shape index: {}]   ;;  %s8098_s7 = inlined_call_operand.hbm [shape: bf16[2,512,1280], index: 7, kind: input, shape index: {}]   ;;  %s8099_s8 = inlined_call_operand.hbm [shape: f32[1,2560], index: 8, kind: input, shape index: {}]   ;;  %s8100_s9 = inlined_call_operand.vmem [shape: f32[8,2560], index: 9, kind: output, shape index: {}]  }
   0x1   :  { %8110 = sst [smem:[#allocation21_spill]] %s8092_s1 }
   0x2   :  { %8111 = sst [smem:[#allocation22_spill]] %s8094_s3 }
   0x3   :  { %8112 = sst [smem:[#allocation23_spill]] %s8096_s5 }
   0x4   :  { %8113 = sst [smem:[#allocation24_spill]] %s8098_s7 }
   0x5   :  { %8114 = sst [smem:[#allocation25_spill]] %s8100_s9 }
   0x6   :  { %14 = vsyncpa [#allocation3], 0 }
   0x7   :  { %15 = vsyncpa [#allocation5], 0 }
   0x8   :  { %16 = vsyncpa [#allocation8], 0 }
   0x9   :  { %17 = vsyncpa [#allocation11], 0 }
   0xa   :  { %18 = vsyncpa [#allocation14], 0 }
   0xb   :  { %20 = vsyncpa [#allocation14 + $0x1], 0  ;;  %s7293_s30 = smov 0   ;;  %s7295_s10 = smov 0  }
   0xc   :  { %s7297_s11 = smov 0   ;;  %s7299_s12 = smov 0  }
   0xd LB: > { %s7229_s13 = smov [#allocation4]   ;;  %s7314_s15 = sadd.s32 4294967295, %s7227_s12   ;;  %s7227_s12 = sphi %s7299_s12, %s8143_s12   ;;  %s7223_s11 = sphi %s7297_s11, %s8142_s11   ;;  %s7219_s10 = sphi %s7295_s10, %s8141_s10   ;;  %s7215_s30 = sphi %s7293_s30, %s8140_s30  }
   0xe   : > { %s279_s14 = sshll.u32 %s7229_s13, 4  ;;  %p5199_p0 = scmp.ge.s32.totalorder %s7227_s12, 1  ;;  %s7319_s14 = int_to_ptr.vmem [resolvable:$true] %s279_s14 }
   0xf   : > { %p8102_p1 = scmp.eq.s32.totalorder %s7314_s15, 0  ;;  %p256_p2 = scmp.lt.s32.totalorder %s7227_s12, 3 }
  0x10   : > { %s7230_s17 = smov [#allocation7]   ;;  %s7231_s20 = smov [#allocation10]  }
  0x11   : > { %p7321_p3 = pnand %p5199_p0, %p256_p2  ;;  %s303_s18 = sshll.u32 %s7230_s17, 4  ;;  %s7333_s18 = int_to_ptr.vmem [resolvable:$true] %s303_s18 }
  0x12   : > { %s327_s21 = sshll.u32 %s7231_s20, 4  ;;  %s8117_s1 = sld [smem:[#allocation21_spill]]  ;;  %s7335_s21 = int_to_ptr.vmem [resolvable:$true] %s327_s21 }
  0x13   : > { %s8115_s16 = scalar_select %p7321_p3, 1, 0 }
  0x14   : > { %p5909_p4 = pneg %p7321_p3 }
  0x16   : > { %p7329_p5 = pnand %p5909_p4, %p8102_p1 }
  0x18   : > { %s8116_s19 = scalar_select %p7329_p5, 1, 0 }
  0x19   : > { %s6921_s24 = scalar_lea.hbm %s8117_s1, 1024  ;;  %p7345_p7 = pneg %p7329_p5 }
  0x1a   : > { %p6922_p6 = scmp.ne.s32.totalorder %s8117_s1, %s6921_s24  ;;  %p6928_p10 = scmp.lt.u32.totalorder %s6921_s24, %s8117_s1 }
  0x1c   : > { %p6924_p8 = pnand %p7345_p7, %p6922_p6 }
  0x1e   : > { %p6925_p9 = pneg %p6924_p8 }
  0x20   : > { %p6930_p11 = pnand %p6928_p10, %p6925_p9 }
  0x22   : > { %6933 = shalt.err (!%p6930_p11)
}
  0x23   : > { %s6934_s13 = scalar_lea.vmem %s7319_s14, 1024  ;;  %p6942_p2 = scmp.lt.s32.totalorder %s7319_s14, %s7319_s14 }
  0x24   : > { %p6935_p12 = scmp.ne.s32.totalorder %s7319_s14, %s6934_s13  ;;  %p6943_p4 = scmp.lt.s32.totalorder %s6934_s13, %s6934_s13 }
  0x26   : > { %p6937_p13 = pnand %p6935_p12, %p7345_p7  ;;  %p6944_p6 = por %p6943_p4, %p6942_p2 }
  0x28   : > { %p6938_p0 = pneg %p6937_p13 }
  0x2a   : > { %p6945_p8 = pnand %p6944_p6, %p6938_p0 }
  0x2c   : > { %6948 = shalt.err (!%p6945_p8)
}
  0x2d   : > { %s7232_s17 = smov 256   ;;  %s7233_s20 = smov 16  }
  0x2e   : > { %5915 = dma.hbm_to_vmem [thread:$0]  (!%p7329_p5), %s8117_s1, 1024, %s7319_s14, [#allocation5], %s7232_s17, %s7232_s17, %s7233_s20  }
  0x2f   : > { %s8119_s3 = sld [smem:[#allocation22_spill]] }
  0x35   : > { %s6949_s26 = scalar_lea.hbm %s8119_s3, 16384 }
  0x36   : > { %p6950_p9 = scmp.ne.s32.totalorder %s8119_s3, %s6949_s26  ;;  %p6956_p12 = scmp.lt.u32.totalorder %s6949_s26, %s8119_s3 }
  0x38   : > { %p6952_p10 = pnand %p6950_p9, %p7345_p7 }
  0x3a   : > { %p6953_p11 = pneg %p6952_p10 }
  0x3c   : > { %p6958_p13 = pnand %p6956_p12, %p6953_p11 }
  0x3e   : > { %6961 = shalt.err (!%p6958_p13)
}
  0x3f   : > { %s6962_s14 = scalar_lea.vmem %s7333_s18, 16384  ;;  %p6970_p6 = scmp.lt.s32.totalorder %s7333_s18, %s7333_s18 }
  0x40   : > { %p6963_p0 = scmp.ne.s32.totalorder %s7333_s18, %s6962_s14  ;;  %p6971_p8 = scmp.lt.s32.totalorder %s6962_s14, %s6962_s14 }
  0x42   : > { %p6965_p2 = pnand %p6963_p0, %p7345_p7  ;;  %p6972_p9 = por %p6971_p8, %p6970_p6 }
  0x44   : > { %p6966_p4 = pneg %p6965_p2 }
  0x46   : > { %p6973_p10 = pnand %p6972_p9, %p6966_p4 }
  0x48   : > { %6976 = shalt.err (!%p6973_p10)
}
  0x49   : > { %5921 = dma.hbm_to_vmem [thread:$0]  (!%p7329_p5), %s8119_s3, 16384, %s7333_s18, [#allocation8], %s7232_s17, %s7232_s17, %s7233_s20  }
  0x4a   : > { %s8120_s5 = sld [smem:[#allocation23_spill]] }
  0x50   : > { %s6977_s25 = scalar_lea.hbm %s8120_s5, 16384 }
  0x51   : > { %p6978_p11 = scmp.ne.s32.totalorder %s8120_s5, %s6977_s25  ;;  %p6984_p0 = scmp.lt.u32.totalorder %s6977_s25, %s8120_s5 }
  0x53   : > { %p6980_p12 = pnand %p6978_p11, %p7345_p7 }
  0x55   : > { %p6981_p13 = pneg %p6980_p12 }
  0x57   : > { %p6986_p2 = pnand %p6984_p0, %p6981_p13 }
  0x59   : > { %6989 = shalt.err (!%p6986_p2)
}
  0x5a   : > { %s6990_s18 = scalar_lea.vmem %s7335_s21, 16384  ;;  %p6998_p9 = scmp.lt.s32.totalorder %s7335_s21, %s7335_s21 }
  0x5b   : > { %p6991_p4 = scmp.ne.s32.totalorder %s7335_s21, %s6990_s18  ;;  %p6999_p10 = scmp.lt.s32.totalorder %s6990_s18, %s6990_s18 }
  0x5d   : > { %p6993_p6 = pnand %p6991_p4, %p7345_p7  ;;  %p7000_p11 = por %p6999_p10, %p6998_p9 }
  0x5f   : > { %p6994_p8 = pneg %p6993_p6 }
  0x61   : > { %p7001_p12 = pnand %p7000_p11, %p6994_p8 }
  0x63   : > { %7004 = shalt.err (!%p7001_p12)
}
  0x64   : > { %5927 = dma.hbm_to_vmem [thread:$0]  (!%p7329_p5), %s8120_s5, 16384, %s7335_s21, [#allocation11], %s7232_s17, %s7232_s17, %s7233_s20  }
  0x65   : > { %s7422_s22 = sadd.s32 1, %s7227_s12   ;;  %s180_s24 = sadd.s32 1, %s7223_s11 }
  0x66   : > { %s177_s23 = ssub.s32 %s7227_s12, %s7422_s22  ;;  %p187_p0 = scmp.ne.s32.totalorder %s7223_s11, %s7219_s10 }
  0x67   : > { %p178_p13 = scmp.eq.s32.totalorder %s177_s23, 0  ;;  %p188_p2 = scmp.eq.s32.totalorder %s7227_s12, 0 }
  0x68   : > { %p193_p4 = scmp.ne.s32.totalorder %s7219_s10, %s7215_s30  ;;  %p5945_p9 = scmp.lt.s32.totalorder %s7227_s12, 2 }
  0x69   : > { %s7433_s25 = scalar_select %p178_p13, %s7223_s11, %s180_s24  }
  0x6a   : > { %p189_p6 = por %p188_p2, %p187_p0  ;;  %p7437_p8 = por %p8102_p1, %p193_p4 }
  0x6b   : > { %s352_s21 = sand.u32 1, %s7227_s12   ;;  %s8101_s17 = sand.u32 1, %s7223_s11  }
  0x6c   : > { %s8121_s26 = scalar_select %p7437_p8, 1, 0 }
  0x6d   : > { %s5872_s20 = smul.u32 2560, %s8101_s17  ;;  %p7446_p10 = pnand %p5945_p9, %p189_p6 }
  0x6e   : > { %s5873_s30 = smul.u32 40960, %s7227_s12  ;;  %s8123_s7 = sld [smem:[#allocation24_spill]] }
  0x6f   : > { %s8122_s28 = scalar_select %p7446_p10, 1, 0 }
  0x70   : > { %s356_s14 = scalar_lea.vmem [#allocation13], %s5872_s20  ;;  %s7458_s23 = scalar_lea.sflag [#allocation14], %s352_s21 }
  0x71   : > { %s363_s9 = sshll.u32 %s356_s14, 4  ;;  %p8107_p12 = pneg %p7446_p10  ;;  %s7456_s9 = int_to_ptr.vmem [resolvable:$true] %s363_s9 }
  0x74   : > { %s7454_s18 = scalar_lea.hbm %s8123_s7, %s5873_s30  ;;  %s7010_s13 = scalar_lea.hbm %s8123_s7, 81920 }
  0x75   : > { %s7005_s24 = scalar_lea.hbm %s7454_s18, 40960  ;;  %p7011_p2 = scmp.lt.u32.totalorder %s7454_s18, %s8123_s7 }
  0x76   : > { %p7006_p11 = scmp.ne.s32.totalorder %s7454_s18, %s7005_s24  ;;  %p7012_p4 = scmp.lt.u32.totalorder %s7010_s13, %s7005_s24 }
  0x77   : > { %p7014_p9 = scmp.lt.u32.totalorder %s7005_s24, %s7454_s18 }
  0x78   : > { %p7008_p13 = pnand %p8107_p12, %p7006_p11  ;;  %p7013_p6 = por %p7012_p4, %p7011_p2 }
  0x7a   : > { %p7009_p0 = pneg %p7008_p13  ;;  %p7015_p1 = por %p7014_p9, %p7013_p6 }
  0x7c   : > { %p7016_p8 = pnand %p7015_p1, %p7009_p0 }
  0x7e   : > { %7019 = shalt.err (!%p7016_p8)
}
  0x7f   : > { %s7020_s21 = scalar_lea.vmem %s7456_s9, 40960  ;;  %s7234_s20 = smov [#allocation13]  }
  0x80   : > { %p7021_p11 = scmp.ne.s32.totalorder %s7456_s9, %s7020_s21  ;;  %s7025_s14 = sshll.u32 %s7234_s20, 4  ;;  %s7026_s14 = int_to_ptr.vmem [resolvable:$false] %s7025_s14 }
  0x81   : > { %s7027_s1 = scalar_lea.vmem %s7026_s14, 81920  ;;  %p7028_p5 = scmp.lt.s32.totalorder %s7456_s9, %s7026_s14 }
  0x82   : > { %p7023_p13 = pnand %p7021_p11, %p8107_p12  ;;  %p7029_p2 = scmp.lt.s32.totalorder %s7027_s1, %s7020_s21 }
  0x84   : > { %p7024_p3 = pneg %p7023_p13  ;;  %p7030_p4 = por %p7029_p2, %p7028_p5 }
  0x86   : > { %p7031_p6 = pnand %p7030_p4, %p7024_p3 }
  0x88   : > { %7034 = shalt.err (!%p7031_p6)
}
  0x89   : > { %s7235_s17 = smov 640   ;;  %s7236_s24 = smov 40  }
  0x8a   : > { %5934 = dma.hbm_to_vmem [thread:$0]  (!%p7446_p10), %s7454_s18, 40960, %s7456_s9, %s7458_s23, %s7235_s17, %s7235_s17, %s7236_s24  }
  0x8b   : > { %s7237_s30 = smov [#allocation2]   ;;  %s7238_s13 = smov [#allocation6]  }
  0x8c   : > { %s269_s29 = sshll.u32 %s7237_s30, 4  ;;  %s293_s20 = sshll.u32 %s7238_s13, 4  ;;  %s270_s29 = int_to_ptr.vmem [resolvable:$true] %s269_s29  ;;  %s7486_s20 = int_to_ptr.vmem [resolvable:$true] %s293_s20 }
  0x8d   : > { %s7035_s1 = scalar_lea.hbm %s8091_s0, 128 }
  0x8e   : > { %p7036_p1 = scmp.ne.s32.totalorder %s8091_s0, %s7035_s1  ;;  %p7042_p8 = scmp.lt.u32.totalorder %s7035_s1, %s8091_s0 }
  0x90   : > { %p7038_p3 = pnand %p7036_p1, %p7345_p7 }
  0x92   : > { %p7039_p5 = pneg %p7038_p3 }
  0x94   : > { %p7044_p0 = pnand %p7042_p8, %p7039_p5 }
  0x96   : > { %7047 = shalt.err (!%p7044_p0)
}
  0x97   : > { %s7048_s9 = scalar_lea.vmem %s270_s29, 128  ;;  %p7056_p2 = scmp.lt.s32.totalorder %s270_s29, %s270_s29 }
  0x98   : > { %p7049_p9 = scmp.ne.s32.totalorder %s270_s29, %s7048_s9  ;;  %p7057_p4 = scmp.lt.s32.totalorder %s7048_s9, %s7048_s9 }
  0x9a   : > { %p7051_p11 = pnand %p7049_p9, %p7345_p7  ;;  %p7058_p6 = por %p7057_p4, %p7056_p2 }
  0x9c   : > { %p7052_p13 = pneg %p7051_p11 }
  0x9e   : > { %p7059_p12 = pnand %p7058_p6, %p7052_p13 }
  0xa0   : > { %7062 = shalt.err (!%p7059_p12)
}
  0xa1   : > { %p8124_p1 = scmp.ne.s32.totalorder %s8116_s19, 0  ;;  %s7063_s24 = scalar_lea.hbm %s8093_s2, 64 }
  0xa2   : > { %p7064_p3 = scmp.ne.s32.totalorder %s8093_s2, %s7063_s24  ;;  %p7070_p12 = scmp.lt.u32.totalorder %s7063_s24, %s8093_s2 }
  0xa3   : > { %5912 = dma.hbm_to_vmem [thread:$0]  (!%p8124_p1), %s8091_s0, 128, %s270_s29, [#allocation3]  }
  0xa4   : > { %p7066_p5 = pnand %p7064_p3, %p7345_p7 }
  0xa6   : > { %p7067_p8 = pneg %p7066_p5 }
  0xa8   : > { %p7072_p0 = pnand %p7070_p12, %p7067_p8 }
  0xaa   : > { %7075 = shalt.err (!%p7072_p0)
}
  0xab   : > { %s7076_s29 = scalar_lea.vmem %s7486_s20, 64  ;;  %p7084_p2 = scmp.lt.s32.totalorder %s7486_s20, %s7486_s20 }
  0xac   : > { %p7077_p9 = scmp.ne.s32.totalorder %s7486_s20, %s7076_s29  ;;  %p7085_p4 = scmp.lt.s32.totalorder %s7076_s29, %s7076_s29 }
  0xae   : > { %p7079_p11 = pnand %p7077_p9, %p7345_p7  ;;  %p7086_p6 = por %p7085_p4, %p7084_p2 }
  0xb0   : > { %p7080_p13 = pneg %p7079_p11 }
  0xb2   : > { %p7087_p3 = pnand %p7086_p6, %p7080_p13 }
  0xb4   : > { %7090 = shalt.err (!%p7087_p3)
}
  0xb5   : > { %5918 = dma.hbm_to_vmem [thread:$0]  (!%p8124_p1), %s8093_s2, 64, %s7486_s20, [#allocation5]  }
  0xb6   : > { %s7239_s9 = smov [#allocation9]   ;;  %s7240_s5 = smov [#allocation12]  }
  0xb7   : > { %s317_s3 = sshll.u32 %s7239_s9, 4  ;;  %s341_s7 = sshll.u32 %s7240_s5, 4  ;;  %s318_s3 = int_to_ptr.vmem [resolvable:$true] %s317_s3  ;;  %s7529_s7 = int_to_ptr.vmem [resolvable:$true] %s341_s7 }
  0xb8   : > { %s7091_s30 = scalar_lea.hbm %s8095_s4, 64 }
  0xb9   : > { %p7092_p5 = scmp.ne.s32.totalorder %s8095_s4, %s7091_s30  ;;  %p7098_p0 = scmp.lt.u32.totalorder %s7091_s30, %s8095_s4 }
  0xbb   : > { %p7094_p8 = pnand %p7092_p5, %p7345_p7 }
  0xbd   : > { %p7095_p12 = pneg %p7094_p8 }
  0xbf   : > { %p7100_p9 = pnand %p7098_p0, %p7095_p12 }
  0xc1   : > { %7103 = shalt.err (!%p7100_p9)
}
  0xc2   : > { %s7104_s29 = scalar_lea.vmem %s318_s3, 64  ;;  %p7112_p4 = scmp.lt.s32.totalorder %s318_s3, %s318_s3 }
  0xc3   : > { %p7105_p11 = scmp.ne.s32.totalorder %s318_s3, %s7104_s29  ;;  %p7113_p6 = scmp.lt.s32.totalorder %s7104_s29, %s7104_s29 }
  0xc5   : > { %p7107_p13 = pnand %p7105_p11, %p7345_p7  ;;  %p7114_p3 = por %p7113_p6, %p7112_p4 }
  0xc7   : > { %p7108_p2 = pneg %p7107_p13 }
  0xc9   : > { %p7115_p10 = pnand %p7114_p3, %p7108_p2 }
  0xcb   : > { %7118 = shalt.err (!%p7115_p10)
}
  0xcc   : > { %5924 = dma.hbm_to_vmem [thread:$0]  (!%p8124_p1), %s8095_s4, 64, %s318_s3, [#allocation8]  }
  0xcd   : > { %s7119_s17 = scalar_lea.hbm %s8097_s6, 64 }
  0xce   : > { %p7120_p5 = scmp.ne.s32.totalorder %s8097_s6, %s7119_s17  ;;  %p7126_p10 = scmp.lt.u32.totalorder %s7119_s17, %s8097_s6 }
  0xd0   : > { %p7122_p8 = pnand %p7120_p5, %p7345_p7 }
  0xd2   : > { %p7123_p12 = pneg %p7122_p8 }
  0xd4   : > { %p7128_p0 = pnand %p7126_p10, %p7123_p12 }
  0xd6   : > { %7131 = shalt.err (!%p7128_p0)
}
  0xd7   : > { %s7132_s3 = scalar_lea.vmem %s7529_s7, 64  ;;  %p7140_p2 = scmp.lt.s32.totalorder %s7529_s7, %s7529_s7 }
  0xd8   : > { %p7133_p9 = scmp.ne.s32.totalorder %s7529_s7, %s7132_s3  ;;  %p7141_p4 = scmp.lt.s32.totalorder %s7132_s3, %s7132_s3 }
  0xda   : > { %p7135_p11 = pnand %p7133_p9, %p7345_p7  ;;  %p7142_p6 = por %p7141_p4, %p7140_p2 }
  0xdc   : > { %p7136_p13 = pneg %p7135_p11 }
  0xde   : > { %p7143_p3 = pnand %p7142_p6, %p7136_p13 }
  0xe0   : > { %7146 = shalt.err (!%p7143_p3)
}
  0xe1   : > { %5930 = dma.hbm_to_vmem [thread:$0]  (!%p8124_p1), %s8097_s6, 64, %s7529_s7, [#allocation11]  }
  0xe2   : > { %s8125_s29 = sand.u32 1, %s7223_s11   ;;  %s5819_s1 = smul.u32 160, %s7227_s12 }
  0xe3   : > { %s5874_s27 = smul.u32 10, %s8125_s29  ;;  %p8126_p5 = scmp.ne.s32.totalorder %s8122_s28, 0 }
  0xe4   : > { %s7578_s5 = scalar_lea.hbm %s8099_s8, %s5819_s1  ;;  %s7152_s30 = scalar_lea.hbm %s8099_s8, 320 }
  0xe5   : > { %s377_s19 = scalar_lea.vmem [#allocation15], %s5874_s27  ;;  %s7147_s24 = scalar_lea.hbm %s7578_s5, 160 }
  0xe6   : > { %s385_s17 = sshll.u32 %s377_s19, 4  ;;  %p7148_p7 = scmp.ne.s32.totalorder %s7578_s5, %s7147_s24  ;;  %s386_s17 = int_to_ptr.vmem [resolvable:$true] %s385_s17 }
  0xe7   : > { %p8127_p8 = pneg %p8126_p5  ;;  %p7153_p10 = scmp.lt.u32.totalorder %s7578_s5, %s8099_s8 }
  0xe8   : > { %p7154_p0 = scmp.lt.u32.totalorder %s7152_s30, %s7147_s24  ;;  %p7156_p11 = scmp.lt.u32.totalorder %s7147_s24, %s7578_s5 }
  0xe9   : > { %p7150_p1 = pnand %p7148_p7, %p8127_p8 }
  0xea   : > { %p7155_p9 = por %p7154_p0, %p7153_p10 }
  0xeb   : > { %p7151_p12 = pneg %p7150_p1 }
  0xec   : > { %p7157_p13 = por %p7156_p11, %p7155_p9 }
  0xee   : > { %p7158_p2 = pnand %p7157_p13, %p7151_p12 }
  0xf0   : > { %7161 = shalt.err (!%p7158_p2)
}
  0xf1   : > { %s7162_s3 = scalar_lea.vmem %s386_s17, 160  ;;  %p8128_p6 = pmov %p8127_p8 }
  0xf2   : > { %p7163_p4 = scmp.ne.s32.totalorder %s386_s17, %s7162_s3  ;;  %s7241_s14 = smov [#allocation15]  }
  0xf3   : > { %s7167_s20 = sshll.u32 %s7241_s14, 4  ;;  %s7168_s20 = int_to_ptr.vmem [resolvable:$false] %s7167_s20 }
  0xf4   : > { %p7165_p3 = pnand %p7163_p4, %p8128_p6  ;;  %s7169_s29 = scalar_lea.vmem %s7168_s20, 320 }
  0xf5   : > { %p7170_p8 = scmp.lt.s32.totalorder %s386_s17, %s7168_s20  ;;  %p7171_p1 = scmp.lt.s32.totalorder %s7169_s29, %s7162_s3 }
  0xf6   : > { %p7166_p7 = pneg %p7165_p3 }
  0xf7   : > { %p7172_p0 = por %p7171_p1, %p7170_p8 }
  0xf9   : > { %p7173_p10 = pnand %p7172_p0, %p7166_p7 }
  0xfb   : > { %7176 = shalt.err (!%p7173_p10)
}
  0xfc   : > { %5937 = dma.hbm_to_vmem [thread:$0]  (!%p8126_p5), %s7578_s5, 160, %s386_s17, %s7458_s23  }
  0xfd   : > { %p8129_p12 = scmp.ne.s32.totalorder %s8115_s16, 0 }
  0xfe   : > { %p8130_p9 = scmp.eq.s32.totalorder (!%p8129_p12), %s7314_s15, 0 }
  0xff   : > { %394 = sbr.rel (%p8129_p12) target bundleno = 1690 (0x69a), region = 56 }
 0x106   : > { %7194 = dma.done.wait (%p8130_p9), [#allocation3], 128   ;;  %p8131_p11 = pmov %p8130_p9 }
 0x107   : > { %p8132_p13 = pmov %p8130_p9 }
 0x108   : > { %7196 = vsyncadd (%p8131_p11), [#allocation3], 4294967168 }
 0x109   : > { %7198 = dma.done.wait (%p8132_p13), [#allocation5], 1088   ;;  %p8133_p2 = pmov %p8130_p9 }
 0x10b   : > { %7200 = vsyncadd (%p8133_p2), [#allocation5], 4294966208  ;;  %p8134_p4 = pmov %p8133_p2 }
 0x10c   : > { %p8135_p5 = pmov %p8133_p2 }
 0x10d   : > { %7202 = dma.done.wait (%p8134_p4), [#allocation8], 16448  }
 0x10e   : > { %7204 = vsyncadd (%p8135_p5), [#allocation8], 4294950848  ;;  %p8136_p6 = pmov %p8133_p2 }
 0x10f   : > { %p8137_p3 = pmov %p8133_p2 }
 0x110   : > { %7206 = dma.done.wait (%p8136_p6), [#allocation11], 16448  }
 0x111   : > { %7208 = vsyncadd (%p8137_p3), [#allocation11], 4294950848  ;;  %s424_s16 = sand.u32 1, %s7314_s15   ;;  %s426_s28 = sand.u32 1, %s7219_s10  }
 0x112   : > { %s5875_s23 = smul.u32 2560, %s426_s28  ;;  %s425_s27 = scalar_lea.sflag [#allocation14], %s424_s16 }
 0x113   : > { %p8138_p7 = scmp.ne.s32.totalorder %s8121_s26, 0 }
 0x114   : > { %s7622_s1 = scalar_lea.vmem [#allocation13], %s5875_s23 }
 0x115   : > { %7210 = dma.done.wait (%p8138_p7), %s425_s27, 41120  }
 0x116   : > { %7212 = vsyncadd (%p8138_p7), %s425_s27, 4294926176  ;;  %v7242_v0 = vmov 0   ;;  %v5997_v1 = vld [vmem:[#allocation4 + $0x4] ss:$16 sps:$4 sm:$0xff]   ;;  %v5999_v2 = vld [vmem:[#allocation4] ss:$16 sps:$4 sm:$0xff]  }
 0x117   : > { %593 = vmatprep.mubr.bf16.mxu0 %v7242_v0  ;;  %634 = vmatprep.mubr.bf16.mxu1 %v7242_v0  ;;  %v6000_v3 = vld [vmem:[#allocation4 + $0xc] ss:$16 sps:$4 sm:$0xff]   ;;  %v6002_v4 = vld [vmem:[#allocation4 + $0x8] ss:$16 sps:$4 sm:$0xff]   ;;  %v6003_v5 = vld [vmem:[#allocation4 + $0x24] ss:$16 sps:$4 sm:$0xff]  }
 0x118   : > { %561 = vmatprep.subr.bf16.mxu0 %v5997_v1  ;;  %v6005_v6 = vld [vmem:[#allocation4 + $0x20] ss:$16 sps:$4 sm:$0xff]   ;;  %602 = vmatprep.subr.bf16.mxu1 %v6000_v3  ;;  %v6006_v7 = vld [vmem:[#allocation4 + $0x2c] ss:$16 sps:$4 sm:$0xff]   ;;  %v6008_v8 = vld [vmem:[#allocation4 + $0x28] ss:$16 sps:$4 sm:$0xff]  }
 0x119   : > { %562 = vmatpush1.bf16.msra.mxu0 %v5999_v2  ;;  %603 = vmatpush1.bf16.msra.mxu1 %v6002_v4  ;;  %v485_v9 = vld [vmem:[#allocation2] sm:$0xff]  ;;  %vm557_vm0 = vcmask 261120   ;;  %v6012_v12 = vld [vmem:[#allocation7 + $0x200] ss:$16 sps:$4 sm:$0xff]   ;;  %s478_s26 = smul.u32 10, %s7314_s15  ;;  %s8139_s17 = sld [smem:[#allocation25_spill]] }
 0x11a   : > { %563 = vmatprep.subr.bf16.mxu0 %v6003_v5  ;;  %604 = vmatprep.subr.bf16.mxu1 %v6006_v7  ;;  %v486_v10 = vpack.c.bf16 %v485_v9, %v485_v9  ;;  %v6011_v11 = vld [vmem:[#allocation7 + $0x4] ss:$16 sps:$4 sm:$0xff]   ;;  %v6009_v14 = vld [vmem:[#allocation7] ss:$16 sps:$4 sm:$0xff]   ;;  %s8010_s18 = smul.u32 10, %s426_s28 }
 0x11b   : > { %v6014_v13 = vld [vmem:[#allocation7 + $0x204] ss:$16 sps:$4 sm:$0xff]   ;;  %v6018_v17 = vld [vmem:[#allocation7 + $0x220] ss:$16 sps:$4 sm:$0xff]   ;;  %p479_p8 = scmp.lt.s32.totalorder %s478_s26, 19 }
 0x11c   : > { %v6017_v15 = vld [vmem:[#allocation7 + $0x24] ss:$16 sps:$4 sm:$0xff]   ;;  %v6015_v18 = vld [vmem:[#allocation7 + $0x20] ss:$16 sps:$4 sm:$0xff]   ;;  %s437_s15 = scalar_lea.vmem [#allocation15], %s8010_s18 }
 0x11d   : > { %564 = vmatpush1.bf16.msra.mxu0 %v6005_v6  ;;  %605 = vmatpush1.bf16.msra.mxu1 %v6008_v8  ;;  %v6020_v16 = vld [vmem:[#allocation7 + $0x224] ss:$16 sps:$4 sm:$0xff]   ;;  %v6024_v21 = vld [vmem:[#allocation7 + $0x240] ss:$16 sps:$4 sm:$0xff]   ;;  %s8145_s26 = smov (!%p479_p8, %s478_s26), 19 }
 0x11e   : > { %1465 = vmatprep.subr.bf16.mxu1 %v6011_v11  ;;  %1506 = vmatprep.subr.bf16.mxu0 %v6014_v13  ;;  %v6026_v19 = vld [vmem:[#allocation7 + $0x244] ss:$16 sps:$4 sm:$0xff]   ;;  %v6021_v22 = vld [vmem:[#allocation7 + $0x40] ss:$16 sps:$4 sm:$0xff]   ;;  %v6107_v11 = vld [vmem:[#allocation7 + $0xc] ss:$16 sps:$4 sm:$0xff]  }
 0x11f   : > { %v6023_v20 = vld [vmem:[#allocation7 + $0x44] ss:$16 sps:$4 sm:$0xff]   ;;  %v6030_v25 = vld [vmem:[#allocation7 + $0x260] ss:$16 sps:$4 sm:$0xff]   ;;  %s5218_s9 = sshll.u32 %s8145_s26, 3 }
 0x120   : > { %5227 = vmatmul.mubr.msk.bf16.vlgmr.msra.gmra.mrb[0].mxu0 %vm557_vm0, %v486_v10  ;;  %5228 = vmatmul.mubr.msk.bf16.vlgmr.msra.gmra.mrb[0].mxu1 %vm557_vm0, %v486_v10  ;;  %v6032_v23 = vld [vmem:[#allocation7 + $0x264] ss:$16 sps:$4 sm:$0xff]   ;;  %v6027_v26 = vld [vmem:[#allocation7 + $0x60] ss:$16 sps:$4 sm:$0xff]   ;;  %s8034_s24 = scalar_lea.vmem %s8139_s17, %s5218_s9 }
 0x121   : > { %1507 = vmatpush1.bf16.msra.mxu0 %v6012_v12  ;;  %1466 = vmatpush1.bf16.msra.mxu1 %v6009_v14  ;;  %v6029_v24 = vld [vmem:[#allocation7 + $0x64] ss:$16 sps:$4 sm:$0xff]   ;;  %v6036_v29 = vld [vmem:[#allocation7 + $0x280] ss:$16 sps:$4 sm:$0xff]   ;;  %v497_v12 = vlaneseq  ;;  %v495_v14 = vld [vmem:[#allocation6] sm:$0xf] }
 0x122   : > { %1508 = vmatprep.subr.bf16.mxu0 %v6020_v16  ;;  %1467 = vmatprep.subr.bf16.mxu1 %v6017_v15  ;;  %v6038_v27 = vld [vmem:[#allocation7 + $0x284] ss:$16 sps:$4 sm:$0xff]   ;;  %v6033_v30 = vld [vmem:[#allocation7 + $0x80] ss:$16 sps:$4 sm:$0xff]  }
 0x123   : > { %v6035_v28 = vld [vmem:[#allocation7 + $0x84] ss:$16 sps:$4 sm:$0xff]   ;;  %v6042_v33 = vld [vmem:[#allocation7 + $0x2a0] ss:$16 sps:$4 sm:$0xff]   ;;  %v7628_v13 = vshrl.u32 %v497_v12, 7 }
 0x124   : > { %v6041_v31 = vld [vmem:[#allocation7 + $0xa4] ss:$16 sps:$4 sm:$0xff]   ;;  %v6039_v34 = vld [vmem:[#allocation7 + $0xa0] ss:$16 sps:$4 sm:$0xff]   ;;  %v6227_v12 = vld [vmem:[#allocation10 + $0x84] ss:$16 sps:$4 sm:$0xff]  }
 0x125   : > { %1509 = vmatpush1.bf16.msra.mxu0 %v6018_v17  ;;  %1468 = vmatpush1.bf16.msra.mxu1 %v6015_v18  ;;  %v6044_v32 = vld [vmem:[#allocation7 + $0x2a4] ss:$16 sps:$4 sm:$0xff]   ;;  %v6048_v37 = vld [vmem:[#allocation7 + $0x2c0] ss:$16 sps:$4 sm:$0xff]   ;;  %v7631_v15 = vsub.s32 0, %v7628_v13  ;;  %v7634_v16 = vsub.s32 1, %v7628_v13 }
 0x126   : > { %1510 = vmatprep.subr.bf16.mxu0 %v6026_v19  ;;  %1469 = vmatprep.subr.bf16.mxu1 %v6023_v20  ;;  %v6050_v35 = vld [vmem:[#allocation7 + $0x2c4] ss:$16 sps:$4 sm:$0xff]   ;;  %v6045_v38 = vld [vmem:[#allocation7 + $0xc0] ss:$16 sps:$4 sm:$0xff]   ;;  %v7637_v17 = vsub.s32 2, %v7628_v13  ;;  %v7640_v18 = vsub.s32 3, %v7628_v13 }
 0x127   : > { %v6047_v36 = vld [vmem:[#allocation7 + $0xc4] ss:$16 sps:$4 sm:$0xff]   ;;  %v6051_v40 = vld [vmem:[#allocation7 + $0xe0] ss:$16 sps:$4 sm:$0xff]   ;;  %v500_v19 = vrot.slane %v495_v14, %v7631_v15  ;;  %v504_v20 = vrot.slane %v495_v14, %v7634_v16 }
 0x128   : > { %v6053_v39 = vld [vmem:[#allocation7 + $0xe4] ss:$16 sps:$4 sm:$0xff]   ;;  %v6054_v42 = vld [vmem:[#allocation7 + $0x2e0] ss:$16 sps:$4 sm:$0xff]  }
 0x129   : > { %1511 = vmatpush1.bf16.msra.mxu0 %v6024_v21  ;;  %1470 = vmatpush1.bf16.msra.mxu1 %v6021_v22  ;;  %v6056_v41 = vld [vmem:[#allocation7 + $0x2e4] ss:$16 sps:$4 sm:$0xff]   ;;  %v6057_v44 = vld [vmem:[#allocation7 + $0x100] ss:$16 sps:$4 sm:$0xff]   ;;  %v508_v21 = vrot.slane %v495_v14, %v7637_v17 }
 0x12a   : > { %1512 = vmatprep.subr.bf16.mxu0 %v6032_v23  ;;  %1471 = vmatprep.subr.bf16.mxu1 %v6029_v24  ;;  %v6059_v43 = vld [vmem:[#allocation7 + $0x104] ss:$16 sps:$4 sm:$0xff]   ;;  %v6060_v46 = vld [vmem:[#allocation7 + $0x300] ss:$16 sps:$4 sm:$0xff]   ;;  %v512_v23 = vrot.slane %v495_v14, %v7640_v18  ;;  %v6122_v14 = vld [vmem:[#allocation7 + $0xac] ss:$16 sps:$4 sm:$0xff]  }
 0x12b   : > { %v6062_v45 = vld [vmem:[#allocation7 + $0x304] ss:$16 sps:$4 sm:$0xff]   ;;  %v6063_v48 = vld [vmem:[#allocation7 + $0x120] ss:$16 sps:$4 sm:$0xff]  }
 0x12c   : > { %v6065_v47 = vld [vmem:[#allocation7 + $0x124] ss:$16 sps:$4 sm:$0xff]   ;;  %v6066_v50 = vld [vmem:[#allocation7 + $0x320] ss:$16 sps:$4 sm:$0xff]  }
 0x12d   : > { %1513 = vmatpush1.bf16.msra.mxu0 %v6030_v25  ;;  %1472 = vmatpush1.bf16.msra.mxu1 %v6027_v26  ;;  %v6068_v49 = vld [vmem:[#allocation7 + $0x324] ss:$16 sps:$4 sm:$0xff]   ;;  %v6069_v52 = vld [vmem:[#allocation7 + $0x140] ss:$16 sps:$4 sm:$0xff]  }
 0x12e   : > { %1514 = vmatprep.subr.bf16.mxu0 %v6038_v27  ;;  %1473 = vmatprep.subr.bf16.mxu1 %v6035_v28  ;;  %v6071_v51 = vld [vmem:[#allocation7 + $0x144] ss:$16 sps:$4 sm:$0xff]   ;;  %v6072_v54 = vld [vmem:[#allocation7 + $0x340] ss:$16 sps:$4 sm:$0xff]  }
 0x12f   : > { %v6074_v53 = vld [vmem:[#allocation7 + $0x344] ss:$16 sps:$4 sm:$0xff]   ;;  %v6075_v56 = vld [vmem:[#allocation7 + $0x160] ss:$16 sps:$4 sm:$0xff]  }
 0x130   : > { %v6077_v55 = vld [vmem:[#allocation7 + $0x164] ss:$16 sps:$4 sm:$0xff]   ;;  %v6078_v58 = vld [vmem:[#allocation7 + $0x360] ss:$16 sps:$4 sm:$0xff]  }
 0x131   : > { %1515 = vmatpush1.bf16.msra.mxu0 %v6036_v29  ;;  %1474 = vmatpush1.bf16.msra.mxu1 %v6033_v30  ;;  %v6080_v57 = vld [vmem:[#allocation7 + $0x364] ss:$16 sps:$4 sm:$0xff]   ;;  %v6081_v60 = vld [vmem:[#allocation7 + $0x180] ss:$16 sps:$4 sm:$0xff]  }
 0x132   : > { %1516 = vmatprep.subr.bf16.mxu0 %v6044_v32  ;;  %1475 = vmatprep.subr.bf16.mxu1 %v6041_v31  ;;  %v6083_v59 = vld [vmem:[#allocation7 + $0x184] ss:$16 sps:$4 sm:$0xff]   ;;  %v6084_v62 = vld [vmem:[#allocation7 + $0x380] ss:$16 sps:$4 sm:$0xff]  }
 0x133   : > { %v6086_v61 = vld [vmem:[#allocation7 + $0x384] ss:$16 sps:$4 sm:$0xff]   ;;  %v6087_v0 = vld [vmem:[#allocation7 + $0x1a0] ss:$16 sps:$4 sm:$0xff]  }
 0x134   : > { %v6089_v63 = vld [vmem:[#allocation7 + $0x1a4] ss:$16 sps:$4 sm:$0xff]   ;;  %v6090_v2 = vld [vmem:[#allocation7 + $0x3a0] ss:$16 sps:$4 sm:$0xff]  }
 0x135   : > { %1517 = vmatpush1.bf16.msra.mxu0 %v6042_v33  ;;  %1476 = vmatpush1.bf16.msra.mxu1 %v6039_v34  ;;  %v6092_v1 = vld [vmem:[#allocation7 + $0x3a4] ss:$16 sps:$4 sm:$0xff]   ;;  %v6093_v4 = vld [vmem:[#allocation7 + $0x1c0] ss:$16 sps:$4 sm:$0xff]  }
 0x136   : > { %1518 = vmatprep.subr.bf16.mxu0 %v6050_v35  ;;  %1477 = vmatprep.subr.bf16.mxu1 %v6047_v36  ;;  %v6095_v3 = vld [vmem:[#allocation7 + $0x1c4] ss:$16 sps:$4 sm:$0xff]   ;;  %v6096_v6 = vld [vmem:[#allocation7 + $0x3c0] ss:$16 sps:$4 sm:$0xff]  }
 0x137   : > { %v6098_v5 = vld [vmem:[#allocation7 + $0x3c4] ss:$16 sps:$4 sm:$0xff]   ;;  %v6099_v8 = vld [vmem:[#allocation7 + $0x1e0] ss:$16 sps:$4 sm:$0xff]  }
 0x138   : > { %v6101_v7 = vld [vmem:[#allocation7 + $0x1e4] ss:$16 sps:$4 sm:$0xff]   ;;  %v6102_v10 = vld [vmem:[#allocation7 + $0x3e0] ss:$16 sps:$4 sm:$0xff]  }
 0x139   : > { %1519 = vmatpush1.bf16.msra.mxu0 %v6048_v37  ;;  %1478 = vmatpush1.bf16.msra.mxu1 %v6045_v38  ;;  %v6104_v9 = vld [vmem:[#allocation7 + $0x3e4] ss:$16 sps:$4 sm:$0xff]  }
 0x13a   : > { %1479 = vmatprep.subr.bf16.mxu1 %v6053_v39  ;;  %1520 = vmatprep.subr.bf16.mxu0 %v6056_v41 }
 0x13d   : > { %1480 = vmatpush1.bf16.msra.mxu1 %v6051_v40  ;;  %1521 = vmatpush1.bf16.msra.mxu0 %v6054_v42 }
 0x13e   : > { %1481 = vmatprep.subr.bf16.mxu1 %v6059_v43  ;;  %1522 = vmatprep.subr.bf16.mxu0 %v6062_v45 }
 0x141   : > { %1482 = vmatpush1.bf16.msra.mxu1 %v6057_v44  ;;  %1523 = vmatpush1.bf16.msra.mxu0 %v6060_v46 }
 0x142   : > { %1483 = vmatprep.subr.bf16.mxu1 %v6065_v47  ;;  %1524 = vmatprep.subr.bf16.mxu0 %v6068_v49 }
 0x145   : > { %1484 = vmatpush1.bf16.msra.mxu1 %v6063_v48  ;;  %1525 = vmatpush1.bf16.msra.mxu0 %v6066_v50 }
 0x146   : > { %1485 = vmatprep.subr.bf16.mxu1 %v6071_v51  ;;  %1526 = vmatprep.subr.bf16.mxu0 %v6074_v53 }
 0x149   : > { %1486 = vmatpush1.bf16.msra.mxu1 %v6069_v52  ;;  %1527 = vmatpush1.bf16.msra.mxu0 %v6072_v54 }
 0x14a   : > { %1487 = vmatprep.subr.bf16.mxu1 %v6077_v55  ;;  %1528 = vmatprep.subr.bf16.mxu0 %v6080_v57 }
 0x14d   : > { %1488 = vmatpush1.bf16.msra.mxu1 %v6075_v56  ;;  %1529 = vmatpush1.bf16.msra.mxu0 %v6078_v58  ;;  %v6105_v56 = vld [vmem:[#allocation7 + $0x8] ss:$16 sps:$4 sm:$0xff]  }
 0x14e   : > { %1489 = vmatprep.subr.bf16.mxu1 %v6083_v59  ;;  %1530 = vmatprep.subr.bf16.mxu0 %v6086_v61  ;;  %v6201_v61 = vld [vmem:[#allocation10] ss:$16 sps:$4 sm:$0xff]  }
 0x151   : > { %1490 = vmatpush1.bf16.msra.mxu1 %v6081_v60  ;;  %1531 = vmatpush1.bf16.msra.mxu0 %v6084_v62  ;;  %v6110_v60 = vld [vmem:[#allocation7 + $0x2c] ss:$16 sps:$4 sm:$0xff]   ;;  %v6203_v62 = vld [vmem:[#allocation10 + $0x4] ss:$16 sps:$4 sm:$0xff]  }
 0x152   : > { %1491 = vmatprep.subr.bf16.mxu1 %v6089_v63  ;;  %1532 = vmatprep.subr.bf16.mxu0 %v6092_v1  ;;  %v6108_v63 = vld [vmem:[#allocation7 + $0x28] ss:$16 sps:$4 sm:$0xff]   ;;  %v6113_v1 = vld [vmem:[#allocation7 + $0x4c] ss:$16 sps:$4 sm:$0xff]  }
 0x155   : > { %1492 = vmatpush1.bf16.msra.mxu1 %v6087_v0  ;;  %1533 = vmatpush1.bf16.msra.mxu0 %v6090_v2  ;;  %v6209_v0 = vld [vmem:[#allocation10 + $0x24] ss:$16 sps:$4 sm:$0xff]   ;;  %v6207_v2 = vld [vmem:[#allocation10 + $0x20] ss:$16 sps:$4 sm:$0xff]  }
 0x156   : > { %1493 = vmatprep.subr.bf16.mxu1 %v6095_v3  ;;  %1534 = vmatprep.subr.bf16.mxu0 %v6098_v5  ;;  %v6111_v3 = vld [vmem:[#allocation7 + $0x48] ss:$16 sps:$4 sm:$0xff]   ;;  %v6116_v5 = vld [vmem:[#allocation7 + $0x6c] ss:$16 sps:$4 sm:$0xff]  }
 0x159   : > { %1494 = vmatpush1.bf16.msra.mxu1 %v6093_v4  ;;  %1535 = vmatpush1.bf16.msra.mxu0 %v6096_v6  ;;  %v6215_v4 = vld [vmem:[#allocation10 + $0x44] ss:$16 sps:$4 sm:$0xff]   ;;  %v6213_v6 = vld [vmem:[#allocation10 + $0x40] ss:$16 sps:$4 sm:$0xff]  }
 0x15a   : > { %1495 = vmatprep.subr.bf16.mxu1 %v6101_v7  ;;  %1536 = vmatprep.subr.bf16.mxu0 %v6104_v9  ;;  %v6114_v7 = vld [vmem:[#allocation7 + $0x68] ss:$16 sps:$4 sm:$0xff]   ;;  %v6119_v9 = vld [vmem:[#allocation7 + $0x8c] ss:$16 sps:$4 sm:$0xff]  }
 0x15d   : > { %1496 = vmatpush1.bf16.msra.mxu1 %v6099_v8  ;;  %1537 = vmatpush1.bf16.msra.mxu0 %v6102_v10  ;;  %v6221_v8 = vld [vmem:[#allocation10 + $0x64] ss:$16 sps:$4 sm:$0xff]   ;;  %v6219_v10 = vld [vmem:[#allocation10 + $0x60] ss:$16 sps:$4 sm:$0xff]  }
 0x15e   : > { %1547 = vmatprep.subr.bf16.mxu1 %v6107_v11  ;;  %2451 = vmatprep.subr.bf16.mxu0 %v6203_v62  ;;  %v6117_v11 = vld [vmem:[#allocation7 + $0x88] ss:$16 sps:$4 sm:$0xff]   ;;  %v6176_v62 = vld [vmem:[#allocation7 + $0x2ec] ss:$16 sps:$4 sm:$0xff]  }
 0x1f3   : > { %v595_v22 = vpop.f32.mrb[0].mxu0  ;;  %v636_v28 = vpop.f32.mrb[0].mxu1 }
 0x1f4   : > { %v596_v24 = vadd.f32 %v595_v22, %v500_v19  ;;  %v597_v25 = vpop.f32.mrb[1].mxu0  ;;  %v637_v30 = vadd.f32 %v636_v28, %v508_v21  ;;  %v638_v32 = vpop.f32.mrb[1].mxu1  ;;  %v6225_v19 = vld [vmem:[#allocation10 + $0x80] ss:$16 sps:$4 sm:$0xff]   ;;  %v6233_v21 = vld [vmem:[#allocation10 + $0xa4] ss:$16 sps:$4 sm:$0xff]  }
 0x1f5   : > { %v598_v26 = vadd.f32 %v597_v25, %v504_v20  ;;  %v599_v27 = vpop.f32.mrb[2].mxu0  ;;  %v639_v34 = vadd.f32 %v638_v32, %v512_v23  ;;  %v640_v35 = vpop.f32.mrb[2].mxu1  ;;  %v6120_v20 = vld [vmem:[#allocation7 + $0xa8] ss:$16 sps:$4 sm:$0xff]   ;;  %v6125_v22 = vld [vmem:[#allocation7 + $0xcc] ss:$16 sps:$4 sm:$0xff]  }
 0x1f6   : > { %v5229_v29 = vmul.f32 -1.442695, %v596_v24  ;;  %v600_v31 = vpop.f32.mrb[3].mxu0  ;;  %v5231_v36 = vmul.f32 -1.442695, %v637_v30  ;;  %v641_v37 = vpop.f32.mrb[3].mxu1 }
 0x1f7   : > { %v5230_v33 = vmul.f32 -1.442695, %v598_v26  ;;  %v5232_v38 = vmul.f32 -1.442695, %v639_v34  ;;  %v6231_v23 = vld [vmem:[#allocation10 + $0xa0] ss:$16 sps:$4 sm:$0xff]  }
 0x1f8   : > { %6873 = vpow2.f32 %v5229_v29  ;;  %v6239_v25 = vld [vmem:[#allocation10 + $0xc4] ss:$16 sps:$4 sm:$0xff]   ;;  %v6237_v27 = vld [vmem:[#allocation10 + $0xc0] ss:$16 sps:$4 sm:$0xff]   ;;  %v6131_v29 = vld [vmem:[#allocation7 + $0x10c] ss:$16 sps:$4 sm:$0xff]  }
 0x1f9   : > { %6875 = vpow2.f32 %v5230_v33  ;;  %v6126_v28 = vld [vmem:[#allocation7 + $0xe8] ss:$16 sps:$4 sm:$0xff]   ;;  %v6134_v31 = vld [vmem:[#allocation7 + $0x12c] ss:$16 sps:$4 sm:$0xff]  }
 0x1fa   : > { %6877 = vpow2.f32 %v5231_v36  ;;  %v6132_v32 = vld [vmem:[#allocation7 + $0x128] ss:$16 sps:$4 sm:$0xff]   ;;  %v6137_v33 = vld [vmem:[#allocation7 + $0x14c] ss:$16 sps:$4 sm:$0xff]  }
 0x1fb   : > { %6879 = vpow2.f32 %v5232_v38  ;;  %v6140_v35 = vld [vmem:[#allocation7 + $0x16c] ss:$16 sps:$4 sm:$0xff]   ;;  %v6138_v36 = vld [vmem:[#allocation7 + $0x168] ss:$16 sps:$4 sm:$0xff]  }
 0x1fc   : > { %v6143_v37 = vld [vmem:[#allocation7 + $0x18c] ss:$16 sps:$4 sm:$0xff]   ;;  %v6141_v38 = vld [vmem:[#allocation7 + $0x188] ss:$16 sps:$4 sm:$0xff]  }
 0x202   : > { %v6874_v39 = vpop.eup %6873 }
 0x203   : > { %v6876_v40 = vpop.eup %6875  ;;  %v655_v41 = vadd.f32 1.0, %v6874_v39  ;;  %v6146_v39 = vld [vmem:[#allocation7 + $0x1ac] ss:$16 sps:$4 sm:$0xff]  }
 0x204   : > { %v6878_v42 = vpop.eup %6877  ;;  %v656_v43 = vadd.f32 1.0, %v6876_v40  ;;  %v6144_v40 = vld [vmem:[#allocation7 + $0x1a8] ss:$16 sps:$4 sm:$0xff]  }
 0x205   : > { %v6880_v44 = vpop.eup %6879  ;;  %6881 = vrcp.f32 %v655_v41  ;;  %v657_v45 = vadd.f32 1.0, %v6878_v42  ;;  %v6149_v41 = vld [vmem:[#allocation7 + $0x1cc] ss:$16 sps:$4 sm:$0xff]   ;;  %v6147_v42 = vld [vmem:[#allocation7 + $0x1c8] ss:$16 sps:$4 sm:$0xff]  }
 0x206   : > { %6883 = vrcp.f32 %v656_v43  ;;  %v658_v46 = vadd.f32 1.0, %v6880_v44  ;;  %v6152_v43 = vld [vmem:[#allocation7 + $0x1ec] ss:$16 sps:$4 sm:$0xff]   ;;  %v6150_v44 = vld [vmem:[#allocation7 + $0x1e8] ss:$16 sps:$4 sm:$0xff]  }
 0x207   : > { %6885 = vrcp.f32 %v657_v45  ;;  %v6155_v45 = vld [vmem:[#allocation7 + $0x20c] ss:$16 sps:$4 sm:$0xff]  }
 0x208   : > { %6887 = vrcp.f32 %v658_v46  ;;  %v6153_v46 = vld [vmem:[#allocation7 + $0x208] ss:$16 sps:$4 sm:$0xff]  }
 0x20f   : > { %v6882_v47 = vpop.eup %6881 }
 0x210   : > { %v6884_v48 = vpop.eup %6883  ;;  %v667_v49 = vmul.f32 %v6882_v47, %v596_v24  ;;  %v6123_v24 = vld [vmem:[#allocation7 + $0xc8] ss:$16 sps:$4 sm:$0xff]   ;;  %v6158_v47 = vld [vmem:[#allocation7 + $0x22c] ss:$16 sps:$4 sm:$0xff]  }
 0x211   : > { %v6886_v50 = vpop.eup %6885  ;;  %v668_v51 = vmul.f32 %v6884_v48, %v598_v26  ;;  %v6128_v26 = vld [vmem:[#allocation7 + $0xec] ss:$16 sps:$4 sm:$0xff]   ;;  %v6156_v48 = vld [vmem:[#allocation7 + $0x228] ss:$16 sps:$4 sm:$0xff]  }
 0x212   : > { %v6888_v52 = vpop.eup %6887  ;;  %v669_v53 = vmul.f32 %v6886_v50, %v637_v30  ;;  %v7646_v57 = vpack.c.bf16 %v667_v49, %v667_v49  ;;  %v6129_v30 = vld [vmem:[#allocation7 + $0x108] ss:$16 sps:$4 sm:$0xff]   ;;  %v6161_v49 = vld [vmem:[#allocation7 + $0x24c] ss:$16 sps:$4 sm:$0xff]  }
 0x213   : > { %v672_v54 = vpack.c.bf16 %v668_v51, %v668_v51  ;;  %v670_v55 = vmul.f32 %v6888_v52, %v639_v34  ;;  %v6135_v34 = vld [vmem:[#allocation7 + $0x148] ss:$16 sps:$4 sm:$0xff]   ;;  %v6164_v51 = vld [vmem:[#allocation7 + $0x26c] ss:$16 sps:$4 sm:$0xff]  }
 0x214   : > { %v7648_v58 = vpack.c.bf16 %v669_v53, %v669_v53  ;;  %v6159_v50 = vld [vmem:[#allocation7 + $0x248] ss:$16 sps:$4 sm:$0xff]   ;;  %v6167_v53 = vld [vmem:[#allocation7 + $0x28c] ss:$16 sps:$4 sm:$0xff]  }
 0x215   : > { %v7650_v59 = vpack.c.bf16 %v670_v55, %v670_v55  ;;  %1497 = vmatprep.mubr.bf16.mxu1 %v672_v54  ;;  %v6162_v52 = vld [vmem:[#allocation7 + $0x268] ss:$16 sps:$4 sm:$0xff]   ;;  %v6170_v55 = vld [vmem:[#allocation7 + $0x2ac] ss:$16 sps:$4 sm:$0xff]  }
 0x216   : > { %1498 = vmatmul.mubr.bf16.vlgmr.msra.gmra.mrb[4].mxu1 %v7646_v57 }
 0x217   : > { %1548 = vmatpush1.bf16.msra.mxu1 %v6105_v56  ;;  %1538 = vmatprep.mubr.bf16.mxu0 %v7650_v59  ;;  %v6168_v56 = vld [vmem:[#allocation7 + $0x2a8] ss:$16 sps:$4 sm:$0xff]  }
 0x218   : > { %1579 = vmatprep.mubr.bf16.mxu1 %v672_v54  ;;  %1539 = vmatmul.mubr.bf16.vlgmr.msra.gmra.mrb[4].mxu0 %v7648_v58  ;;  %v6165_v54 = vld [vmem:[#allocation7 + $0x288] ss:$16 sps:$4 sm:$0xff]  }
 0x219   : > { %1549 = vmatprep.subr.bf16.mxu1 %v6110_v60  ;;  %2452 = vmatpush1.bf16.msra.mxu0 %v6201_v61  ;;  %v6243_v60 = vld [vmem:[#allocation10 + $0xe0] ss:$16 sps:$4 sm:$0xff]   ;;  %v6171_v61 = vld [vmem:[#allocation7 + $0x2c8] ss:$16 sps:$4 sm:$0xff]  }
 0x21a   : > { %2453 = vmatprep.subr.bf16.mxu0 %v6209_v0  ;;  %v6249_v0 = vld [vmem:[#allocation10 + $0x100] ss:$16 sps:$4 sm:$0xff]  }
 0x21b   : > { %1550 = vmatpush1.bf16.msra.mxu1 %v6108_v63  ;;  %v6251_v63 = vld [vmem:[#allocation10 + $0x104] ss:$16 sps:$4 sm:$0xff]  }
 0x21c   : > { %1551 = vmatprep.subr.bf16.mxu1 %v6113_v1  ;;  %v6174_v1 = vld [vmem:[#allocation7 + $0x2e8] ss:$16 sps:$4 sm:$0xff]  }
 0x21d   : > { %2454 = vmatpush1.bf16.msra.mxu0 %v6207_v2  ;;  %v6179_v2 = vld [vmem:[#allocation7 + $0x30c] ss:$16 sps:$4 sm:$0xff]  }
 0x21e   : > { %2455 = vmatprep.subr.bf16.mxu0 %v6215_v4  ;;  %v6255_v4 = vld [vmem:[#allocation10 + $0x120] ss:$16 sps:$4 sm:$0xff]  }
 0x21f   : > { %1552 = vmatpush1.bf16.msra.mxu1 %v6111_v3  ;;  %v6257_v3 = vld [vmem:[#allocation10 + $0x124] ss:$16 sps:$4 sm:$0xff]  }
 0x220   : > { %1553 = vmatprep.subr.bf16.mxu1 %v6116_v5  ;;  %v6177_v5 = vld [vmem:[#allocation7 + $0x308] ss:$16 sps:$4 sm:$0xff]  }
 0x221   : > { %2456 = vmatpush1.bf16.msra.mxu0 %v6213_v6  ;;  %v6182_v6 = vld [vmem:[#allocation7 + $0x32c] ss:$16 sps:$4 sm:$0xff]  }
 0x222   : > { %2457 = vmatprep.subr.bf16.mxu0 %v6221_v8  ;;  %v6261_v8 = vld [vmem:[#allocation10 + $0x140] ss:$16 sps:$4 sm:$0xff]  }
 0x223   : > { %1554 = vmatpush1.bf16.msra.mxu1 %v6114_v7  ;;  %v6263_v7 = vld [vmem:[#allocation10 + $0x144] ss:$16 sps:$4 sm:$0xff]  }
 0x224   : > { %1555 = vmatprep.subr.bf16.mxu1 %v6119_v9  ;;  %v6180_v9 = vld [vmem:[#allocation7 + $0x328] ss:$16 sps:$4 sm:$0xff]  }
 0x225   : > { %2458 = vmatpush1.bf16.msra.mxu0 %v6219_v10  ;;  %v6185_v10 = vld [vmem:[#allocation7 + $0x34c] ss:$16 sps:$4 sm:$0xff]  }
 0x226   : > { %2459 = vmatprep.subr.bf16.mxu0 %v6227_v12  ;;  %v6267_v12 = vld [vmem:[#allocation10 + $0x160] ss:$16 sps:$4 sm:$0xff]  }
 0x227   : > { %1556 = vmatpush1.bf16.msra.mxu1 %v6117_v11  ;;  %v6269_v11 = vld [vmem:[#allocation10 + $0x164] ss:$16 sps:$4 sm:$0xff]  }
 0x228   : > { %1557 = vmatprep.subr.bf16.mxu1 %v6122_v14  ;;  %v6183_v14 = vld [vmem:[#allocation7 + $0x348] ss:$16 sps:$4 sm:$0xff]  }
 0x229   : > { %2460 = vmatpush1.bf16.msra.mxu0 %v6225_v19  ;;  %v6188_v19 = vld [vmem:[#allocation7 + $0x36c] ss:$16 sps:$4 sm:$0xff]  }
 0x22a   : > { %2461 = vmatprep.subr.bf16.mxu0 %v6233_v21  ;;  %v6273_v21 = vld [vmem:[#allocation10 + $0x180] ss:$16 sps:$4 sm:$0xff]  }
 0x22b   : > { %1558 = vmatpush1.bf16.msra.mxu1 %v6120_v20  ;;  %v6275_v20 = vld [vmem:[#allocation10 + $0x184] ss:$16 sps:$4 sm:$0xff]  }
 0x22c   : > { %1559 = vmatprep.subr.bf16.mxu1 %v6125_v22  ;;  %v6186_v22 = vld [vmem:[#allocation7 + $0x368] ss:$16 sps:$4 sm:$0xff]  }
 0x22d   : > { %2462 = vmatpush1.bf16.msra.mxu0 %v6231_v23  ;;  %v6191_v23 = vld [vmem:[#allocation7 + $0x38c] ss:$16 sps:$4 sm:$0xff]  }
 0x22e   : > { %2463 = vmatprep.subr.bf16.mxu0 %v6239_v25  ;;  %v6279_v25 = vld [vmem:[#allocation10 + $0x1a0] ss:$16 sps:$4 sm:$0xff]  }
 0x22f   : > { %1560 = vmatpush1.bf16.msra.mxu1 %v6123_v24  ;;  %v6281_v24 = vld [vmem:[#allocation10 + $0x1a4] ss:$16 sps:$4 sm:$0xff]  }
 0x230   : > { %1561 = vmatprep.subr.bf16.mxu1 %v6128_v26  ;;  %v6189_v26 = vld [vmem:[#allocation7 + $0x388] ss:$16 sps:$4 sm:$0xff]  }
 0x231   : > { %2464 = vmatpush1.bf16.msra.mxu0 %v6237_v27  ;;  %v6194_v27 = vld [vmem:[#allocation7 + $0x3ac] ss:$16 sps:$4 sm:$0xff]  }
 0x233   : > { %1562 = vmatpush1.bf16.msra.mxu1 %v6126_v28  ;;  %v6287_v28 = vld [vmem:[#allocation10 + $0x1c4] ss:$16 sps:$4 sm:$0xff]  }
 0x234   : > { %1563 = vmatprep.subr.bf16.mxu1 %v6131_v29  ;;  %v6285_v29 = vld [vmem:[#allocation10 + $0x1c0] ss:$16 sps:$4 sm:$0xff]  }
 0x237   : > { %1564 = vmatpush1.bf16.msra.mxu1 %v6129_v30  ;;  %v6192_v30 = vld [vmem:[#allocation7 + $0x3a8] ss:$16 sps:$4 sm:$0xff]  }
 0x238   : > { %1565 = vmatprep.subr.bf16.mxu1 %v6134_v31  ;;  %v6197_v31 = vld [vmem:[#allocation7 + $0x3cc] ss:$16 sps:$4 sm:$0xff]  }
 0x23b   : > { %1566 = vmatpush1.bf16.msra.mxu1 %v6132_v32  ;;  %v6293_v32 = vld [vmem:[#allocation10 + $0x1e4] ss:$16 sps:$4 sm:$0xff]  }
 0x23c   : > { %1567 = vmatprep.subr.bf16.mxu1 %v6137_v33  ;;  %v6291_v33 = vld [vmem:[#allocation10 + $0x1e0] ss:$16 sps:$4 sm:$0xff]  }
 0x23f   : > { %1568 = vmatpush1.bf16.msra.mxu1 %v6135_v34  ;;  %v6195_v34 = vld [vmem:[#allocation7 + $0x3c8] ss:$16 sps:$4 sm:$0xff]  }
 0x240   : > { %1569 = vmatprep.subr.bf16.mxu1 %v6140_v35  ;;  %v6200_v35 = vld [vmem:[#allocation7 + $0x3ec] ss:$16 sps:$4 sm:$0xff]  }
 0x243   : > { %1570 = vmatpush1.bf16.msra.mxu1 %v6138_v36  ;;  %v6299_v36 = vld [vmem:[#allocation10 + $0x204] ss:$16 sps:$4 sm:$0xff]  }
 0x244   : > { %1571 = vmatprep.subr.bf16.mxu1 %v6143_v37  ;;  %v6198_v37 = vld [vmem:[#allocation7 + $0x3e8] ss:$16 sps:$4 sm:$0xff]  }
 0x247   : > { %1572 = vmatpush1.bf16.msra.mxu1 %v6141_v38  ;;  %v6206_v38 = vld [vmem:[#allocation10 + $0xc] ss:$16 sps:$4 sm:$0xff]  }
 0x248   : > { %1573 = vmatprep.subr.bf16.mxu1 %v6146_v39  ;;  %v6204_v39 = vld [vmem:[#allocation10 + $0x8] ss:$16 sps:$4 sm:$0xff]  }
 0x24b   : > { %1574 = vmatpush1.bf16.msra.mxu1 %v6144_v40  ;;  %v6212_v40 = vld [vmem:[#allocation10 + $0x2c] ss:$16 sps:$4 sm:$0xff]  }
 0x24c   : > { %1575 = vmatprep.subr.bf16.mxu1 %v6149_v41  ;;  %v6210_v41 = vld [vmem:[#allocation10 + $0x28] ss:$16 sps:$4 sm:$0xff]  }
 0x24f   : > { %1576 = vmatpush1.bf16.msra.mxu1 %v6147_v42  ;;  %v6218_v42 = vld [vmem:[#allocation10 + $0x4c] ss:$16 sps:$4 sm:$0xff]  }
 0x250   : > { %1577 = vmatprep.subr.bf16.mxu1 %v6152_v43  ;;  %v6216_v43 = vld [vmem:[#allocation10 + $0x48] ss:$16 sps:$4 sm:$0xff]  }
 0x253   : > { %1578 = vmatpush1.bf16.msra.mxu1 %v6150_v44  ;;  %v6224_v44 = vld [vmem:[#allocation10 + $0x6c] ss:$16 sps:$4 sm:$0xff]  }
 0x254   : > { %1588 = vmatprep.subr.bf16.mxu1 %v6155_v45  ;;  %v6222_v45 = vld [vmem:[#allocation10 + $0x68] ss:$16 sps:$4 sm:$0xff]  }
 0x256   : > { %1580 = vmatmul.mubr.bf16.vlgmr.msra.gmra.mrb[8].mxu1 %v7646_v57  ;;  %v6173_v57 = vld [vmem:[#allocation7 + $0x2cc] ss:$16 sps:$4 sm:$0xff]  }
 0x257   : > { %1589 = vmatpush1.bf16.msra.mxu1 %v6153_v46  ;;  %1620 = vmatprep.mubr.bf16.mxu1 %v7650_v59  ;;  %v6245_v59 = vld [vmem:[#allocation10 + $0xe4] ss:$16 sps:$4 sm:$0xff]   ;;  %v6230_v46 = vld [vmem:[#allocation10 + $0x8c] ss:$16 sps:$4 sm:$0xff]  }
 0x258   : > { %1590 = vmatprep.subr.bf16.mxu1 %v6158_v47  ;;  %2465 = vmatprep.subr.bf16.mxu0 %v6245_v59  ;;  %v6228_v47 = vld [vmem:[#allocation10 + $0x88] ss:$16 sps:$4 sm:$0xff]  }
 0x259   : > { %2466 = vmatpush1.bf16.msra.mxu0 %v6243_v60  ;;  %v6264_v59 = vld [vmem:[#allocation10 + $0x148] ss:$16 sps:$4 sm:$0xff]   ;;  %v6272_v60 = vld [vmem:[#allocation10 + $0x16c] ss:$16 sps:$4 sm:$0xff]  }
 0x25a   : > { %2467 = vmatprep.subr.bf16.mxu0 %v6251_v63  ;;  %v6276_v63 = vld [vmem:[#allocation10 + $0x188] ss:$16 sps:$4 sm:$0xff]  }
 0x25b   : > { %1591 = vmatpush1.bf16.msra.mxu1 %v6156_v48  ;;  %v6236_v48 = vld [vmem:[#allocation10 + $0xac] ss:$16 sps:$4 sm:$0xff]  }
 0x25c   : > { %1592 = vmatprep.subr.bf16.mxu1 %v6161_v49  ;;  %v6234_v49 = vld [vmem:[#allocation10 + $0xa8] ss:$16 sps:$4 sm:$0xff]  }
 0x25d   : > { %2468 = vmatpush1.bf16.msra.mxu0 %v6249_v0  ;;  %v6284_v0 = vld [vmem:[#allocation10 + $0x1ac] ss:$16 sps:$4 sm:$0xff]  }
 0x25e   : > { %2469 = vmatprep.subr.bf16.mxu0 %v6257_v3  ;;  %v6288_v3 = vld [vmem:[#allocation10 + $0x1c8] ss:$16 sps:$4 sm:$0xff]  }
 0x25f   : > { %1593 = vmatpush1.bf16.msra.mxu1 %v6159_v50  ;;  %v6240_v50 = vld [vmem:[#allocation10 + $0xc8] ss:$16 sps:$4 sm:$0xff]  }
 0x260   : > { %1594 = vmatprep.subr.bf16.mxu1 %v6164_v51  ;;  %v6248_v51 = vld [vmem:[#allocation10 + $0xec] ss:$16 sps:$4 sm:$0xff]  }
 0x261   : > { %2470 = vmatpush1.bf16.msra.mxu0 %v6255_v4  ;;  %v6296_v4 = vld [vmem:[#allocation10 + $0x1ec] ss:$16 sps:$4 sm:$0xff]  }
 0x262   : > { %2471 = vmatprep.subr.bf16.mxu0 %v6263_v7  ;;  %v7658_v7 = vld [vmem:[#allocation9] sm:$0xf] }
 0x263   : > { %1595 = vmatpush1.bf16.msra.mxu1 %v6162_v52  ;;  %v6246_v52 = vld [vmem:[#allocation10 + $0xe8] ss:$16 sps:$4 sm:$0xff]  }
 0x264   : > { %1596 = vmatprep.subr.bf16.mxu1 %v6167_v53  ;;  %v6254_v53 = vld [vmem:[#allocation10 + $0x10c] ss:$16 sps:$4 sm:$0xff]  }
 0x265   : > { %2472 = vmatpush1.bf16.msra.mxu0 %v6261_v8  ;;  %v808_v8 = vrot.slane %v7658_v7, %v7631_v15 }
 0x266   : > { %2473 = vmatprep.subr.bf16.mxu0 %v6269_v11 }
 0x267   : > { %1597 = vmatpush1.bf16.msra.mxu1 %v6165_v54  ;;  %v6252_v54 = vld [vmem:[#allocation10 + $0x108] ss:$16 sps:$4 sm:$0xff]  }
 0x268   : > { %1598 = vmatprep.subr.bf16.mxu1 %v6170_v55  ;;  %v6260_v55 = vld [vmem:[#allocation10 + $0x12c] ss:$16 sps:$4 sm:$0xff]  }
 0x269   : > { %2474 = vmatpush1.bf16.msra.mxu0 %v6267_v12 }
 0x26a   : > { %2475 = vmatprep.subr.bf16.mxu0 %v6275_v20 }
 0x26b   : > { %1599 = vmatpush1.bf16.msra.mxu1 %v6168_v56  ;;  %v6258_v56 = vld [vmem:[#allocation10 + $0x128] ss:$16 sps:$4 sm:$0xff]  }
 0x26c   : > { %1600 = vmatprep.subr.bf16.mxu1 %v6173_v57  ;;  %v6266_v57 = vld [vmem:[#allocation10 + $0x14c] ss:$16 sps:$4 sm:$0xff]  }
 0x26d   : > { %2476 = vmatpush1.bf16.msra.mxu0 %v6273_v21 }
 0x26e   : > { %2477 = vmatprep.subr.bf16.mxu0 %v6281_v24 }
 0x26f   : > { %1601 = vmatpush1.bf16.msra.mxu1 %v6171_v61  ;;  %v6270_v61 = vld [vmem:[#allocation10 + $0x168] ss:$16 sps:$4 sm:$0xff]  }
 0x270   : > { %1602 = vmatprep.subr.bf16.mxu1 %v6176_v62  ;;  %v6278_v62 = vld [vmem:[#allocation10 + $0x18c] ss:$16 sps:$4 sm:$0xff]  }
 0x271   : > { %2478 = vmatpush1.bf16.msra.mxu0 %v6279_v25 }
 0x272   : > { %2479 = vmatprep.subr.bf16.mxu0 %v6287_v28 }
 0x273   : > { %1603 = vmatpush1.bf16.msra.mxu1 %v6174_v1  ;;  %v6282_v1 = vld [vmem:[#allocation10 + $0x1a8] ss:$16 sps:$4 sm:$0xff]  }
 0x274   : > { %1604 = vmatprep.subr.bf16.mxu1 %v6179_v2  ;;  %v6290_v2 = vld [vmem:[#allocation10 + $0x1cc] ss:$16 sps:$4 sm:$0xff]  }
 0x275   : > { %2480 = vmatpush1.bf16.msra.mxu0 %v6285_v29 }
 0x276   : > { %2481 = vmatprep.subr.bf16.mxu0 %v6293_v32 }
 0x277   : > { %1605 = vmatpush1.bf16.msra.mxu1 %v6177_v5  ;;  %v6294_v5 = vld [vmem:[#allocation10 + $0x1e8] ss:$16 sps:$4 sm:$0xff]  }
 0x278   : > { %1606 = vmatprep.subr.bf16.mxu1 %v6182_v6  ;;  %v6302_v6 = vld [vmem:[#allocation10 + $0x20c] ss:$16 sps:$4 sm:$0xff]  }
 0x279   : > { %2482 = vmatpush1.bf16.msra.mxu0 %v6291_v33 }
 0x27a   : > { %2492 = vmatprep.subr.bf16.mxu0 %v6299_v36 }
 0x27b   : > { %1607 = vmatpush1.bf16.msra.mxu1 %v6180_v9  ;;  %v812_v9 = vrot.slane %v7658_v7, %v7634_v16 }
 0x27c   : > { %1608 = vmatprep.subr.bf16.mxu1 %v6185_v10 }
 0x27f   : > { %1609 = vmatpush1.bf16.msra.mxu1 %v6183_v14 }
 0x280   : > { %1610 = vmatprep.subr.bf16.mxu1 %v6188_v19 }
 0x283   : > { %1611 = vmatpush1.bf16.msra.mxu1 %v6186_v22 }
 0x284   : > { %1612 = vmatprep.subr.bf16.mxu1 %v6191_v23 }
 0x287   : > { %1613 = vmatpush1.bf16.msra.mxu1 %v6189_v26 }
 0x288   : > { %1614 = vmatprep.subr.bf16.mxu1 %v6194_v27 }
 0x28b   : > { %1615 = vmatpush1.bf16.msra.mxu1 %v6192_v30 }
 0x28c   : > { %1616 = vmatprep.subr.bf16.mxu1 %v6197_v31 }
 0x28f   : > { %1617 = vmatpush1.bf16.msra.mxu1 %v6195_v34 }
 0x290   : > { %1618 = vmatprep.subr.bf16.mxu1 %v6200_v35 }
 0x293   : > { %1619 = vmatpush1.bf16.msra.mxu1 %v6198_v37 }
 0x294   : > { %2533 = vmatprep.subr.bf16.mxu1 %v6206_v38  ;;  %v6297_v38 = vld [vmem:[#allocation10 + $0x200] ss:$16 sps:$4 sm:$0xff]  }
 0x296   : > { %1621 = vmatmul.mubr.bf16.vlgmr.msra.gmra.mrb[8].mxu1 %v7648_v58  ;;  %v6242_v58 = vld [vmem:[#allocation10 + $0xcc] ss:$16 sps:$4 sm:$0xff]  }
 0x297   : > { %2534 = vmatpush1.bf16.msra.mxu1 %v6204_v39  ;;  %v6300_v39 = vld [vmem:[#allocation10 + $0x208] ss:$16 sps:$4 sm:$0xff]  }
 0x298   : > { %2535 = vmatprep.subr.bf16.mxu1 %v6212_v40 }
 0x29b   : > { %2536 = vmatpush1.bf16.msra.mxu1 %v6210_v41  ;;  %v6305_v41 = vld [vmem:[#allocation10 + $0x224] ss:$16 sps:$4 sm:$0xff]  }
 0x29c   : > { %2537 = vmatprep.subr.bf16.mxu1 %v6218_v42  ;;  %v6308_v42 = vld [vmem:[#allocation10 + $0x22c] ss:$16 sps:$4 sm:$0xff]  }
 0x29f   : > { %2538 = vmatpush1.bf16.msra.mxu1 %v6216_v43  ;;  %v6303_v43 = vld [vmem:[#allocation10 + $0x220] ss:$16 sps:$4 sm:$0xff]  }
 0x2a0   : > { %2539 = vmatprep.subr.bf16.mxu1 %v6224_v44  ;;  %v6306_v44 = vld [vmem:[#allocation10 + $0x228] ss:$16 sps:$4 sm:$0xff]  }
 0x2a3   : > { %2540 = vmatpush1.bf16.msra.mxu1 %v6222_v45  ;;  %v6311_v45 = vld [vmem:[#allocation10 + $0x244] ss:$16 sps:$4 sm:$0xff]  }
 0x2a4   : > { %2541 = vmatprep.subr.bf16.mxu1 %v6230_v46  ;;  %v6314_v46 = vld [vmem:[#allocation10 + $0x24c] ss:$16 sps:$4 sm:$0xff]  }
 0x2a7   : > { %2542 = vmatpush1.bf16.msra.mxu1 %v6228_v47  ;;  %v6309_v47 = vld [vmem:[#allocation10 + $0x240] ss:$16 sps:$4 sm:$0xff]  }
 0x2a8   : > { %2543 = vmatprep.subr.bf16.mxu1 %v6236_v48  ;;  %v6312_v48 = vld [vmem:[#allocation10 + $0x248] ss:$16 sps:$4 sm:$0xff]  }
 0x2ab   : > { %2544 = vmatpush1.bf16.msra.mxu1 %v6234_v49  ;;  %v6317_v49 = vld [vmem:[#allocation10 + $0x264] ss:$16 sps:$4 sm:$0xff]  }
 0x2ac   : > { %2545 = vmatprep.subr.bf16.mxu1 %v6242_v58  ;;  %v6320_v58 = vld [vmem:[#allocation10 + $0x26c] ss:$16 sps:$4 sm:$0xff]  }
 0x2af   : > { %2546 = vmatpush1.bf16.msra.mxu1 %v6240_v50  ;;  %v6315_v50 = vld [vmem:[#allocation10 + $0x260] ss:$16 sps:$4 sm:$0xff]  }
 0x2b0   : > { %2547 = vmatprep.subr.bf16.mxu1 %v6248_v51  ;;  %v6318_v51 = vld [vmem:[#allocation10 + $0x268] ss:$16 sps:$4 sm:$0xff]  }
 0x2b3   : > { %2548 = vmatpush1.bf16.msra.mxu1 %v6246_v52  ;;  %v6323_v52 = vld [vmem:[#allocation10 + $0x284] ss:$16 sps:$4 sm:$0xff]  }
 0x2b4   : > { %2549 = vmatprep.subr.bf16.mxu1 %v6254_v53  ;;  %v6326_v53 = vld [vmem:[#allocation10 + $0x28c] ss:$16 sps:$4 sm:$0xff]  }
 0x2b7   : > { %2550 = vmatpush1.bf16.msra.mxu1 %v6252_v54  ;;  %v6321_v54 = vld [vmem:[#allocation10 + $0x280] ss:$16 sps:$4 sm:$0xff]  }
 0x2b8   : > { %2551 = vmatprep.subr.bf16.mxu1 %v6260_v55  ;;  %v6324_v55 = vld [vmem:[#allocation10 + $0x288] ss:$16 sps:$4 sm:$0xff]  }
 0x2bb   : > { %2552 = vmatpush1.bf16.msra.mxu1 %v6258_v56  ;;  %v6329_v56 = vld [vmem:[#allocation10 + $0x2a4] ss:$16 sps:$4 sm:$0xff]  }
 0x2bc   : > { %2553 = vmatprep.subr.bf16.mxu1 %v6266_v57  ;;  %v6332_v57 = vld [vmem:[#allocation10 + $0x2ac] ss:$16 sps:$4 sm:$0xff]  }
 0x2bf   : > { %2554 = vmatpush1.bf16.msra.mxu1 %v6264_v59  ;;  %v6327_v59 = vld [vmem:[#allocation10 + $0x2a0] ss:$16 sps:$4 sm:$0xff]  }
 0x2c0   : > { %2555 = vmatprep.subr.bf16.mxu1 %v6272_v60  ;;  %v6330_v60 = vld [vmem:[#allocation10 + $0x2a8] ss:$16 sps:$4 sm:$0xff]  }
 0x2c3   : > { %2556 = vmatpush1.bf16.msra.mxu1 %v6270_v61  ;;  %v6335_v61 = vld [vmem:[#allocation10 + $0x2c4] ss:$16 sps:$4 sm:$0xff]  }
 0x2c4   : > { %2557 = vmatprep.subr.bf16.mxu1 %v6278_v62  ;;  %v6338_v62 = vld [vmem:[#allocation10 + $0x2cc] ss:$16 sps:$4 sm:$0xff]  }
 0x2c7   : > { %2558 = vmatpush1.bf16.msra.mxu1 %v6276_v63  ;;  %v6333_v63 = vld [vmem:[#allocation10 + $0x2c0] ss:$16 sps:$4 sm:$0xff]  }
 0x2c8   : > { %2559 = vmatprep.subr.bf16.mxu1 %v6284_v0  ;;  %v6336_v0 = vld [vmem:[#allocation10 + $0x2c8] ss:$16 sps:$4 sm:$0xff]  }
 0x2cb   : > { %2560 = vmatpush1.bf16.msra.mxu1 %v6282_v1  ;;  %v6341_v1 = vld [vmem:[#allocation10 + $0x2e4] ss:$16 sps:$4 sm:$0xff]  }
 0x2cc   : > { %2561 = vmatprep.subr.bf16.mxu1 %v6290_v2  ;;  %v6344_v2 = vld [vmem:[#allocation10 + $0x2ec] ss:$16 sps:$4 sm:$0xff]  }
 0x2cf   : > { %2562 = vmatpush1.bf16.msra.mxu1 %v6288_v3  ;;  %v6339_v3 = vld [vmem:[#allocation10 + $0x2e0] ss:$16 sps:$4 sm:$0xff]  }
 0x2d0   : > { %2563 = vmatprep.subr.bf16.mxu1 %v6296_v4  ;;  %v6342_v4 = vld [vmem:[#allocation10 + $0x2e8] ss:$16 sps:$4 sm:$0xff]  }
 0x2d3   : > { %2564 = vmatpush1.bf16.msra.mxu1 %v6294_v5  ;;  %v6347_v5 = vld [vmem:[#allocation10 + $0x304] ss:$16 sps:$4 sm:$0xff]  }
 0x2d4   : > { %2574 = vmatprep.subr.bf16.mxu1 %v6302_v6  ;;  %v6350_v6 = vld [vmem:[#allocation10 + $0x30c] ss:$16 sps:$4 sm:$0xff]  }
 0x2e9   : > { %v1499_v10 = vpop.f32.mrb[4].mxu1 }
 0x2ea   : > { %v1500_v11 = vadd.f32 %v1499_v10, %v808_v8  ;;  %v1501_v12 = vpop.f32.mrb[5].mxu1  ;;  %v6345_v8 = vld [vmem:[#allocation10 + $0x300] ss:$16 sps:$4 sm:$0xff]   ;;  %v6353_v10 = vld [vmem:[#allocation10 + $0x324] ss:$16 sps:$4 sm:$0xff]  }
 0x2eb   : > { %v1502_v14 = vadd.f32 %v1501_v12, %v812_v9  ;;  %v1503_v19 = vpop.f32.mrb[6].mxu1  ;;  %v1540_v20 = vpop.f32.mrb[4].mxu0  ;;  %v6348_v9 = vld [vmem:[#allocation10 + $0x308] ss:$16 sps:$4 sm:$0xff]   ;;  %v6351_v12 = vld [vmem:[#allocation10 + $0x320] ss:$16 sps:$4 sm:$0xff]  }
 0x2ec   : > { %v1541_v21 = vadd.f32 %v1540_v20, %v1500_v11  ;;  %v1504_v22 = vpop.f32.mrb[7].mxu1  ;;  %v1542_v23 = vpop.f32.mrb[5].mxu0  ;;  %v6356_v11 = vld [vmem:[#allocation10 + $0x32c] ss:$16 sps:$4 sm:$0xff]   ;;  %v6359_v19 = vld [vmem:[#allocation10 + $0x344] ss:$16 sps:$4 sm:$0xff]  }
 0x2ed   : > { %v1543_v24 = vadd.f32 %v1542_v23, %v1502_v14  ;;  %v1544_v25 = vpop.f32.mrb[6].mxu0  ;;  %v6354_v14 = vld [vmem:[#allocation10 + $0x328] ss:$16 sps:$4 sm:$0xff]   ;;  %v6362_v20 = vld [vmem:[#allocation10 + $0x34c] ss:$16 sps:$4 sm:$0xff]  }
 0x2ee   : > { %v5361_v26 = vmul.f32 -1.442695, %v1541_v21  ;;  %v1545_v27 = vpop.f32.mrb[7].mxu0  ;;  %v6360_v22 = vld [vmem:[#allocation10 + $0x348] ss:$16 sps:$4 sm:$0xff]  }
 0x2ef   : > { %v5362_v28 = vmul.f32 -1.442695, %v1543_v24  ;;  %v6365_v23 = vld [vmem:[#allocation10 + $0x364] ss:$16 sps:$4 sm:$0xff]   ;;  %v6363_v25 = vld [vmem:[#allocation10 + $0x360] ss:$16 sps:$4 sm:$0xff]  }
 0x2f0   : > { %6889 = vpow2.f32 %v5361_v26  ;;  %v6366_v26 = vld [vmem:[#allocation10 + $0x368] ss:$16 sps:$4 sm:$0xff]   ;;  %v6371_v27 = vld [vmem:[#allocation10 + $0x384] ss:$16 sps:$4 sm:$0xff]  }
 0x2f1   : > { %6891 = vpow2.f32 %v5362_v28  ;;  %v6374_v28 = vld [vmem:[#allocation10 + $0x38c] ss:$16 sps:$4 sm:$0xff]  }
 0x2fa   : > { %v6890_v29 = vpop.eup %6889 }
 0x2fb   : > { %v6892_v30 = vpop.eup %6891  ;;  %v1641_v31 = vadd.f32 1.0, %v6890_v29  ;;  %v6369_v29 = vld [vmem:[#allocation10 + $0x380] ss:$16 sps:$4 sm:$0xff]  }
 0x2fc   : > { %v1642_v32 = vadd.f32 1.0, %v6892_v30  ;;  %v6372_v30 = vld [vmem:[#allocation10 + $0x388] ss:$16 sps:$4 sm:$0xff]  }
 0x2fd   : > { %6893 = vrcp.f32 %v1641_v31  ;;  %v6377_v31 = vld [vmem:[#allocation10 + $0x3a4] ss:$16 sps:$4 sm:$0xff]  }
 0x2fe   : > { %6895 = vrcp.f32 %v1642_v32  ;;  %v6380_v32 = vld [vmem:[#allocation10 + $0x3ac] ss:$16 sps:$4 sm:$0xff]  }
 0x307   : > { %v6894_v33 = vpop.eup %6893 }
 0x308   : > { %v6896_v34 = vpop.eup %6895  ;;  %v1653_v35 = vmul.f32 %v6894_v33, %v1541_v21  ;;  %v6357_v21 = vld [vmem:[#allocation10 + $0x340] ss:$16 sps:$4 sm:$0xff]  }
 0x309   : > { %v1654_v36 = vmul.f32 %v6896_v34, %v1543_v24  ;;  %v6368_v24 = vld [vmem:[#allocation10 + $0x36c] ss:$16 sps:$4 sm:$0xff]   ;;  %v6375_v33 = vld [vmem:[#allocation10 + $0x3a0] ss:$16 sps:$4 sm:$0xff]   ;;  %v6378_v34 = vld [vmem:[#allocation10 + $0x3a8] ss:$16 sps:$4 sm:$0xff]  }
 0x30a   : > { %v1657_v40 = vpack.c.bf16 %v1653_v35, %v1653_v35  ;;  %v6383_v35 = vld [vmem:[#allocation10 + $0x3c4] ss:$16 sps:$4 sm:$0xff]  }
 0x30b   : > { %v1658_v37 = vpack.c.bf16 %v1654_v36, %v1654_v36  ;;  %v6386_v36 = vld [vmem:[#allocation10 + $0x3cc] ss:$16 sps:$4 sm:$0xff]  }
 0x30d   : > { %2483 = vmatprep.mubr.bf16.mxu0 %v1658_v37  ;;  %2565 = vmatprep.mubr.bf16.mxu1 %v1658_v37  ;;  %v6381_v37 = vld [vmem:[#allocation10 + $0x3c0] ss:$16 sps:$4 sm:$0xff]  }
 0x30e   : > { %2484 = vmatmul.mubr.bf16.vlgmr.msra.gmra.mrb[8].mxu0 %v1657_v40  ;;  %2566 = vmatmul.mubr.bf16.vlgmr.msra.gmra.mrb[12].mxu1 %v1657_v40  ;;  %v6392_v40 = vld [vmem:[#allocation10 + $0x3ec] ss:$16 sps:$4 sm:$0xff]  }
 0x30f   : > { %2493 = vmatpush1.bf16.msra.mxu0 %v6297_v38  ;;  %2575 = vmatpush1.bf16.msra.mxu1 %v6300_v39  ;;  %v6384_v38 = vld [vmem:[#allocation10 + $0x3c8] ss:$16 sps:$4 sm:$0xff]   ;;  %v6389_v39 = vld [vmem:[#allocation10 + $0x3e4] ss:$16 sps:$4 sm:$0xff]  }
 0x310   : > { %2494 = vmatprep.subr.bf16.mxu0 %v6305_v41  ;;  %2576 = vmatprep.subr.bf16.mxu1 %v6308_v42  ;;  %v6387_v41 = vld [vmem:[#allocation10 + $0x3e0] ss:$16 sps:$4 sm:$0xff]   ;;  %v6390_v42 = vld [vmem:[#allocation10 + $0x3e8] ss:$16 sps:$4 sm:$0xff]  }
 0x313   : > { %2495 = vmatpush1.bf16.msra.mxu0 %v6303_v43  ;;  %2577 = vmatpush1.bf16.msra.mxu1 %v6306_v44  ;;  %v6395_v43 = vld [vmem:[%s7622_s1 + $0x4] ss:$40 sps:$4 sm:$0xff]  }
 0x314   : > { %2496 = vmatprep.subr.bf16.mxu0 %v6311_v45  ;;  %2578 = vmatprep.subr.bf16.mxu1 %v6314_v46  ;;  %v6398_v44 = vld [vmem:[%s7622_s1 + $0xc] ss:$40 sps:$4 sm:$0xff]   ;;  %v816_v45 = vrot.slane %v7658_v7, %v7637_v17  ;;  %v820_v46 = vrot.slane %v7658_v7, %v7640_v18 }
 0x317   : > { %2497 = vmatpush1.bf16.msra.mxu0 %v6309_v47  ;;  %2579 = vmatpush1.bf16.msra.mxu1 %v6312_v48 }
 0x318   : > { %2498 = vmatprep.subr.bf16.mxu0 %v6317_v49  ;;  %2580 = vmatprep.subr.bf16.mxu1 %v6320_v58 }
 0x31b   : > { %2499 = vmatpush1.bf16.msra.mxu0 %v6315_v50  ;;  %2581 = vmatpush1.bf16.msra.mxu1 %v6318_v51 }
 0x31c   : > { %2500 = vmatprep.subr.bf16.mxu0 %v6323_v52  ;;  %2582 = vmatprep.subr.bf16.mxu1 %v6326_v53 }
 0x31f   : > { %2501 = vmatpush1.bf16.msra.mxu0 %v6321_v54  ;;  %2583 = vmatpush1.bf16.msra.mxu1 %v6324_v55 }
 0x320   : > { %2502 = vmatprep.subr.bf16.mxu0 %v6329_v56  ;;  %2584 = vmatprep.subr.bf16.mxu1 %v6332_v57 }
 0x323   : > { %2503 = vmatpush1.bf16.msra.mxu0 %v6327_v59  ;;  %2585 = vmatpush1.bf16.msra.mxu1 %v6330_v60 }
 0x324   : > { %2504 = vmatprep.subr.bf16.mxu0 %v6335_v61  ;;  %2586 = vmatprep.subr.bf16.mxu1 %v6338_v62 }
 0x327   : > { %2505 = vmatpush1.bf16.msra.mxu0 %v6333_v63  ;;  %2587 = vmatpush1.bf16.msra.mxu1 %v6336_v0  ;;  %v6393_v63 = vld [vmem:[%s7622_s1] ss:$40 sps:$4 sm:$0xff]  }
 0x328   : > { %2506 = vmatprep.subr.bf16.mxu0 %v6341_v1  ;;  %2588 = vmatprep.subr.bf16.mxu1 %v6344_v2  ;;  %v6396_v0 = vld [vmem:[%s7622_s1 + $0x8] ss:$40 sps:$4 sm:$0xff]   ;;  %v6401_v2 = vld [vmem:[%s7622_s1 + $0x54] ss:$40 sps:$4 sm:$0xff]  }
 0x32b   : > { %2507 = vmatpush1.bf16.msra.mxu0 %v6339_v3  ;;  %2589 = vmatpush1.bf16.msra.mxu1 %v6342_v4  ;;  %v6404_v3 = vld [vmem:[%s7622_s1 + $0x5c] ss:$40 sps:$4 sm:$0xff]   ;;  %v6399_v4 = vld [vmem:[%s7622_s1 + $0x50] ss:$40 sps:$4 sm:$0xff]  }
 0x32c   : > { %2508 = vmatprep.subr.bf16.mxu0 %v6347_v5  ;;  %2590 = vmatprep.subr.bf16.mxu1 %v6350_v6  ;;  %v6402_v5 = vld [vmem:[%s7622_s1 + $0x58] ss:$40 sps:$4 sm:$0xff]   ;;  %v6407_v6 = vld [vmem:[%s7622_s1 + $0xa4] ss:$40 sps:$4 sm:$0xff]  }
 0x32f   : > { %2509 = vmatpush1.bf16.msra.mxu0 %v6345_v8  ;;  %2591 = vmatpush1.bf16.msra.mxu1 %v6348_v9  ;;  %v6410_v8 = vld [vmem:[%s7622_s1 + $0xac] ss:$40 sps:$4 sm:$0xff]   ;;  %v6405_v9 = vld [vmem:[%s7622_s1 + $0xa0] ss:$40 sps:$4 sm:$0xff]  }
 0x330   : > { %2510 = vmatprep.subr.bf16.mxu0 %v6353_v10  ;;  %2592 = vmatprep.subr.bf16.mxu1 %v6356_v11  ;;  %v6408_v10 = vld [vmem:[%s7622_s1 + $0xa8] ss:$40 sps:$4 sm:$0xff]   ;;  %v6413_v11 = vld [vmem:[%s7622_s1 + $0xf4] ss:$40 sps:$4 sm:$0xff]  }
 0x333   : > { %2511 = vmatpush1.bf16.msra.mxu0 %v6351_v12  ;;  %2593 = vmatpush1.bf16.msra.mxu1 %v6354_v14  ;;  %v6416_v12 = vld [vmem:[%s7622_s1 + $0xfc] ss:$40 sps:$4 sm:$0xff]   ;;  %v6411_v14 = vld [vmem:[%s7622_s1 + $0xf0] ss:$40 sps:$4 sm:$0xff]  }
 0x334   : > { %2512 = vmatprep.subr.bf16.mxu0 %v6359_v19  ;;  %2594 = vmatprep.subr.bf16.mxu1 %v6362_v20  ;;  %v6414_v19 = vld [vmem:[%s7622_s1 + $0xf8] ss:$40 sps:$4 sm:$0xff]   ;;  %v6419_v20 = vld [vmem:[%s7622_s1 + $0x144] ss:$40 sps:$4 sm:$0xff]  }
 0x337   : > { %2513 = vmatpush1.bf16.msra.mxu0 %v6357_v21  ;;  %2595 = vmatpush1.bf16.msra.mxu1 %v6360_v22  ;;  %v6422_v21 = vld [vmem:[%s7622_s1 + $0x14c] ss:$40 sps:$4 sm:$0xff]   ;;  %v6417_v22 = vld [vmem:[%s7622_s1 + $0x140] ss:$40 sps:$4 sm:$0xff]  }
 0x338   : > { %2514 = vmatprep.subr.bf16.mxu0 %v6365_v23  ;;  %2596 = vmatprep.subr.bf16.mxu1 %v6368_v24  ;;  %v6420_v23 = vld [vmem:[%s7622_s1 + $0x148] ss:$40 sps:$4 sm:$0xff]   ;;  %v6425_v24 = vld [vmem:[%s7622_s1 + $0x194] ss:$40 sps:$4 sm:$0xff]  }
 0x33b   : > { %2515 = vmatpush1.bf16.msra.mxu0 %v6363_v25  ;;  %2597 = vmatpush1.bf16.msra.mxu1 %v6366_v26  ;;  %v6428_v25 = vld [vmem:[%s7622_s1 + $0x19c] ss:$40 sps:$4 sm:$0xff]   ;;  %v6423_v26 = vld [vmem:[%s7622_s1 + $0x190] ss:$40 sps:$4 sm:$0xff]  }
 0x33c   : > { %2516 = vmatprep.subr.bf16.mxu0 %v6371_v27  ;;  %2598 = vmatprep.subr.bf16.mxu1 %v6374_v28  ;;  %v6426_v27 = vld [vmem:[%s7622_s1 + $0x198] ss:$40 sps:$4 sm:$0xff]   ;;  %v6431_v28 = vld [vmem:[%s7622_s1 + $0x1e4] ss:$40 sps:$4 sm:$0xff]  }
 0x33f   : > { %2517 = vmatpush1.bf16.msra.mxu0 %v6369_v29  ;;  %2599 = vmatpush1.bf16.msra.mxu1 %v6372_v30  ;;  %v6434_v29 = vld [vmem:[%s7622_s1 + $0x1ec] ss:$40 sps:$4 sm:$0xff]   ;;  %v6429_v30 = vld [vmem:[%s7622_s1 + $0x1e0] ss:$40 sps:$4 sm:$0xff]  }
 0x340   : > { %2518 = vmatprep.subr.bf16.mxu0 %v6377_v31  ;;  %2600 = vmatprep.subr.bf16.mxu1 %v6380_v32  ;;  %v6432_v31 = vld [vmem:[%s7622_s1 + $0x1e8] ss:$40 sps:$4 sm:$0xff]   ;;  %v6437_v32 = vld [vmem:[%s7622_s1 + $0x234] ss:$40 sps:$4 sm:$0xff]  }
 0x343   : > { %2519 = vmatpush1.bf16.msra.mxu0 %v6375_v33  ;;  %2601 = vmatpush1.bf16.msra.mxu1 %v6378_v34  ;;  %v6440_v33 = vld [vmem:[%s7622_s1 + $0x23c] ss:$40 sps:$4 sm:$0xff]   ;;  %v6435_v34 = vld [vmem:[%s7622_s1 + $0x230] ss:$40 sps:$4 sm:$0xff]  }
 0x344   : > { %2520 = vmatprep.subr.bf16.mxu0 %v6383_v35  ;;  %2602 = vmatprep.subr.bf16.mxu1 %v6386_v36  ;;  %v6438_v35 = vld [vmem:[%s7622_s1 + $0x238] ss:$40 sps:$4 sm:$0xff]   ;;  %v6443_v36 = vld [vmem:[%s7622_s1 + $0x284] ss:$40 sps:$4 sm:$0xff]  }
 0x347   : > { %2521 = vmatpush1.bf16.msra.mxu0 %v6381_v37  ;;  %2603 = vmatpush1.bf16.msra.mxu1 %v6384_v38  ;;  %v6446_v37 = vld [vmem:[%s7622_s1 + $0x28c] ss:$40 sps:$4 sm:$0xff]   ;;  %v6441_v38 = vld [vmem:[%s7622_s1 + $0x280] ss:$40 sps:$4 sm:$0xff]  }
 0x348   : > { %2522 = vmatprep.subr.bf16.mxu0 %v6389_v39  ;;  %2604 = vmatprep.subr.bf16.mxu1 %v6392_v40  ;;  %v6444_v39 = vld [vmem:[%s7622_s1 + $0x288] ss:$40 sps:$4 sm:$0xff]   ;;  %v6449_v40 = vld [vmem:[%s7622_s1 + $0x2d4] ss:$40 sps:$4 sm:$0xff]  }
 0x34b   : > { %2523 = vmatpush1.bf16.msra.mxu0 %v6387_v41  ;;  %2605 = vmatpush1.bf16.msra.mxu1 %v6390_v42  ;;  %v6452_v41 = vld [vmem:[%s7622_s1 + $0x2dc] ss:$40 sps:$4 sm:$0xff]   ;;  %v6447_v42 = vld [vmem:[%s7622_s1 + $0x2d0] ss:$40 sps:$4 sm:$0xff]  }
 0x34c   : > { %4621 = vmatprep.subr.bf16.mxu0 %v6395_v43  ;;  %4703 = vmatprep.subr.bf16.mxu1 %v6398_v44  ;;  %v6450_v43 = vld [vmem:[%s7622_s1 + $0x2d8] ss:$40 sps:$4 sm:$0xff]   ;;  %v6455_v44 = vld [vmem:[%s7622_s1 + $0x324] ss:$40 sps:$4 sm:$0xff]  }
 0x369   : > { %v1622_v47 = vpop.f32.mrb[8].mxu1 }
 0x36a   : > { %v5824_v48 = vadd.f32 %v1622_v47, %v816_v45  ;;  %v1624_v49 = vpop.f32.mrb[9].mxu1  ;;  %v6458_v45 = vld [vmem:[%s7622_s1 + $0x32c] ss:$40 sps:$4 sm:$0xff]   ;;  %v6456_v47 = vld [vmem:[%s7622_s1 + $0x328] ss:$40 sps:$4 sm:$0xff]  }
 0x36b   : > { %v5825_v58 = vadd.f32 %v1624_v49, %v820_v46  ;;  %v1626_v50 = vpop.f32.mrb[10].mxu1  ;;  %v6453_v46 = vld [vmem:[%s7622_s1 + $0x320] ss:$40 sps:$4 sm:$0xff]   ;;  %v6464_v49 = vld [vmem:[%s7622_s1 + $0x37c] ss:$40 sps:$4 sm:$0xff]  }
 0x36c   : > { %v5363_v51 = vmul.f32 -1.442695, %v5824_v48  ;;  %v1627_v52 = vpop.f32.mrb[11].mxu1  ;;  %v6462_v50 = vld [vmem:[%s7622_s1 + $0x378] ss:$40 sps:$4 sm:$0xff]  }
 0x36d   : > { %v5364_v53 = vmul.f32 -1.442695, %v5825_v58  ;;  %v6470_v52 = vld [vmem:[%s7622_s1 + $0x3cc] ss:$40 sps:$4 sm:$0xff]  }
 0x36e   : > { %6897 = vpow2.f32 %v5363_v51  ;;  %v6467_v51 = vld [vmem:[%s7622_s1 + $0x3c4] ss:$40 sps:$4 sm:$0xff]  }
 0x36f   : > { %6899 = vpow2.f32 %v5364_v53  ;;  %v6465_v53 = vld [vmem:[%s7622_s1 + $0x3c0] ss:$40 sps:$4 sm:$0xff]  }
 0x378   : > { %v6898_v54 = vpop.eup %6897 }
 0x379   : > { %v6900_v55 = vpop.eup %6899  ;;  %v1643_v56 = vadd.f32 1.0, %v6898_v54  ;;  %v6468_v54 = vld [vmem:[%s7622_s1 + $0x3c8] ss:$40 sps:$4 sm:$0xff]  }
 0x37a   : > { %v1644_v57 = vadd.f32 1.0, %v6900_v55  ;;  %v6473_v55 = vld [vmem:[%s7622_s1 + $0x414] ss:$40 sps:$4 sm:$0xff]  }
 0x37b   : > { %6901 = vrcp.f32 %v1643_v56  ;;  %v6476_v56 = vld [vmem:[%s7622_s1 + $0x41c] ss:$40 sps:$4 sm:$0xff]  }
 0x37c   : > { %6903 = vrcp.f32 %v1644_v57  ;;  %v6471_v57 = vld [vmem:[%s7622_s1 + $0x410] ss:$40 sps:$4 sm:$0xff]  }
 0x385   : > { %v6902_v7 = vpop.eup %6901 }
 0x386   : > { %v6904_v59 = vpop.eup %6903  ;;  %v1655_v60 = vmul.f32 %v6902_v7, %v5824_v48  ;;  %v6461_v48 = vld [vmem:[%s7622_s1 + $0x374] ss:$40 sps:$4 sm:$0xff]   ;;  %v6474_v7 = vld [vmem:[%s7622_s1 + $0x418] ss:$40 sps:$4 sm:$0xff]  }
 0x387   : > { %v1656_v61 = vmul.f32 %v6904_v59, %v5825_v58  ;;  %v6459_v58 = vld [vmem:[%s7622_s1 + $0x370] ss:$40 sps:$4 sm:$0xff]   ;;  %v6479_v59 = vld [vmem:[%s7622_s1 + $0x464] ss:$40 sps:$4 sm:$0xff]  }
 0x388   : > { %v1659_v1 = vpack.c.bf16 %v1655_v60, %v1655_v60  ;;  %v6482_v60 = vld [vmem:[%s7622_s1 + $0x46c] ss:$40 sps:$4 sm:$0xff]  }
 0x389   : > { %v1660_v62 = vpack.c.bf16 %v1656_v61, %v1656_v61  ;;  %v6477_v61 = vld [vmem:[%s7622_s1 + $0x460] ss:$40 sps:$4 sm:$0xff]  }
 0x38b   : > { %2524 = vmatprep.mubr.bf16.mxu0 %v1660_v62  ;;  %2606 = vmatprep.mubr.bf16.mxu1 %v1660_v62  ;;  %v6480_v62 = vld [vmem:[%s7622_s1 + $0x468] ss:$40 sps:$4 sm:$0xff]  }
 0x38c   : > { %2525 = vmatmul.mubr.bf16.vlgmr.msra.gmra.mrb[8].mxu0 %v1659_v1  ;;  %2607 = vmatmul.mubr.bf16.vlgmr.msra.gmra.mrb[12].mxu1 %v1659_v1  ;;  %v6483_v1 = vld [vmem:[%s7622_s1 + $0x4b0] ss:$40 sps:$4 sm:$0xff]  }
 0x38d   : > { %4622 = vmatpush1.bf16.msra.mxu0 %v6393_v63  ;;  %4704 = vmatpush1.bf16.msra.mxu1 %v6396_v0  ;;  %v6485_v63 = vld [vmem:[%s7622_s1 + $0x4b4] ss:$40 sps:$4 sm:$0xff]  }
 0x38e   : > { %4623 = vmatprep.subr.bf16.mxu0 %v6401_v2  ;;  %4705 = vmatprep.subr.bf16.mxu1 %v6404_v3  ;;  %v6488_v0 = vld [vmem:[%s7622_s1 + $0x4bc] ss:$40 sps:$4 sm:$0xff]   ;;  %v6486_v2 = vld [vmem:[%s7622_s1 + $0x4b8] ss:$40 sps:$4 sm:$0xff]  }
 0x38f   : > { %v6491_v3 = vld [vmem:[%s7622_s1 + $0x504] ss:$40 sps:$4 sm:$0xff]  }
 0x391   : > { %4624 = vmatpush1.bf16.msra.mxu0 %v6399_v4  ;;  %4706 = vmatpush1.bf16.msra.mxu1 %v6402_v5  ;;  %v6494_v4 = vld [vmem:[%s7622_s1 + $0x50c] ss:$40 sps:$4 sm:$0xff]   ;;  %v7734_v5 = vld [vmem:[#allocation12] sm:$0xf] }
 0x392   : > { %4625 = vmatprep.subr.bf16.mxu0 %v6407_v6  ;;  %4707 = vmatprep.subr.bf16.mxu1 %v6410_v8  ;;  %v1794_v6 = vrot.slane %v7734_v5, %v7631_v15  ;;  %v1798_v8 = vrot.slane %v7734_v5, %v7634_v16 }
 0x395   : > { %4626 = vmatpush1.bf16.msra.mxu0 %v6405_v9  ;;  %4708 = vmatpush1.bf16.msra.mxu1 %v6408_v10  ;;  %v1806_v9 = vrot.slane %v7734_v5, %v7640_v18 }
 0x396   : > { %4627 = vmatprep.subr.bf16.mxu0 %v6413_v11  ;;  %4709 = vmatprep.subr.bf16.mxu1 %v6416_v12 }
 0x399   : > { %4628 = vmatpush1.bf16.msra.mxu0 %v6411_v14  ;;  %4710 = vmatpush1.bf16.msra.mxu1 %v6414_v19 }
 0x39a   : > { %4629 = vmatprep.subr.bf16.mxu0 %v6419_v20  ;;  %4711 = vmatprep.subr.bf16.mxu1 %v6422_v21 }
 0x39d   : > { %4630 = vmatpush1.bf16.msra.mxu0 %v6417_v22  ;;  %4712 = vmatpush1.bf16.msra.mxu1 %v6420_v23 }
 0x39e   : > { %4631 = vmatprep.subr.bf16.mxu0 %v6425_v24  ;;  %4713 = vmatprep.subr.bf16.mxu1 %v6428_v25 }
 0x3a1   : > { %4632 = vmatpush1.bf16.msra.mxu0 %v6423_v26  ;;  %4714 = vmatpush1.bf16.msra.mxu1 %v6426_v27 }
 0x3a2   : > { %4633 = vmatprep.subr.bf16.mxu0 %v6431_v28  ;;  %4715 = vmatprep.subr.bf16.mxu1 %v6434_v29 }
 0x3a5   : > { %4634 = vmatpush1.bf16.msra.mxu0 %v6429_v30  ;;  %4716 = vmatpush1.bf16.msra.mxu1 %v6432_v31 }
 0x3a6   : > { %4635 = vmatprep.subr.bf16.mxu0 %v6437_v32  ;;  %4717 = vmatprep.subr.bf16.mxu1 %v6440_v33 }
 0x3a9   : > { %4636 = vmatpush1.bf16.msra.mxu0 %v6435_v34  ;;  %4718 = vmatpush1.bf16.msra.mxu1 %v6438_v35 }
 0x3aa   : > { %4637 = vmatprep.subr.bf16.mxu0 %v6443_v36  ;;  %4719 = vmatprep.subr.bf16.mxu1 %v6446_v37 }
 0x3ad   : > { %4638 = vmatpush1.bf16.msra.mxu0 %v6441_v38  ;;  %4720 = vmatpush1.bf16.msra.mxu1 %v6444_v39 }
 0x3ae   : > { %4639 = vmatprep.subr.bf16.mxu0 %v6449_v40  ;;  %4721 = vmatprep.subr.bf16.mxu1 %v6452_v41 }
 0x3b1   : > { %4640 = vmatpush1.bf16.msra.mxu0 %v6447_v42  ;;  %4722 = vmatpush1.bf16.msra.mxu1 %v6450_v43  ;;  %v6489_v42 = vld [vmem:[%s7622_s1 + $0x500] ss:$40 sps:$4 sm:$0xff]  }
 0x3b2   : > { %4641 = vmatprep.subr.bf16.mxu0 %v6455_v44  ;;  %4723 = vmatprep.subr.bf16.mxu1 %v6458_v45  ;;  %v6492_v43 = vld [vmem:[%s7622_s1 + $0x508] ss:$40 sps:$4 sm:$0xff]   ;;  %v6497_v45 = vld [vmem:[%s7622_s1 + $0x554] ss:$40 sps:$4 sm:$0xff]  }
 0x3b5   : > { %4642 = vmatpush1.bf16.msra.mxu0 %v6453_v46  ;;  %4724 = vmatpush1.bf16.msra.mxu1 %v6456_v47  ;;  %v6500_v46 = vld [vmem:[%s7622_s1 + $0x55c] ss:$40 sps:$4 sm:$0xff]  }
 0x3b6   : > { %4643 = vmatprep.subr.bf16.mxu0 %v6461_v48  ;;  %4725 = vmatprep.subr.bf16.mxu1 %v6464_v49  ;;  %v6495_v48 = vld [vmem:[%s7622_s1 + $0x550] ss:$40 sps:$4 sm:$0xff]  }
 0x3b7   : > { %v6498_v49 = vld [vmem:[%s7622_s1 + $0x558] ss:$40 sps:$4 sm:$0xff]  }
 0x3b9   : > { %4644 = vmatpush1.bf16.msra.mxu0 %v6459_v58  ;;  %4726 = vmatpush1.bf16.msra.mxu1 %v6462_v50  ;;  %v6503_v58 = vld [vmem:[%s7622_s1 + $0x5a4] ss:$40 sps:$4 sm:$0xff]  }
 0x3ba   : > { %4645 = vmatprep.subr.bf16.mxu0 %v6467_v51  ;;  %4727 = vmatprep.subr.bf16.mxu1 %v6470_v52  ;;  %v6506_v50 = vld [vmem:[%s7622_s1 + $0x5ac] ss:$40 sps:$4 sm:$0xff]   ;;  %v6501_v51 = vld [vmem:[%s7622_s1 + $0x5a0] ss:$40 sps:$4 sm:$0xff]  }
 0x3bb   : > { %v6504_v52 = vld [vmem:[%s7622_s1 + $0x5a8] ss:$40 sps:$4 sm:$0xff]  }
 0x3bd   : > { %4646 = vmatpush1.bf16.msra.mxu0 %v6465_v53  ;;  %4728 = vmatpush1.bf16.msra.mxu1 %v6468_v54  ;;  %v6509_v53 = vld [vmem:[%s7622_s1 + $0x5f4] ss:$40 sps:$4 sm:$0xff]  }
 0x3be   : > { %4647 = vmatprep.subr.bf16.mxu0 %v6473_v55  ;;  %4729 = vmatprep.subr.bf16.mxu1 %v6476_v56  ;;  %v6512_v54 = vld [vmem:[%s7622_s1 + $0x5fc] ss:$40 sps:$4 sm:$0xff]   ;;  %v6507_v55 = vld [vmem:[%s7622_s1 + $0x5f0] ss:$40 sps:$4 sm:$0xff]  }
 0x3bf   : > { %v6510_v56 = vld [vmem:[%s7622_s1 + $0x5f8] ss:$40 sps:$4 sm:$0xff]  }
 0x3c1   : > { %4648 = vmatpush1.bf16.msra.mxu0 %v6471_v57  ;;  %4730 = vmatpush1.bf16.msra.mxu1 %v6474_v7  ;;  %v6515_v57 = vld [vmem:[%s7622_s1 + $0x644] ss:$40 sps:$4 sm:$0xff]  }
 0x3c2   : > { %4649 = vmatprep.subr.bf16.mxu0 %v6479_v59  ;;  %4731 = vmatprep.subr.bf16.mxu1 %v6482_v60  ;;  %v6518_v7 = vld [vmem:[%s7622_s1 + $0x64c] ss:$40 sps:$4 sm:$0xff]   ;;  %v6513_v59 = vld [vmem:[%s7622_s1 + $0x640] ss:$40 sps:$4 sm:$0xff]  }
 0x3c3   : > { %v6516_v60 = vld [vmem:[%s7622_s1 + $0x648] ss:$40 sps:$4 sm:$0xff]  }
 0x3c5   : > { %4650 = vmatpush1.bf16.msra.mxu0 %v6477_v61  ;;  %4732 = vmatpush1.bf16.msra.mxu1 %v6480_v62  ;;  %v6521_v61 = vld [vmem:[%s7622_s1 + $0x694] ss:$40 sps:$4 sm:$0xff]  }
 0x3c6   : > { %4651 = vmatprep.subr.bf16.mxu0 %v6485_v63  ;;  %4733 = vmatprep.subr.bf16.mxu1 %v6488_v0  ;;  %v6524_v62 = vld [vmem:[%s7622_s1 + $0x69c] ss:$40 sps:$4 sm:$0xff]   ;;  %v1802_v63 = vrot.slane %v7734_v5, %v7637_v17  ;;  %v6519_v0 = vld [vmem:[%s7622_s1 + $0x690] ss:$40 sps:$4 sm:$0xff]   ;;  %v6525_v5 = vld [vmem:[%s7622_s1 + $0x6e0] ss:$40 sps:$4 sm:$0xff]  }
 0x3c9   : > { %4652 = vmatpush1.bf16.msra.mxu0 %v6483_v1  ;;  %4734 = vmatpush1.bf16.msra.mxu1 %v6486_v2  ;;  %v6522_v1 = vld [vmem:[%s7622_s1 + $0x698] ss:$40 sps:$4 sm:$0xff]   ;;  %v6527_v2 = vld [vmem:[%s7622_s1 + $0x6e4] ss:$40 sps:$4 sm:$0xff]  }
 0x3ca   : > { %4662 = vmatprep.subr.bf16.mxu0 %v6491_v3  ;;  %4744 = vmatprep.subr.bf16.mxu1 %v6494_v4  ;;  %v6530_v3 = vld [vmem:[%s7622_s1 + $0x6ec] ss:$40 sps:$4 sm:$0xff]  }
 0x45f   : > { %v2526_v10 = vpop.f32.mrb[8].mxu0  ;;  %v7742_v11 = vpop.f32.mrb[12].mxu1 }
 0x460   : > { %v5826_v12 = vadd.f32 %v2526_v10, %v1794_v6  ;;  %v2528_v14 = vpop.f32.mrb[9].mxu0  ;;  %v2610_v19 = vpop.f32.mrb[13].mxu1  ;;  %v7783_v4 = vadd.f32 %v7742_v11, %v1802_v63  ;;  %v6528_v6 = vld [vmem:[%s7622_s1 + $0x6e8] ss:$40 sps:$4 sm:$0xff]  }
 0x461   : > { %v5827_v20 = vadd.f32 %v2528_v14, %v1798_v8  ;;  %v5829_v21 = vadd.f32 %v2610_v19, %v1806_v9  ;;  %v2530_v22 = vpop.f32.mrb[10].mxu0  ;;  %v2612_v23 = vpop.f32.mrb[14].mxu1  ;;  %v6533_v8 = vld [vmem:[%s7622_s1 + $0x734] ss:$40 sps:$4 sm:$0xff]   ;;  %v6531_v11 = vld [vmem:[%s7622_s1 + $0x730] ss:$40 sps:$4 sm:$0xff]  }
 0x462   : > { %v5493_v24 = vmul.f32 -1.442695, %v5826_v12  ;;  %v2531_v25 = vpop.f32.mrb[11].mxu0  ;;  %v2613_v26 = vpop.f32.mrb[15].mxu1  ;;  %v6536_v9 = vld [vmem:[%s7622_s1 + $0x73c] ss:$40 sps:$4 sm:$0xff]  }
 0x463   : > { %v5494_v27 = vmul.f32 -1.442695, %v5827_v20  ;;  %v5496_v28 = vmul.f32 -1.442695, %v5829_v21  ;;  %v5495_v10 = vmul.f32 -1.442695, %v7783_v4 }
 0x464   : > { %6905 = vpow2.f32 %v5493_v24  ;;  %v6539_v14 = vld [vmem:[%s7622_s1 + $0x784] ss:$40 sps:$4 sm:$0xff]   ;;  %v6545_v22 = vld [vmem:[%s7622_s1 + $0x7d4] ss:$40 sps:$4 sm:$0xff]   ;;  %v6543_v24 = vld [vmem:[%s7622_s1 + $0x7d0] ss:$40 sps:$4 sm:$0xff]  }
 0x465   : > { %6907 = vpow2.f32 %v5494_v27  ;;  %v6542_v19 = vld [vmem:[%s7622_s1 + $0x78c] ss:$40 sps:$4 sm:$0xff]   ;;  %v6548_v23 = vld [vmem:[%s7622_s1 + $0x7dc] ss:$40 sps:$4 sm:$0xff]   ;;  %v6546_v25 = vld [vmem:[%s7622_s1 + $0x7d8] ss:$40 sps:$4 sm:$0xff]  }
 0x466   : > { %6909 = vpow2.f32 %v5496_v28  ;;  %v6551_v26 = vld [vmem:[%s7622_s1 + $0x824] ss:$40 sps:$4 sm:$0xff]   ;;  %v6549_v28 = vld [vmem:[%s7622_s1 + $0x820] ss:$40 sps:$4 sm:$0xff]  }
 0x467   : > { %v6554_v27 = vld [vmem:[%s7622_s1 + $0x82c] ss:$40 sps:$4 sm:$0xff]   ;;  %v6591_v63 = vld [vmem:[%s7622_s1 + $0x60] ss:$40 sps:$4 sm:$0xff]  }
 0x46e   : > { %v6906_v29 = vpop.eup %6905 }
 0x46f   : > { %v2627_v30 = vadd.f32 1.0, %v6906_v29  ;;  %v6908_v31 = vpop.eup %6907  ;;  %v6552_v29 = vld [vmem:[%s7622_s1 + $0x828] ss:$40 sps:$4 sm:$0xff]  }
 0x470   : > { %v6910_v32 = vpop.eup %6909  ;;  %v2628_v33 = vadd.f32 1.0, %v6908_v31  ;;  %v6557_v31 = vld [vmem:[%s7622_s1 + $0x874] ss:$40 sps:$4 sm:$0xff]  }
 0x471   : > { %6911 = vrcp.f32 %v2627_v30  ;;  %v2630_v34 = vadd.f32 1.0, %v6910_v32  ;;  %v6560_v32 = vld [vmem:[%s7622_s1 + $0x87c] ss:$40 sps:$4 sm:$0xff]  }
 0x472   : > { %6913 = vrcp.f32 %v2628_v33 }
 0x473   : > { %6915 = vrcp.f32 %v2630_v34  ;;  %v6555_v34 = vld [vmem:[%s7622_s1 + $0x870] ss:$40 sps:$4 sm:$0xff]  }
 0x474   : > { %6917 = vpow2.f32 %v5495_v10  ;;  %v6611_v10 = vld [vmem:[%s7622_s1 + $0x154] ss:$40 sps:$4 sm:$0xff]  }
 0x47b   : > { %v6912_v35 = vpop.eup %6911 }
 0x47c   : > { %v6914_v36 = vpop.eup %6913  ;;  %v2639_v37 = vmul.f32 %v6912_v35, %v5826_v12  ;;  %v6534_v12 = vld [vmem:[%s7622_s1 + $0x738] ss:$40 sps:$4 sm:$0xff]  }
 0x47d   : > { %v6916_v38 = vpop.eup %6915  ;;  %v2640_v39 = vmul.f32 %v6914_v36, %v5827_v20  ;;  %v6537_v20 = vld [vmem:[%s7622_s1 + $0x780] ss:$40 sps:$4 sm:$0xff]   ;;  %v6563_v36 = vld [vmem:[%s7622_s1 + $0x8c4] ss:$40 sps:$4 sm:$0xff]  }
 0x47e   : > { %v2642_v40 = vmul.f32 %v6916_v38, %v5829_v21  ;;  %v7748_v44 = vpack.c.bf16 %v2639_v37, %v2639_v37  ;;  %v6540_v21 = vld [vmem:[%s7622_s1 + $0x788] ss:$40 sps:$4 sm:$0xff]   ;;  %v6918_v30 = vpop.eup %6917  ;;  %v6558_v35 = vld [vmem:[%s7622_s1 + $0x878] ss:$40 sps:$4 sm:$0xff]   ;;  %v6566_v37 = vld [vmem:[%s7622_s1 + $0x8cc] ss:$40 sps:$4 sm:$0xff]  }
 0x47f   : > { %v7744_v41 = vpack.c.bf16 %v2640_v39, %v2640_v39  ;;  %v2629_v33 = vadd.f32 1.0, %v6918_v30  ;;  %v6561_v38 = vld [vmem:[%s7622_s1 + $0x8c0] ss:$40 sps:$4 sm:$0xff]  }
 0x480   : > { %v7754_v47 = vpack.c.bf16 %v2642_v40, %v2642_v40  ;;  %v6564_v39 = vld [vmem:[%s7622_s1 + $0x8c8] ss:$40 sps:$4 sm:$0xff]   ;;  %v6569_v40 = vld [vmem:[%s7622_s1 + $0x914] ss:$40 sps:$4 sm:$0xff]  }
 0x481   : > { %4653 = vmatprep.mubr.bf16.mxu0 %v7744_v41  ;;  %4735 = vmatprep.mubr.bf16.mxu1 %v7744_v41  ;;  %6919 = vrcp.f32 %v2629_v33  ;;  %v6630_v30 = vld [vmem:[%s7622_s1 + $0x248] ss:$40 sps:$4 sm:$0xff]  }
 0x482   : > { %4654 = vmatmul.mubr.bf16.vlgmr.msra.gmra.mrb[12].mxu0 %v7748_v44  ;;  %4736 = vmatmul.mubr.bf16.vlgmr.msra.gmra.mrb[16].mxu1 %v7748_v44  ;;  %v6633_v33 = vld [vmem:[%s7622_s1 + $0x290] ss:$40 sps:$4 sm:$0xff]  }
 0x483   : > { %4663 = vmatpush1.bf16.msra.mxu0 %v6489_v42  ;;  %4745 = vmatpush1.bf16.msra.mxu1 %v6492_v43  ;;  %v6572_v42 = vld [vmem:[%s7622_s1 + $0x91c] ss:$40 sps:$4 sm:$0xff]   ;;  %v6567_v43 = vld [vmem:[%s7622_s1 + $0x910] ss:$40 sps:$4 sm:$0xff]  }
 0x484   : > { %4694 = vmatprep.mubr.bf16.mxu0 %v7754_v47  ;;  %4776 = vmatprep.mubr.bf16.mxu1 %v7754_v47 }
 0x485   : > { %4664 = vmatprep.subr.bf16.mxu0 %v6497_v45  ;;  %4746 = vmatprep.subr.bf16.mxu1 %v6500_v46  ;;  %v6570_v45 = vld [vmem:[%s7622_s1 + $0x918] ss:$40 sps:$4 sm:$0xff]   ;;  %v6575_v46 = vld [vmem:[%s7622_s1 + $0x964] ss:$40 sps:$4 sm:$0xff]  }
 0x487   : > { %4665 = vmatpush1.bf16.msra.mxu0 %v6495_v48  ;;  %4747 = vmatpush1.bf16.msra.mxu1 %v6498_v49  ;;  %v6578_v48 = vld [vmem:[%s7622_s1 + $0x96c] ss:$40 sps:$4 sm:$0xff]   ;;  %v6573_v49 = vld [vmem:[%s7622_s1 + $0x960] ss:$40 sps:$4 sm:$0xff]  }
 0x488   : > { %4666 = vmatprep.subr.bf16.mxu0 %v6503_v58  ;;  %4748 = vmatprep.subr.bf16.mxu1 %v6506_v50  ;;  %v6576_v58 = vld [vmem:[%s7622_s1 + $0x968] ss:$40 sps:$4 sm:$0xff]   ;;  %v6581_v50 = vld [vmem:[%s7622_s1 + $0x9b4] ss:$40 sps:$4 sm:$0xff]  }
 0x48b   : > { %4667 = vmatpush1.bf16.msra.mxu0 %v6501_v51  ;;  %4749 = vmatpush1.bf16.msra.mxu1 %v6504_v52  ;;  %v6584_v51 = vld [vmem:[%s7622_s1 + $0x9bc] ss:$40 sps:$4 sm:$0xff]   ;;  %v6920_v52 = vpop.eup %6919 }
 0x48c   : > { %4668 = vmatprep.subr.bf16.mxu0 %v6509_v53  ;;  %4750 = vmatprep.subr.bf16.mxu1 %v6512_v54  ;;  %v6579_v53 = vld [vmem:[%s7622_s1 + $0x9b0] ss:$40 sps:$4 sm:$0xff]  }
 0x48d   : > { %v6582_v54 = vld [vmem:[%s7622_s1 + $0x9b8] ss:$40 sps:$4 sm:$0xff]  }
 0x48f   : > { %4669 = vmatpush1.bf16.msra.mxu0 %v6507_v55  ;;  %4751 = vmatpush1.bf16.msra.mxu1 %v6510_v56  ;;  %v2641_v55 = vmul.f32 %v6920_v52, %v7783_v4  ;;  %v6587_v56 = vld [vmem:[%s7622_s1 + $0x14] ss:$40 sps:$4 sm:$0xff]   ;;  %v6600_v4 = vld [vmem:[%s7622_s1 + $0xb8] ss:$40 sps:$4 sm:$0xff]  }
 0x490   : > { %4670 = vmatprep.subr.bf16.mxu0 %v6515_v57  ;;  %4752 = vmatprep.subr.bf16.mxu1 %v6518_v7  ;;  %v6590_v57 = vld [vmem:[%s7622_s1 + $0x1c] ss:$40 sps:$4 sm:$0xff]   ;;  %v6585_v7 = vld [vmem:[%s7622_s1 + $0x10] ss:$40 sps:$4 sm:$0xff]  }
 0x491   : > { %v6660_v52 = vld [vmem:[%s7622_s1 + $0x3d8] ss:$40 sps:$4 sm:$0xff]  }
 0x493   : > { %4671 = vmatpush1.bf16.msra.mxu0 %v6513_v59  ;;  %4753 = vmatpush1.bf16.msra.mxu1 %v6516_v60  ;;  %v7828_v59 = vpack.c.bf16 %v2641_v55, %v2641_v55  ;;  %v6588_v60 = vld [vmem:[%s7622_s1 + $0x18] ss:$40 sps:$4 sm:$0xff]  }
 0x494   : > { %4672 = vmatprep.subr.bf16.mxu0 %v6521_v61  ;;  %4754 = vmatprep.subr.bf16.mxu1 %v6524_v62  ;;  %v6593_v61 = vld [vmem:[%s7622_s1 + $0x64] ss:$40 sps:$4 sm:$0xff]   ;;  %v6663_v55 = vld [vmem:[%s7622_s1 + $0x420] ss:$40 sps:$4 sm:$0xff]  }
 0x495   : > { %v6596_v62 = vld [vmem:[%s7622_s1 + $0x6c] ss:$40 sps:$4 sm:$0xff]  }
 0x497   : > { %4673 = vmatpush1.bf16.msra.mxu0 %v6519_v0  ;;  %4755 = vmatpush1.bf16.msra.mxu1 %v6522_v1  ;;  %v6594_v0 = vld [vmem:[%s7622_s1 + $0x68] ss:$40 sps:$4 sm:$0xff]   ;;  %v6599_v1 = vld [vmem:[%s7622_s1 + $0xb4] ss:$40 sps:$4 sm:$0xff]  }
 0x498   : > { %4674 = vmatprep.subr.bf16.mxu0 %v6527_v2  ;;  %4756 = vmatprep.subr.bf16.mxu1 %v6530_v3  ;;  %v6602_v2 = vld [vmem:[%s7622_s1 + $0xbc] ss:$40 sps:$4 sm:$0xff]   ;;  %v6597_v3 = vld [vmem:[%s7622_s1 + $0xb0] ss:$40 sps:$4 sm:$0xff]  }
 0x49b   : > { %4675 = vmatpush1.bf16.msra.mxu0 %v6525_v5  ;;  %4757 = vmatpush1.bf16.msra.mxu1 %v6528_v6  ;;  %v6605_v5 = vld [vmem:[%s7622_s1 + $0x104] ss:$40 sps:$4 sm:$0xff]  }
 0x49c   : > { %4676 = vmatprep.subr.bf16.mxu0 %v6533_v8  ;;  %4758 = vmatprep.subr.bf16.mxu1 %v6536_v9  ;;  %v6608_v6 = vld [vmem:[%s7622_s1 + $0x10c] ss:$40 sps:$4 sm:$0xff]   ;;  %v6603_v8 = vld [vmem:[%s7622_s1 + $0x100] ss:$40 sps:$4 sm:$0xff]  }
 0x49d   : > { %v6606_v9 = vld [vmem:[%s7622_s1 + $0x108] ss:$40 sps:$4 sm:$0xff]  }
 0x49f   : > { %4677 = vmatpush1.bf16.msra.mxu0 %v6531_v11  ;;  %4759 = vmatpush1.bf16.msra.mxu1 %v6534_v12  ;;  %v6614_v11 = vld [vmem:[%s7622_s1 + $0x15c] ss:$40 sps:$4 sm:$0xff]   ;;  %v6609_v12 = vld [vmem:[%s7622_s1 + $0x150] ss:$40 sps:$4 sm:$0xff]  }
 0x4a0   : > { %4678 = vmatprep.subr.bf16.mxu0 %v6539_v14  ;;  %4760 = vmatprep.subr.bf16.mxu1 %v6542_v19  ;;  %v6612_v14 = vld [vmem:[%s7622_s1 + $0x158] ss:$40 sps:$4 sm:$0xff]   ;;  %v6617_v19 = vld [vmem:[%s7622_s1 + $0x1a4] ss:$40 sps:$4 sm:$0xff]  }
 0x4a3   : > { %4679 = vmatpush1.bf16.msra.mxu0 %v6537_v20  ;;  %4761 = vmatpush1.bf16.msra.mxu1 %v6540_v21  ;;  %v6620_v20 = vld [vmem:[%s7622_s1 + $0x1ac] ss:$40 sps:$4 sm:$0xff]   ;;  %v6615_v21 = vld [vmem:[%s7622_s1 + $0x1a0] ss:$40 sps:$4 sm:$0xff]  }
 0x4a4   : > { %4680 = vmatprep.subr.bf16.mxu0 %v6545_v22  ;;  %4762 = vmatprep.subr.bf16.mxu1 %v6548_v23  ;;  %v6618_v22 = vld [vmem:[%s7622_s1 + $0x1a8] ss:$40 sps:$4 sm:$0xff]   ;;  %v6623_v23 = vld [vmem:[%s7622_s1 + $0x1f4] ss:$40 sps:$4 sm:$0xff]  }
 0x4a7   : > { %4681 = vmatpush1.bf16.msra.mxu0 %v6543_v24  ;;  %4763 = vmatpush1.bf16.msra.mxu1 %v6546_v25  ;;  %v6626_v24 = vld [vmem:[%s7622_s1 + $0x1fc] ss:$40 sps:$4 sm:$0xff]   ;;  %v6621_v25 = vld [vmem:[%s7622_s1 + $0x1f0] ss:$40 sps:$4 sm:$0xff]  }
 0x4a8   : > { %4682 = vmatprep.subr.bf16.mxu0 %v6551_v26  ;;  %4764 = vmatprep.subr.bf16.mxu1 %v6554_v27  ;;  %v6624_v26 = vld [vmem:[%s7622_s1 + $0x1f8] ss:$40 sps:$4 sm:$0xff]   ;;  %v6629_v27 = vld [vmem:[%s7622_s1 + $0x244] ss:$40 sps:$4 sm:$0xff]  }
 0x4ab   : > { %4683 = vmatpush1.bf16.msra.mxu0 %v6549_v28  ;;  %4765 = vmatpush1.bf16.msra.mxu1 %v6552_v29  ;;  %v6632_v28 = vld [vmem:[%s7622_s1 + $0x24c] ss:$40 sps:$4 sm:$0xff]   ;;  %v6627_v29 = vld [vmem:[%s7622_s1 + $0x240] ss:$40 sps:$4 sm:$0xff]  }
 0x4ac   : > { %4684 = vmatprep.subr.bf16.mxu0 %v6557_v31  ;;  %4766 = vmatprep.subr.bf16.mxu1 %v6560_v32  ;;  %v6635_v31 = vld [vmem:[%s7622_s1 + $0x294] ss:$40 sps:$4 sm:$0xff]  }
 0x4ad   : > { %v6638_v32 = vld [vmem:[%s7622_s1 + $0x29c] ss:$40 sps:$4 sm:$0xff]  }
 0x4af   : > { %4685 = vmatpush1.bf16.msra.mxu0 %v6555_v34  ;;  %4767 = vmatpush1.bf16.msra.mxu1 %v6558_v35  ;;  %v6636_v34 = vld [vmem:[%s7622_s1 + $0x298] ss:$40 sps:$4 sm:$0xff]   ;;  %v6641_v35 = vld [vmem:[%s7622_s1 + $0x2e4] ss:$40 sps:$4 sm:$0xff]  }
 0x4b0   : > { %4686 = vmatprep.subr.bf16.mxu0 %v6563_v36  ;;  %4768 = vmatprep.subr.bf16.mxu1 %v6566_v37  ;;  %v6644_v36 = vld [vmem:[%s7622_s1 + $0x2ec] ss:$40 sps:$4 sm:$0xff]   ;;  %v6639_v37 = vld [vmem:[%s7622_s1 + $0x2e0] ss:$40 sps:$4 sm:$0xff]  }
 0x4b3   : > { %4687 = vmatpush1.bf16.msra.mxu0 %v6561_v38  ;;  %4769 = vmatpush1.bf16.msra.mxu1 %v6564_v39  ;;  %v6642_v38 = vld [vmem:[%s7622_s1 + $0x2e8] ss:$40 sps:$4 sm:$0xff]   ;;  %v6647_v39 = vld [vmem:[%s7622_s1 + $0x334] ss:$40 sps:$4 sm:$0xff]  }
 0x4b4   : > { %4688 = vmatprep.subr.bf16.mxu0 %v6569_v40  ;;  %4770 = vmatprep.subr.bf16.mxu1 %v6572_v42  ;;  %v6650_v40 = vld [vmem:[%s7622_s1 + $0x33c] ss:$40 sps:$4 sm:$0xff]   ;;  %v6645_v42 = vld [vmem:[%s7622_s1 + $0x330] ss:$40 sps:$4 sm:$0xff]  }
 0x4b7   : > { %4689 = vmatpush1.bf16.msra.mxu0 %v6567_v43  ;;  %4771 = vmatpush1.bf16.msra.mxu1 %v6570_v45  ;;  %v6648_v43 = vld [vmem:[%s7622_s1 + $0x338] ss:$40 sps:$4 sm:$0xff]   ;;  %v6653_v45 = vld [vmem:[%s7622_s1 + $0x384] ss:$40 sps:$4 sm:$0xff]  }
 0x4b8   : > { %4690 = vmatprep.subr.bf16.mxu0 %v6575_v46  ;;  %4772 = vmatprep.subr.bf16.mxu1 %v6578_v48  ;;  %v6656_v46 = vld [vmem:[%s7622_s1 + $0x38c] ss:$40 sps:$4 sm:$0xff]   ;;  %v6651_v48 = vld [vmem:[%s7622_s1 + $0x380] ss:$40 sps:$4 sm:$0xff]  }
 0x4bb   : > { %4691 = vmatpush1.bf16.msra.mxu0 %v6573_v49  ;;  %4773 = vmatpush1.bf16.msra.mxu1 %v6576_v58  ;;  %v6654_v49 = vld [vmem:[%s7622_s1 + $0x388] ss:$40 sps:$4 sm:$0xff]   ;;  %v6659_v58 = vld [vmem:[%s7622_s1 + $0x3d4] ss:$40 sps:$4 sm:$0xff]  }
 0x4bc   : > { %4692 = vmatprep.subr.bf16.mxu0 %v6581_v50  ;;  %4774 = vmatprep.subr.bf16.mxu1 %v6584_v51  ;;  %v6662_v50 = vld [vmem:[%s7622_s1 + $0x3dc] ss:$40 sps:$4 sm:$0xff]   ;;  %v6657_v51 = vld [vmem:[%s7622_s1 + $0x3d0] ss:$40 sps:$4 sm:$0xff]  }
 0x4bf   : > { %4693 = vmatpush1.bf16.msra.mxu0 %v6579_v53  ;;  %4775 = vmatpush1.bf16.msra.mxu1 %v6582_v54  ;;  %v6665_v53 = vld [vmem:[%s7622_s1 + $0x424] ss:$40 sps:$4 sm:$0xff]  }
 0x4c0   : > { %4785 = vmatprep.subr.bf16.mxu0 %v6587_v56  ;;  %4867 = vmatprep.subr.bf16.mxu1 %v6590_v57  ;;  %v6668_v54 = vld [vmem:[%s7622_s1 + $0x42c] ss:$40 sps:$4 sm:$0xff]   ;;  %v6666_v56 = vld [vmem:[%s7622_s1 + $0x428] ss:$40 sps:$4 sm:$0xff]  }
 0x4c1   : > { %v6671_v57 = vld [vmem:[%s7622_s1 + $0x474] ss:$40 sps:$4 sm:$0xff]  }
 0x4c2   : > { %4695 = vmatmul.mubr.bf16.vlgmr.msra.gmra.mrb[12].mxu0 %v7828_v59  ;;  %4777 = vmatmul.mubr.bf16.vlgmr.msra.gmra.mrb[16].mxu1 %v7828_v59 }
 0x4c3   : > { %4786 = vmatpush1.bf16.msra.mxu0 %v6585_v7  ;;  %4817 = vmatprep.mubr.bf16.mxu0 %v7744_v41  ;;  %v6674_v7 = vld [vmem:[%s7622_s1 + $0x47c] ss:$40 sps:$4 sm:$0xff]  }
 0x4c4   : > { %4868 = vmatpush1.bf16.msra.mxu1 %v6588_v60  ;;  %4899 = vmatprep.mubr.bf16.mxu1 %v7744_v41  ;;  %v6669_v60 = vld [vmem:[%s7622_s1 + $0x470] ss:$40 sps:$4 sm:$0xff]  }
 0x4c5   : > { %4787 = vmatprep.subr.bf16.mxu0 %v6593_v61  ;;  %4869 = vmatprep.subr.bf16.mxu1 %v6596_v62  ;;  %v6672_v61 = vld [vmem:[%s7622_s1 + $0x478] ss:$40 sps:$4 sm:$0xff]   ;;  %v6677_v62 = vld [vmem:[%s7622_s1 + $0x4c4] ss:$40 sps:$4 sm:$0xff]  }
 0x4c7   : > { %4788 = vmatpush1.bf16.msra.mxu0 %v6591_v63  ;;  %v6680_v63 = vld [vmem:[%s7622_s1 + $0x4cc] ss:$40 sps:$4 sm:$0xff]  }
 0x4c8   : > { %4870 = vmatpush1.bf16.msra.mxu1 %v6594_v0  ;;  %4789 = vmatprep.subr.bf16.mxu0 %v6599_v1  ;;  %v6675_v0 = vld [vmem:[%s7622_s1 + $0x4c0] ss:$40 sps:$4 sm:$0xff]  }
 0x4c9   : > { %4871 = vmatprep.subr.bf16.mxu1 %v6602_v2  ;;  %v6678_v1 = vld [vmem:[%s7622_s1 + $0x4c8] ss:$40 sps:$4 sm:$0xff]   ;;  %v6683_v2 = vld [vmem:[%s7622_s1 + $0x514] ss:$40 sps:$4 sm:$0xff]  }
 0x4cb   : > { %4790 = vmatpush1.bf16.msra.mxu0 %v6597_v3  ;;  %v6686_v3 = vld [vmem:[%s7622_s1 + $0x51c] ss:$40 sps:$4 sm:$0xff]  }
 0x4cc   : > { %4872 = vmatpush1.bf16.msra.mxu1 %v6600_v4  ;;  %4791 = vmatprep.subr.bf16.mxu0 %v6605_v5  ;;  %v6681_v4 = vld [vmem:[%s7622_s1 + $0x510] ss:$40 sps:$4 sm:$0xff]  }
 0x4cd   : > { %4873 = vmatprep.subr.bf16.mxu1 %v6608_v6  ;;  %v6684_v5 = vld [vmem:[%s7622_s1 + $0x518] ss:$40 sps:$4 sm:$0xff]   ;;  %v6689_v6 = vld [vmem:[%s7622_s1 + $0x564] ss:$40 sps:$4 sm:$0xff]  }
 0x4cf   : > { %4792 = vmatpush1.bf16.msra.mxu0 %v6603_v8  ;;  %v6692_v8 = vld [vmem:[%s7622_s1 + $0x56c] ss:$40 sps:$4 sm:$0xff]  }
 0x4d0   : > { %4874 = vmatpush1.bf16.msra.mxu1 %v6606_v9  ;;  %4793 = vmatprep.subr.bf16.mxu0 %v6611_v10  ;;  %v6687_v9 = vld [vmem:[%s7622_s1 + $0x560] ss:$40 sps:$4 sm:$0xff]  }
 0x4d1   : > { %4875 = vmatprep.subr.bf16.mxu1 %v6614_v11  ;;  %v6690_v10 = vld [vmem:[%s7622_s1 + $0x568] ss:$40 sps:$4 sm:$0xff]   ;;  %v6695_v11 = vld [vmem:[%s7622_s1 + $0x5b4] ss:$40 sps:$4 sm:$0xff]  }
 0x4d3   : > { %4794 = vmatpush1.bf16.msra.mxu0 %v6609_v12  ;;  %v6698_v12 = vld [vmem:[%s7622_s1 + $0x5bc] ss:$40 sps:$4 sm:$0xff]  }
 0x4d4   : > { %4876 = vmatpush1.bf16.msra.mxu1 %v6612_v14  ;;  %4795 = vmatprep.subr.bf16.mxu0 %v6617_v19  ;;  %v6693_v14 = vld [vmem:[%s7622_s1 + $0x5b0] ss:$40 sps:$4 sm:$0xff]  }
 0x4d5   : > { %4877 = vmatprep.subr.bf16.mxu1 %v6620_v20  ;;  %v6696_v19 = vld [vmem:[%s7622_s1 + $0x5b8] ss:$40 sps:$4 sm:$0xff]   ;;  %v6701_v20 = vld [vmem:[%s7622_s1 + $0x604] ss:$40 sps:$4 sm:$0xff]  }
 0x4d7   : > { %4796 = vmatpush1.bf16.msra.mxu0 %v6615_v21  ;;  %v6704_v21 = vld [vmem:[%s7622_s1 + $0x60c] ss:$40 sps:$4 sm:$0xff]  }
 0x4d8   : > { %4878 = vmatpush1.bf16.msra.mxu1 %v6618_v22  ;;  %4797 = vmatprep.subr.bf16.mxu0 %v6623_v23  ;;  %v6699_v22 = vld [vmem:[%s7622_s1 + $0x600] ss:$40 sps:$4 sm:$0xff]  }
 0x4d9   : > { %4879 = vmatprep.subr.bf16.mxu1 %v6626_v24  ;;  %v6702_v23 = vld [vmem:[%s7622_s1 + $0x608] ss:$40 sps:$4 sm:$0xff]   ;;  %v6707_v24 = vld [vmem:[%s7622_s1 + $0x654] ss:$40 sps:$4 sm:$0xff]  }
 0x4db   : > { %4798 = vmatpush1.bf16.msra.mxu0 %v6621_v25  ;;  %v6710_v25 = vld [vmem:[%s7622_s1 + $0x65c] ss:$40 sps:$4 sm:$0xff]  }
 0x4dc   : > { %4880 = vmatpush1.bf16.msra.mxu1 %v6624_v26  ;;  %4799 = vmatprep.subr.bf16.mxu0 %v6629_v27  ;;  %v6705_v26 = vld [vmem:[%s7622_s1 + $0x650] ss:$40 sps:$4 sm:$0xff]  }
 0x4dd   : > { %4881 = vmatprep.subr.bf16.mxu1 %v6632_v28  ;;  %v6708_v27 = vld [vmem:[%s7622_s1 + $0x658] ss:$40 sps:$4 sm:$0xff]   ;;  %v6713_v28 = vld [vmem:[%s7622_s1 + $0x6a4] ss:$40 sps:$4 sm:$0xff]  }
 0x4df   : > { %4800 = vmatpush1.bf16.msra.mxu0 %v6627_v29  ;;  %v6716_v29 = vld [vmem:[%s7622_s1 + $0x6ac] ss:$40 sps:$4 sm:$0xff]  }
 0x4e0   : > { %4882 = vmatpush1.bf16.msra.mxu1 %v6630_v30  ;;  %4801 = vmatprep.subr.bf16.mxu0 %v6635_v31  ;;  %v6711_v30 = vld [vmem:[%s7622_s1 + $0x6a0] ss:$40 sps:$4 sm:$0xff]  }
 0x4e1   : > { %4883 = vmatprep.subr.bf16.mxu1 %v6638_v32  ;;  %v6714_v31 = vld [vmem:[%s7622_s1 + $0x6a8] ss:$40 sps:$4 sm:$0xff]   ;;  %v6719_v32 = vld [vmem:[%s7622_s1 + $0x6f4] ss:$40 sps:$4 sm:$0xff]  }
 0x4e3   : > { %4802 = vmatpush1.bf16.msra.mxu0 %v6633_v33  ;;  %v6722_v33 = vld [vmem:[%s7622_s1 + $0x6fc] ss:$40 sps:$4 sm:$0xff]  }
 0x4e4   : > { %4884 = vmatpush1.bf16.msra.mxu1 %v6636_v34  ;;  %4803 = vmatprep.subr.bf16.mxu0 %v6641_v35  ;;  %v6717_v34 = vld [vmem:[%s7622_s1 + $0x6f0] ss:$40 sps:$4 sm:$0xff]  }
 0x4e5   : > { %4885 = vmatprep.subr.bf16.mxu1 %v6644_v36  ;;  %v6720_v35 = vld [vmem:[%s7622_s1 + $0x6f8] ss:$40 sps:$4 sm:$0xff]   ;;  %v6725_v36 = vld [vmem:[%s7622_s1 + $0x744] ss:$40 sps:$4 sm:$0xff]  }
 0x4e7   : > { %4804 = vmatpush1.bf16.msra.mxu0 %v6639_v37  ;;  %v6728_v37 = vld [vmem:[%s7622_s1 + $0x74c] ss:$40 sps:$4 sm:$0xff]  }
 0x4e8   : > { %4886 = vmatpush1.bf16.msra.mxu1 %v6642_v38  ;;  %4805 = vmatprep.subr.bf16.mxu0 %v6647_v39  ;;  %v6723_v38 = vld [vmem:[%s7622_s1 + $0x740] ss:$40 sps:$4 sm:$0xff]  }
 0x4e9   : > { %4887 = vmatprep.subr.bf16.mxu1 %v6650_v40  ;;  %v6726_v39 = vld [vmem:[%s7622_s1 + $0x748] ss:$40 sps:$4 sm:$0xff]   ;;  %v6731_v40 = vld [vmem:[%s7622_s1 + $0x794] ss:$40 sps:$4 sm:$0xff]  }
 0x4eb   : > { %4806 = vmatpush1.bf16.msra.mxu0 %v6645_v42  ;;  %v6734_v42 = vld [vmem:[%s7622_s1 + $0x79c] ss:$40 sps:$4 sm:$0xff]  }
 0x4ec   : > { %4888 = vmatpush1.bf16.msra.mxu1 %v6648_v43  ;;  %4807 = vmatprep.subr.bf16.mxu0 %v6653_v45  ;;  %v6729_v43 = vld [vmem:[%s7622_s1 + $0x790] ss:$40 sps:$4 sm:$0xff]  }
 0x4ed   : > { %4889 = vmatprep.subr.bf16.mxu1 %v6656_v46  ;;  %v6732_v45 = vld [vmem:[%s7622_s1 + $0x798] ss:$40 sps:$4 sm:$0xff]   ;;  %v6737_v46 = vld [vmem:[%s7622_s1 + $0x7e4] ss:$40 sps:$4 sm:$0xff]  }
 0x4ef   : > { %4808 = vmatpush1.bf16.msra.mxu0 %v6651_v48  ;;  %v6740_v48 = vld [vmem:[%s7622_s1 + $0x7ec] ss:$40 sps:$4 sm:$0xff]  }
 0x4f0   : > { %4890 = vmatpush1.bf16.msra.mxu1 %v6654_v49  ;;  %4809 = vmatprep.subr.bf16.mxu0 %v6659_v58  ;;  %v6735_v49 = vld [vmem:[%s7622_s1 + $0x7e0] ss:$40 sps:$4 sm:$0xff]  }
 0x4f1   : > { %4891 = vmatprep.subr.bf16.mxu1 %v6662_v50  ;;  %v6738_v58 = vld [vmem:[%s7622_s1 + $0x7e8] ss:$40 sps:$4 sm:$0xff]   ;;  %v6743_v50 = vld [vmem:[%s7622_s1 + $0x834] ss:$40 sps:$4 sm:$0xff]  }
 0x4f3   : > { %4810 = vmatpush1.bf16.msra.mxu0 %v6657_v51  ;;  %v6746_v51 = vld [vmem:[%s7622_s1 + $0x83c] ss:$40 sps:$4 sm:$0xff]  }
 0x4f4   : > { %4892 = vmatpush1.bf16.msra.mxu1 %v6660_v52  ;;  %4811 = vmatprep.subr.bf16.mxu0 %v6665_v53  ;;  %v6741_v52 = vld [vmem:[%s7622_s1 + $0x830] ss:$40 sps:$4 sm:$0xff]  }
 0x4f5   : > { %4893 = vmatprep.subr.bf16.mxu1 %v6668_v54  ;;  %v6744_v53 = vld [vmem:[%s7622_s1 + $0x838] ss:$40 sps:$4 sm:$0xff]   ;;  %v6749_v54 = vld [vmem:[%s7622_s1 + $0x884] ss:$40 sps:$4 sm:$0xff]  }
 0x4f7   : > { %4812 = vmatpush1.bf16.msra.mxu0 %v6663_v55  ;;  %v6752_v55 = vld [vmem:[%s7622_s1 + $0x88c] ss:$40 sps:$4 sm:$0xff]  }
 0x4f8   : > { %4894 = vmatpush1.bf16.msra.mxu1 %v6666_v56  ;;  %4813 = vmatprep.subr.bf16.mxu0 %v6671_v57  ;;  %v6747_v56 = vld [vmem:[%s7622_s1 + $0x880] ss:$40 sps:$4 sm:$0xff]  }
 0x4f9   : > { %4895 = vmatprep.subr.bf16.mxu1 %v6674_v7  ;;  %v6750_v57 = vld [vmem:[%s7622_s1 + $0x888] ss:$40 sps:$4 sm:$0xff]   ;;  %v6755_v7 = vld [vmem:[%s7622_s1 + $0x8d4] ss:$40 sps:$4 sm:$0xff]  }
 0x4fb   : > { %4814 = vmatpush1.bf16.msra.mxu0 %v6669_v60  ;;  %v6758_v60 = vld [vmem:[%s7622_s1 + $0x8dc] ss:$40 sps:$4 sm:$0xff]  }
 0x4fc   : > { %4896 = vmatpush1.bf16.msra.mxu1 %v6672_v61  ;;  %4815 = vmatprep.subr.bf16.mxu0 %v6677_v62  ;;  %v6753_v61 = vld [vmem:[%s7622_s1 + $0x8d0] ss:$40 sps:$4 sm:$0xff]  }
 0x4fd   : > { %4897 = vmatprep.subr.bf16.mxu1 %v6680_v63  ;;  %v6756_v62 = vld [vmem:[%s7622_s1 + $0x8d8] ss:$40 sps:$4 sm:$0xff]   ;;  %v6761_v63 = vld [vmem:[%s7622_s1 + $0x924] ss:$40 sps:$4 sm:$0xff]  }
 0x4ff   : > { %4816 = vmatpush1.bf16.msra.mxu0 %v6675_v0  ;;  %v6764_v0 = vld [vmem:[%s7622_s1 + $0x92c] ss:$40 sps:$4 sm:$0xff]  }
 0x500   : > { %4898 = vmatpush1.bf16.msra.mxu1 %v6678_v1  ;;  %4826 = vmatprep.subr.bf16.mxu0 %v6683_v2  ;;  %v6759_v1 = vld [vmem:[%s7622_s1 + $0x920] ss:$40 sps:$4 sm:$0xff]  }
 0x501   : > { %4908 = vmatprep.subr.bf16.mxu1 %v6686_v3  ;;  %v6762_v2 = vld [vmem:[%s7622_s1 + $0x928] ss:$40 sps:$4 sm:$0xff]   ;;  %v6767_v3 = vld [vmem:[%s7622_s1 + $0x974] ss:$40 sps:$4 sm:$0xff]  }
 0x502   : > { %4818 = vmatmul.mubr.bf16.vlgmr.msra.gmra.mrb[16].mxu0 %v7748_v44 }
 0x503   : > { %4900 = vmatmul.mubr.bf16.vlgmr.msra.gmra.mrb[20].mxu1 %v7748_v44  ;;  %4827 = vmatpush1.bf16.msra.mxu0 %v6681_v4  ;;  %v6770_v4 = vld [vmem:[%s7622_s1 + $0x97c] ss:$40 sps:$4 sm:$0xff]  }
 0x504   : > { %4858 = vmatprep.mubr.bf16.mxu0 %v7754_v47  ;;  %4909 = vmatpush1.bf16.msra.mxu1 %v6684_v5  ;;  %v6765_v5 = vld [vmem:[%s7622_s1 + $0x970] ss:$40 sps:$4 sm:$0xff]  }
 0x505   : > { %4940 = vmatprep.mubr.bf16.mxu1 %v7754_v47  ;;  %4828 = vmatprep.subr.bf16.mxu0 %v6689_v6  ;;  %v6768_v6 = vld [vmem:[%s7622_s1 + $0x978] ss:$40 sps:$4 sm:$0xff]  }
 0x506   : > { %4910 = vmatprep.subr.bf16.mxu1 %v6692_v8  ;;  %v6773_v8 = vld [vmem:[%s7622_s1 + $0x9c4] ss:$40 sps:$4 sm:$0xff]  }
 0x507   : > { %4829 = vmatpush1.bf16.msra.mxu0 %v6687_v9  ;;  %v6776_v9 = vld [vmem:[%s7622_s1 + $0x9cc] ss:$40 sps:$4 sm:$0xff]  }
 0x508   : > { %4911 = vmatpush1.bf16.msra.mxu1 %v6690_v10  ;;  %4830 = vmatprep.subr.bf16.mxu0 %v6695_v11  ;;  %v6771_v10 = vld [vmem:[%s7622_s1 + $0x9c0] ss:$40 sps:$4 sm:$0xff]  }
 0x509   : > { %4912 = vmatprep.subr.bf16.mxu1 %v6698_v12  ;;  %v6774_v11 = vld [vmem:[%s7622_s1 + $0x9c8] ss:$40 sps:$4 sm:$0xff]   ;;  %v6779_v12 = vld [vmem:[%s7622_s1 + $0x24] ss:$40 sps:$4 sm:$0xff]  }
 0x50b   : > { %4831 = vmatpush1.bf16.msra.mxu0 %v6693_v14  ;;  %v6777_v14 = vld [vmem:[%s7622_s1 + $0x20] ss:$40 sps:$4 sm:$0xff]  }
 0x50c   : > { %4913 = vmatpush1.bf16.msra.mxu1 %v6696_v19  ;;  %4832 = vmatprep.subr.bf16.mxu0 %v6701_v20  ;;  %v6782_v19 = vld [vmem:[%s7622_s1 + $0x74] ss:$40 sps:$4 sm:$0xff]   ;;  %v6780_v20 = vld [vmem:[%s7622_s1 + $0x70] ss:$40 sps:$4 sm:$0xff]  }
 0x50d   : > { %4914 = vmatprep.subr.bf16.mxu1 %v6704_v21  ;;  %v6785_v21 = vld [vmem:[%s7622_s1 + $0xc4] ss:$40 sps:$4 sm:$0xff]  }
 0x50f   : > { %4833 = vmatpush1.bf16.msra.mxu0 %v6699_v22  ;;  %v6783_v22 = vld [vmem:[%s7622_s1 + $0xc0] ss:$40 sps:$4 sm:$0xff]  }
 0x510   : > { %4915 = vmatpush1.bf16.msra.mxu1 %v6702_v23  ;;  %4834 = vmatprep.subr.bf16.mxu0 %v6707_v24  ;;  %v6788_v23 = vld [vmem:[%s7622_s1 + $0x114] ss:$40 sps:$4 sm:$0xff]   ;;  %v6786_v24 = vld [vmem:[%s7622_s1 + $0x110] ss:$40 sps:$4 sm:$0xff]  }
 0x511   : > { %4916 = vmatprep.subr.bf16.mxu1 %v6710_v25  ;;  %v6791_v25 = vld [vmem:[%s7622_s1 + $0x164] ss:$40 sps:$4 sm:$0xff]  }
 0x513   : > { %4835 = vmatpush1.bf16.msra.mxu0 %v6705_v26  ;;  %v6789_v26 = vld [vmem:[%s7622_s1 + $0x160] ss:$40 sps:$4 sm:$0xff]  }
 0x514   : > { %4917 = vmatpush1.bf16.msra.mxu1 %v6708_v27  ;;  %4836 = vmatprep.subr.bf16.mxu0 %v6713_v28  ;;  %v6792_v27 = vld [vmem:[%s7622_s1 + $0x1b0] ss:$40 sps:$4 sm:$0xff]   ;;  %v6797_v28 = vld [vmem:[%s7622_s1 + $0x204] ss:$40 sps:$4 sm:$0xff]  }
 0x515   : > { %4918 = vmatprep.subr.bf16.mxu1 %v6716_v29  ;;  %v6795_v29 = vld [vmem:[%s7622_s1 + $0x200] ss:$40 sps:$4 sm:$0xff]  }
 0x517   : > { %4837 = vmatpush1.bf16.msra.mxu0 %v6711_v30  ;;  %v6800_v30 = vld [vmem:[%s7622_s1 + $0x254] ss:$40 sps:$4 sm:$0xff]  }
 0x518   : > { %4919 = vmatpush1.bf16.msra.mxu1 %v6714_v31  ;;  %4838 = vmatprep.subr.bf16.mxu0 %v6719_v32  ;;  %v6798_v31 = vld [vmem:[%s7622_s1 + $0x250] ss:$40 sps:$4 sm:$0xff]   ;;  %v6803_v32 = vld [vmem:[%s7622_s1 + $0x2a4] ss:$40 sps:$4 sm:$0xff]  }
 0x519   : > { %4920 = vmatprep.subr.bf16.mxu1 %v6722_v33  ;;  %v6801_v33 = vld [vmem:[%s7622_s1 + $0x2a0] ss:$40 sps:$4 sm:$0xff]  }
 0x51b   : > { %4839 = vmatpush1.bf16.msra.mxu0 %v6717_v34  ;;  %v6806_v34 = vld [vmem:[%s7622_s1 + $0x2f4] ss:$40 sps:$4 sm:$0xff]  }
 0x51c   : > { %4921 = vmatpush1.bf16.msra.mxu1 %v6720_v35  ;;  %4840 = vmatprep.subr.bf16.mxu0 %v6725_v36  ;;  %v6804_v35 = vld [vmem:[%s7622_s1 + $0x2f0] ss:$40 sps:$4 sm:$0xff]   ;;  %v6809_v36 = vld [vmem:[%s7622_s1 + $0x344] ss:$40 sps:$4 sm:$0xff]  }
 0x51d   : > { %4922 = vmatprep.subr.bf16.mxu1 %v6728_v37  ;;  %v6807_v37 = vld [vmem:[%s7622_s1 + $0x340] ss:$40 sps:$4 sm:$0xff]  }
 0x51f   : > { %4841 = vmatpush1.bf16.msra.mxu0 %v6723_v38  ;;  %v6812_v38 = vld [vmem:[%s7622_s1 + $0x394] ss:$40 sps:$4 sm:$0xff]  }
 0x520   : > { %4923 = vmatpush1.bf16.msra.mxu1 %v6726_v39  ;;  %4842 = vmatprep.subr.bf16.mxu0 %v6731_v40  ;;  %v6810_v39 = vld [vmem:[%s7622_s1 + $0x390] ss:$40 sps:$4 sm:$0xff]   ;;  %v6815_v40 = vld [vmem:[%s7622_s1 + $0x3e4] ss:$40 sps:$4 sm:$0xff]  }
 0x521   : > { %4924 = vmatprep.subr.bf16.mxu1 %v6734_v42  ;;  %v6813_v42 = vld [vmem:[%s7622_s1 + $0x3e0] ss:$40 sps:$4 sm:$0xff]  }
 0x523   : > { %4843 = vmatpush1.bf16.msra.mxu0 %v6729_v43  ;;  %v6818_v43 = vld [vmem:[%s7622_s1 + $0x434] ss:$40 sps:$4 sm:$0xff]  }
 0x524   : > { %4925 = vmatpush1.bf16.msra.mxu1 %v6732_v45  ;;  %4844 = vmatprep.subr.bf16.mxu0 %v6737_v46  ;;  %v6816_v45 = vld [vmem:[%s7622_s1 + $0x430] ss:$40 sps:$4 sm:$0xff]   ;;  %v6821_v46 = vld [vmem:[%s7622_s1 + $0x484] ss:$40 sps:$4 sm:$0xff]  }
 0x525   : > { %4926 = vmatprep.subr.bf16.mxu1 %v6740_v48  ;;  %v6819_v48 = vld [vmem:[%s7622_s1 + $0x480] ss:$40 sps:$4 sm:$0xff]  }
 0x527   : > { %4845 = vmatpush1.bf16.msra.mxu0 %v6735_v49  ;;  %v6824_v49 = vld [vmem:[%s7622_s1 + $0x4d4] ss:$40 sps:$4 sm:$0xff]  }
 0x528   : > { %4927 = vmatpush1.bf16.msra.mxu1 %v6738_v58  ;;  %4846 = vmatprep.subr.bf16.mxu0 %v6743_v50  ;;  %v6822_v58 = vld [vmem:[%s7622_s1 + $0x4d0] ss:$40 sps:$4 sm:$0xff]   ;;  %v6827_v50 = vld [vmem:[%s7622_s1 + $0x524] ss:$40 sps:$4 sm:$0xff]  }
 0x529   : > { %4928 = vmatprep.subr.bf16.mxu1 %v6746_v51  ;;  %v6825_v51 = vld [vmem:[%s7622_s1 + $0x520] ss:$40 sps:$4 sm:$0xff]  }
 0x52b   : > { %4847 = vmatpush1.bf16.msra.mxu0 %v6741_v52  ;;  %v6830_v52 = vld [vmem:[%s7622_s1 + $0x574] ss:$40 sps:$4 sm:$0xff]  }
 0x52c   : > { %4929 = vmatpush1.bf16.msra.mxu1 %v6744_v53  ;;  %4848 = vmatprep.subr.bf16.mxu0 %v6749_v54  ;;  %v6828_v53 = vld [vmem:[%s7622_s1 + $0x570] ss:$40 sps:$4 sm:$0xff]   ;;  %v6833_v54 = vld [vmem:[%s7622_s1 + $0x5c4] ss:$40 sps:$4 sm:$0xff]  }
 0x52d   : > { %4930 = vmatprep.subr.bf16.mxu1 %v6752_v55  ;;  %v6831_v55 = vld [vmem:[%s7622_s1 + $0x5c0] ss:$40 sps:$4 sm:$0xff]  }
 0x52f   : > { %4849 = vmatpush1.bf16.msra.mxu0 %v6747_v56  ;;  %v6836_v56 = vld [vmem:[%s7622_s1 + $0x614] ss:$40 sps:$4 sm:$0xff]  }
 0x530   : > { %4931 = vmatpush1.bf16.msra.mxu1 %v6750_v57  ;;  %4850 = vmatprep.subr.bf16.mxu0 %v6755_v7  ;;  %v6837_v57 = vld [vmem:[%s7622_s1 + $0x660] ss:$40 sps:$4 sm:$0xff]  }
 0x531   : > { %4932 = vmatprep.subr.bf16.mxu1 %v6758_v60  ;;  %v8018_v7 = vld [vmem:[%s437_s15] sm:$0xff]  ;;  %v6842_v60 = vld [vmem:[%s7622_s1 + $0x6b4] ss:$40 sps:$4 sm:$0xff]  }
 0x533   : > { %4851 = vmatpush1.bf16.msra.mxu0 %v6753_v61  ;;  %v2974_v61 = vrot.slane %v8018_v7, %v7631_v15 }
 0x534   : > { %4933 = vmatpush1.bf16.msra.mxu1 %v6756_v62  ;;  %4852 = vmatprep.subr.bf16.mxu0 %v6761_v63  ;;  %v2982_v62 = vrot.slane %v8018_v7, %v7637_v17  ;;  %v2978_v63 = vrot.slane %v8018_v7, %v7634_v16 }
 0x535   : > { %4934 = vmatprep.subr.bf16.mxu1 %v6764_v0  ;;  %v2986_v0 = vrot.slane %v8018_v7, %v7640_v18 }
 0x537   : > { %4853 = vmatpush1.bf16.msra.mxu0 %v6759_v1  ;;  %v6840_v1 = vld [vmem:[%s7622_s1 + $0x6b0] ss:$40 sps:$4 sm:$0xff]  }
 0x538   : > { %4935 = vmatpush1.bf16.msra.mxu1 %v6762_v2  ;;  %4854 = vmatprep.subr.bf16.mxu0 %v6767_v3  ;;  %v6845_v2 = vld [vmem:[%s7622_s1 + $0x704] ss:$40 sps:$4 sm:$0xff]  }
 0x539   : > { %4936 = vmatprep.subr.bf16.mxu1 %v6770_v4 }
 0x53b   : > { %4855 = vmatpush1.bf16.msra.mxu0 %v6765_v5 }
 0x53c   : > { %4937 = vmatpush1.bf16.msra.mxu1 %v6768_v6  ;;  %4856 = vmatprep.subr.bf16.mxu0 %v6773_v8 }
 0x53d   : > { %4938 = vmatprep.subr.bf16.mxu1 %v6776_v9 }
 0x53f   : > { %4857 = vmatpush1.bf16.msra.mxu0 %v6771_v10 }
 0x540   : > { %4939 = vmatpush1.bf16.msra.mxu1 %v6774_v11  ;;  %4949 = vmatprep.subr.bf16.mxu0 %v6779_v12  ;;  %v6843_v12 = vld [vmem:[%s7622_s1 + $0x700] ss:$40 sps:$4 sm:$0xff]  }
 0x542   : > { %4859 = vmatmul.mubr.bf16.vlgmr.msra.gmra.mrb[16].mxu0 %v7828_v59 }
 0x543   : > { %4941 = vmatmul.mubr.bf16.vlgmr.msra.gmra.mrb[20].mxu1 %v7828_v59  ;;  %4950 = vmatpush1.bf16.msra.mxu0 %v6777_v14 }
 0x544   : > { %4981 = vmatprep.mubr.bf16.mxu0 %v7744_v41  ;;  %4951 = vmatprep.subr.bf16.mxu0 %v6782_v19  ;;  %v6794_v41 = vld [vmem:[%s7622_s1 + $0x1b4] ss:$40 sps:$4 sm:$0xff]  }
 0x547   : > { %4952 = vmatpush1.bf16.msra.mxu0 %v6780_v20  ;;  %v6848_v20 = vld [vmem:[%s7622_s1 + $0x754] ss:$40 sps:$4 sm:$0xff]  }
 0x548   : > { %4953 = vmatprep.subr.bf16.mxu0 %v6785_v21  ;;  %v6846_v21 = vld [vmem:[%s7622_s1 + $0x750] ss:$40 sps:$4 sm:$0xff]  }
 0x54b   : > { %4954 = vmatpush1.bf16.msra.mxu0 %v6783_v22  ;;  %v6851_v22 = vld [vmem:[%s7622_s1 + $0x7a4] ss:$40 sps:$4 sm:$0xff]  }
 0x54c   : > { %4955 = vmatprep.subr.bf16.mxu0 %v6788_v23  ;;  %v6849_v23 = vld [vmem:[%s7622_s1 + $0x7a0] ss:$40 sps:$4 sm:$0xff]  }
 0x54f   : > { %4956 = vmatpush1.bf16.msra.mxu0 %v6786_v24  ;;  %v6854_v24 = vld [vmem:[%s7622_s1 + $0x7f4] ss:$40 sps:$4 sm:$0xff]  }
 0x550   : > { %4957 = vmatprep.subr.bf16.mxu0 %v6791_v25  ;;  %v6852_v25 = vld [vmem:[%s7622_s1 + $0x7f0] ss:$40 sps:$4 sm:$0xff]  }
 0x553   : > { %4958 = vmatpush1.bf16.msra.mxu0 %v6789_v26  ;;  %v6857_v26 = vld [vmem:[%s7622_s1 + $0x844] ss:$40 sps:$4 sm:$0xff]  }
 0x554   : > { %4959 = vmatprep.subr.bf16.mxu0 %v6794_v41  ;;  %v6855_v41 = vld [vmem:[%s7622_s1 + $0x840] ss:$40 sps:$4 sm:$0xff]  }
 0x557   : > { %4960 = vmatpush1.bf16.msra.mxu0 %v6792_v27  ;;  %v6860_v27 = vld [vmem:[%s7622_s1 + $0x894] ss:$40 sps:$4 sm:$0xff]  }
 0x558   : > { %4961 = vmatprep.subr.bf16.mxu0 %v6797_v28  ;;  %v6858_v28 = vld [vmem:[%s7622_s1 + $0x890] ss:$40 sps:$4 sm:$0xff]  }
 0x55b   : > { %4962 = vmatpush1.bf16.msra.mxu0 %v6795_v29  ;;  %v6863_v29 = vld [vmem:[%s7622_s1 + $0x8e4] ss:$40 sps:$4 sm:$0xff]  }
 0x55c   : > { %4963 = vmatprep.subr.bf16.mxu0 %v6800_v30  ;;  %v6861_v30 = vld [vmem:[%s7622_s1 + $0x8e0] ss:$40 sps:$4 sm:$0xff]  }
 0x55f   : > { %4964 = vmatpush1.bf16.msra.mxu0 %v6798_v31  ;;  %v6866_v31 = vld [vmem:[%s7622_s1 + $0x934] ss:$40 sps:$4 sm:$0xff]  }
 0x560   : > { %4965 = vmatprep.subr.bf16.mxu0 %v6803_v32  ;;  %v6864_v32 = vld [vmem:[%s7622_s1 + $0x930] ss:$40 sps:$4 sm:$0xff]  }
 0x563   : > { %4966 = vmatpush1.bf16.msra.mxu0 %v6801_v33  ;;  %v6869_v33 = vld [vmem:[%s7622_s1 + $0x984] ss:$40 sps:$4 sm:$0xff]  }
 0x564   : > { %4967 = vmatprep.subr.bf16.mxu0 %v6806_v34  ;;  %v6867_v34 = vld [vmem:[%s7622_s1 + $0x980] ss:$40 sps:$4 sm:$0xff]  }
 0x567   : > { %4968 = vmatpush1.bf16.msra.mxu0 %v6804_v35  ;;  %v6872_v35 = vld [vmem:[%s7622_s1 + $0x9d4] ss:$40 sps:$4 sm:$0xff]  }
 0x568   : > { %4969 = vmatprep.subr.bf16.mxu0 %v6809_v36  ;;  %v6870_v36 = vld [vmem:[%s7622_s1 + $0x9d0] ss:$40 sps:$4 sm:$0xff]  }
 0x56b   : > { %4970 = vmatpush1.bf16.msra.mxu0 %v6807_v37  ;;  %v2989_v37 = vsub.s32 4, %v7628_v13 }
 0x56c   : > { %4971 = vmatprep.subr.bf16.mxu0 %v6812_v38  ;;  %v2997_v38 = vsub.s32 6, %v7628_v13 }
 0x56f   : > { %4972 = vmatpush1.bf16.msra.mxu0 %v6810_v39  ;;  %v2993_v39 = vsub.s32 5, %v7628_v13 }
 0x570   : > { %4973 = vmatprep.subr.bf16.mxu0 %v6815_v40  ;;  %v3001_v40 = vsub.s32 7, %v7628_v13 }
 0x573   : > { %4974 = vmatpush1.bf16.msra.mxu0 %v6813_v42  ;;  %v2990_v42 = vrot.slane %v8018_v7, %v2989_v37 }
 0x574   : > { %4975 = vmatprep.subr.bf16.mxu0 %v6818_v43  ;;  %v2998_v43 = vrot.slane %v8018_v7, %v2997_v38 }
 0x577   : > { %4976 = vmatpush1.bf16.msra.mxu0 %v6816_v45  ;;  %v2994_v45 = vrot.slane %v8018_v7, %v2993_v39 }
 0x578   : > { %4977 = vmatprep.subr.bf16.mxu0 %v6821_v46  ;;  %v3002_v46 = vrot.slane %v8018_v7, %v3001_v40 }
 0x57b   : > { %4978 = vmatpush1.bf16.msra.mxu0 %v6819_v48 }
 0x57c   : > { %4979 = vmatprep.subr.bf16.mxu0 %v6824_v49 }
 0x57f   : > { %4980 = vmatpush1.bf16.msra.mxu0 %v6822_v58 }
 0x580   : > { %4990 = vmatprep.subr.bf16.mxu0 %v6827_v50 }
 0x582   : > { %4982 = vmatmul.mubr.bf16.vlgmr.msra.gmra.mrb[20].mxu0 %v7748_v44  ;;  %v6834_v44 = vld [vmem:[%s7622_s1 + $0x610] ss:$40 sps:$4 sm:$0xff]  }
 0x583   : > { %4991 = vmatpush1.bf16.msra.mxu0 %v6825_v51  ;;  %5022 = vmatprep.mubr.bf16.mxu0 %v7754_v47  ;;  %v6839_v47 = vld [vmem:[%s7622_s1 + $0x664] ss:$40 sps:$4 sm:$0xff]  }
 0x584   : > { %4992 = vmatprep.subr.bf16.mxu0 %v6830_v52 }
 0x587   : > { %4993 = vmatpush1.bf16.msra.mxu0 %v6828_v53 }
 0x588   : > { %4994 = vmatprep.subr.bf16.mxu0 %v6833_v54 }
 0x58b   : > { %4995 = vmatpush1.bf16.msra.mxu0 %v6831_v55 }
 0x58c   : > { %4996 = vmatprep.subr.bf16.mxu0 %v6836_v56 }
 0x58f   : > { %4997 = vmatpush1.bf16.msra.mxu0 %v6834_v44  ;;  %v2968_v44 = vld [vmem:[%s437_s15 + $0x8] sm:$0x3] }
 0x590   : > { %4998 = vmatprep.subr.bf16.mxu0 %v6839_v47  ;;  %v3006_v47 = vrot.slane %v2968_v44, %v7631_v15 }
 0x593   : > { %4999 = vmatpush1.bf16.msra.mxu0 %v6837_v57  ;;  %v3010_v57 = vrot.slane %v2968_v44, %v7634_v16 }
 0x594   : > { %5000 = vmatprep.subr.bf16.mxu0 %v6842_v60 }
 0x595   : > { %v4696_v3 = vpop.f32.mrb[12].mxu0  ;;  %v4778_v17 = vpop.f32.mrb[16].mxu1 }
 0x596   : > { %v5830_v4 = vadd.f32 %v4696_v3, %v2974_v61  ;;  %v5832_v5 = vadd.f32 %v4778_v17, %v2982_v62  ;;  %v4698_v6 = vpop.f32.mrb[13].mxu0  ;;  %v4780_v18 = vpop.f32.mrb[17].mxu1 }
 0x597   : > { %v5831_v8 = vadd.f32 %v4698_v6, %v2978_v63  ;;  %v5833_v9 = vadd.f32 %v4780_v18, %v2986_v0  ;;  %v4700_v10 = vpop.f32.mrb[14].mxu0  ;;  %v4782_v11 = vpop.f32.mrb[18].mxu1  ;;  %5001 = vmatpush1.bf16.msra.mxu0 %v6840_v1 }
 0x598   : > { %5031 = vst [vmem:[%s8034_s24] sm:$0xff] %v5830_v4  ;;  %5033 = vst [vmem:[%s8034_s24 + $0x10] sm:$0xff] %v5832_v5  ;;  %v4701_v14 = vpop.f32.mrb[15].mxu0  ;;  %v4783_v19 = vpop.f32.mrb[19].mxu1  ;;  %5002 = vmatprep.subr.bf16.mxu0 %v6845_v2 }
 0x599   : > { %5032 = vst [vmem:[%s8034_s24 + $0x8] sm:$0xff] %v5831_v8  ;;  %5034 = vst [vmem:[%s8034_s24 + $0x18] sm:$0xff] %v5833_v9 }
 0x59b   : > { %5003 = vmatpush1.bf16.msra.mxu0 %v6843_v12 }
 0x59c   : > { %5004 = vmatprep.subr.bf16.mxu0 %v6848_v20 }
 0x59f   : > { %5005 = vmatpush1.bf16.msra.mxu0 %v6846_v21 }
 0x5a0   : > { %5006 = vmatprep.subr.bf16.mxu0 %v6851_v22 }
 0x5a3   : > { %5007 = vmatpush1.bf16.msra.mxu0 %v6849_v23 }
 0x5a4   : > { %5008 = vmatprep.subr.bf16.mxu0 %v6854_v24 }
 0x5a7   : > { %5009 = vmatpush1.bf16.msra.mxu0 %v6852_v25 }
 0x5a8   : > { %5010 = vmatprep.subr.bf16.mxu0 %v6857_v26 }
 0x5ab   : > { %5011 = vmatpush1.bf16.msra.mxu0 %v6855_v41 }
 0x5ac   : > { %5012 = vmatprep.subr.bf16.mxu0 %v6860_v27 }
 0x5af   : > { %5013 = vmatpush1.bf16.msra.mxu0 %v6858_v28 }
 0x5b0   : > { %5014 = vmatprep.subr.bf16.mxu0 %v6863_v29 }
 0x5b3   : > { %5015 = vmatpush1.bf16.msra.mxu0 %v6861_v30 }
 0x5b4   : > { %5016 = vmatprep.subr.bf16.mxu0 %v6866_v31 }
 0x5b7   : > { %5017 = vmatpush1.bf16.msra.mxu0 %v6864_v32 }
 0x5b8   : > { %5018 = vmatprep.subr.bf16.mxu0 %v6869_v33 }
 0x5bb   : > { %5019 = vmatpush1.bf16.msra.mxu0 %v6867_v34 }
 0x5bc   : > { %5020 = vmatprep.subr.bf16.mxu0 %v6872_v35 }
 0x5bf   : > { %5021 = vmatpush1.bf16.msra.mxu0 %v6870_v36 }
 0x5c2   : > { %5023 = vmatmul.mubr.bf16.vlgmr.msra.gmra.mrb[20].mxu0 %v7828_v59 }
 0x615   : > { %v4860_v59 = vpop.f32.mrb[16].mxu0 }
 0x616   : > { %v5834_v48 = vadd.f32 %v4860_v59, %v2990_v42  ;;  %v4942_v49 = vpop.f32.mrb[20].mxu1  ;;  %v4862_v58 = vpop.f32.mrb[17].mxu0 }
 0x617   : > { %v5836_v50 = vadd.f32 %v4942_v49, %v2998_v43  ;;  %v5835_v51 = vadd.f32 %v4862_v58, %v2994_v45  ;;  %v4944_v52 = vpop.f32.mrb[21].mxu1  ;;  %v4864_v13 = vpop.f32.mrb[18].mxu0 }
 0x618   : > { %5035 = vst [vmem:[%s8034_s24 + $0x20] sm:$0xff] %v5834_v48  ;;  %v5837_v53 = vadd.f32 %v4944_v52, %v3002_v46  ;;  %v4946_v54 = vpop.f32.mrb[22].mxu1  ;;  %v4865_v55 = vpop.f32.mrb[19].mxu0 }
 0x619   : > { %5037 = vst [vmem:[%s8034_s24 + $0x30] sm:$0xff] %v5836_v50  ;;  %5036 = vst [vmem:[%s8034_s24 + $0x28] sm:$0xff] %v5835_v51  ;;  %v4947_v56 = vpop.f32.mrb[23].mxu1 }
 0x61a   : > { %5038 = vst [vmem:[%s8034_s24 + $0x38] sm:$0xff] %v5837_v53 }
 0x695   : > { %v5024_v7 = vpop.f32.mrb[20].mxu0 }
 0x696   : > { %v5838_v60 = vadd.f32 %v5024_v7, %v3006_v47  ;;  %v5026_v61 = vpop.f32.mrb[21].mxu0 }
 0x697   : > { %v5839_v62 = vadd.f32 %v5026_v61, %v3010_v57  ;;  %v5028_v63 = vpop.f32.mrb[22].mxu0 }
 0x698   : > { %5039 = vst [vmem:[%s8034_s24 + $0x40] sm:$0xff] %v5838_v60  ;;  %v5029_v0 = vpop.f32.mrb[23].mxu0 }
 0x699   : > { %5040 = vst [vmem:[%s8034_s24 + $0x48] sm:$0xff] %v5839_v62 }
 0x69a PF: > { %p23_p1 = scmp.ge.s32.totalorder %s7422_s22, 4   ;;  %s8140_s30 = smov %s7219_s10 }
 0x69b   : > { %s8141_s10 = smov %s7223_s11  ;;  %s8142_s11 = smov %s7433_s25 }
 0x69c   : > { %s8143_s12 = smov %s7422_s22  ;;  %25 = sbr.rel (!%p23_p1) target bundleno = 13 (0xd), region = 136 }
 0x6a3   :  { %5063 = vsyncpa [#allocation3], 1 }
 0x6a4   :  { %5065 = vsyncpa [#allocation3 + $0x1], 1 }
 0x6a5   :  { %5066 = vsyncpa [#allocation5], 1 }
 0x6a6   :  { %5067 = vsyncpa [#allocation8], 1 }
 0x6a7   :  { %5068 = vsyncpa [#allocation11], 1 }
 0x6a8   :  { %5069 = vsyncpa [#allocation14], 1 }
 0x6a9   :  { %5071 = vsyncpa [#allocation14 + $0x1], 1 }

</bundles_post_ra>
